<compile_context>
chip_gen: v7x
topology: tpu7x:2x2x1
jax: 0.10.0
libtpu: 0.0.40
codegen_flags: <defaults>
</compile_context>

<pallas_src>
import math
import jax
import jax.numpy as jnp
from jax.experimental import pallas as pl
from jax.experimental.pallas import tpu as pltpu

D_MODEL = 128
NHEAD = 4
HEAD_DIM = D_MODEL // NHEAD
DIM_FF = 256
NUM_LAYERS = 2
VOCAB_SIZE = 4          # vocab = {'<PAD>':0, '<SOS>':1, '<EOS>':2, '<UNK>':3}
V_PAD = 128             # lane-dense padded logits width
LN_EPS = 1e-5
PSLAB_W = 3 * D_MODEL   # width of the f32 bias/layernorm slab (384)
ROWS_PER_LAYER = 8      # bqkv, bo, b1, b2, ln1w, ln1b, ln2w, ln2b


# ---------------------------------------------------------------------------
# Fused Pallas kernel: whole forward for TB batch elements per grid step
# ---------------------------------------------------------------------------
def _layernorm(x, w, b):
    mu = jnp.mean(x, axis=-1, keepdims=True)
    var = jnp.mean((x - mu) ** 2, axis=-1, keepdims=True)
    return (x - mu) * jax.lax.rsqrt(var + LN_EPS) * w + b


def fused_transformer_kernel(x_ref, wa_ref, w2_ref, outw_ref, pslab_ref, o_ref):
    """NUM_LAYERS post-norm nn.TransformerEncoderLayer's + output linear for a
    (TB, S, D) block of batch elements.

    wa_ref   : (L, D, 3D + D + FF) bf16   [wqkv^T (scale folded into Q) | wo^T | w1^T]
    w2_ref   : (L, FF, D)          bf16   w2^T
    outw_ref : (D, V_PAD)          bf16   output linear^T (lane padded)
    pslab_ref: (8L + 1, 384)       f32    biases + layernorm params + out bias
    """
    TB, S, D = x_ref.shape
    M = TB * S

    x = x_ref[...].reshape(M, D)                      # (M, D) f32
    pslab = pslab_ref[...]                            # (8L+1, 384) f32

    for layer in range(NUM_LAYERS):                   # static layer loop
        wa = wa_ref[layer]                            # (D, 768) bf16
        wqkv = wa[:, :3 * D_MODEL]                    # (D, 3D)
        wo = wa[:, 3 * D_MODEL:4 * D_MODEL]           # (D, D)
        w1 = wa[:, 4 * D_MODEL:4 * D_MODEL + DIM_FF]  # (D, FF)
        w2 = w2_ref[layer]                            # (FF, D) bf16

        base = layer * ROWS_PER_LAYER
        bqkv = pslab[base + 0:base + 1, :3 * D_MODEL]
        bo = pslab[base + 1:base + 2, :D_MODEL]
        b1 = pslab[base + 2:base + 3, :DIM_FF]
        b2 = pslab[base + 3:base + 4, :D_MODEL]
        ln1w = pslab[base + 4:base + 5, :D_MODEL]
        ln1b = pslab[base + 5:base + 6, :D_MODEL]
        ln2w = pslab[base + 6:base + 7, :D_MODEL]
        ln2b = pslab[base + 7:base + 8, :D_MODEL]

        # --- self attention: packed QKV over all TB*S rows (bf16 MXU, f32 acc)
        qkv = jnp.dot(x.astype(jnp.bfloat16), wqkv,
                      preferred_element_type=jnp.float32) + bqkv    # (M, 3D)
        # 1/sqrt(HEAD_DIM) already folded into the Q columns of wqkv / bqkv.
        q = qkv[:, :D_MODEL].astype(jnp.bfloat16)                   # (M, D)
        k = qkv[:, D_MODEL:2 * D_MODEL].astype(jnp.bfloat16)
        v = qkv[:, 2 * D_MODEL:].astype(jnp.bfloat16)

        # per-(batch, head) softmax(QK^T)V -> lane-concat heads -> one Wo matmul
        batch_outs = []
        for b in range(TB):                            # static batch loop
            r0, r1 = b * S, (b + 1) * S
            head_outs = []
            for h in range(NHEAD):                     # static head loop
                c0, c1 = h * HEAD_DIM, (h + 1) * HEAD_DIM
                qh = q[r0:r1, c0:c1]                   # (S, Hd) bf16
                kh = k[r0:r1, c0:c1]
                vh = v[r0:r1, c0:c1]
                # q @ k^T without an explicit transpose (contract last dims)
                s = jax.lax.dot_general(qh, kh, (((1,), (1,)), ((), ())),
                                        preferred_element_type=jnp.float32)
                m = jnp.max(s, axis=-1, keepdims=True)
                p = jnp.exp(s - m)
                p = p * pl.reciprocal(jnp.sum(p, axis=-1, keepdims=True),
                                      approx=True)
                ho = jnp.dot(p.astype(jnp.bfloat16), vh,
                             preferred_element_type=jnp.float32)    # (S, Hd)
                head_outs.append(ho.astype(jnp.bfloat16))
            batch_outs.append(jnp.concatenate(head_outs, axis=-1))  # (S, D)
        heads = jnp.concatenate(batch_outs, axis=0)                 # (M, D) bf16

        attn = jnp.dot(heads, wo, preferred_element_type=jnp.float32) + bo
        # dropout1 is identity in eval mode
        x = _layernorm(x + attn, ln1w, ln1b)

        # --- feed forward (relu activation, default) ---
        h1 = jnp.dot(x.astype(jnp.bfloat16), w1,
                     preferred_element_type=jnp.float32) + b1
        h1 = jnp.maximum(h1, 0.0)
        ff = jnp.dot(h1.astype(jnp.bfloat16), w2,
                     preferred_element_type=jnp.float32) + b2
        # dropout2 is identity in eval mode
        x = _layernorm(x + ff, ln2w, ln2b)

    # --- output linear, lane-dense (padded to V_PAD=128 lanes) ---
    out_b = pslab[NUM_LAYERS * ROWS_PER_LAYER:NUM_LAYERS * ROWS_PER_LAYER + 1,
                  :V_PAD]
    logits = jnp.dot(x.astype(jnp.bfloat16), outw_ref[...],
                     preferred_element_type=jnp.float32) + out_b    # (M, V_PAD)
    o_ref[...] = logits.reshape(TB, S, V_PAD)


# ---------------------------------------------------------------------------
# One-time weight preparation (hoisted out of the forward pass)
# ---------------------------------------------------------------------------
def prepare_weights(params):
    """Pack everything into 4 slabs: 2 bf16 matmul slabs, bf16 out proj, and
    one f32 bias/layernorm slab. The 1/sqrt(head_dim) scale is folded into
    the Q part of wqkv/bqkv."""
    scale = 1.0 / math.sqrt(HEAD_DIM)
    wa_list, w2_list, prows = [], [], []

    def row(v):
        r = jnp.zeros((1, PSLAB_W), jnp.float32)
        return r.at[:, :v.shape[-1]].set(v.reshape(1, -1))

    for p in params['layers']:
        wqkv_t = p['wqkv'].T                                  # (D, 3D) cols q|k|v
        wqkv_t = wqkv_t.at[:, :D_MODEL].multiply(scale)       # fold 1/sqrt(Hd) into Q
        bqkv = p['bqkv'].at[:, :D_MODEL].multiply(scale)
        wa = jnp.concatenate([wqkv_t, p['wo'].T, p['w1'].T], axis=1)   # (D, 768)
        wa_list.append(wa.astype(jnp.bfloat16))
        w2_list.append(p['w2'].T.astype(jnp.bfloat16))        # (FF, D)
        prows += [row(bqkv), row(p['bo']), row(p['b1']), row(p['b2']),
                  row(p['ln1w']), row(p['ln1b']), row(p['ln2w']), row(p['ln2b'])]

    out_w_pad = jnp.zeros((V_PAD, D_MODEL), jnp.float32).at[:VOCAB_SIZE].set(
        params['out_w'])
    out_b_pad = jnp.zeros((1, PSLAB_W), jnp.float32).at[:, :VOCAB_SIZE].set(
        params['out_b'])
    prows.append(out_b_pad)

    return dict(
        wa=jnp.stack(wa_list, axis=0),              # (L, D, 768)  bf16
        w2=jnp.stack(w2_list, axis=0),              # (L, FF, D)   bf16
        out_w=out_w_pad.T.astype(jnp.bfloat16),     # (D, V_PAD)   bf16
        pslab=jnp.concatenate(prows, axis=0),       # (8L+1, 384)  f32
    )


# ---------------------------------------------------------------------------
# pallas_call wrapper
# ---------------------------------------------------------------------------
def _pick_tb(B, S, target_rows=2048, min_grid=2):
    """Largest divisor of B keeping TB*S under the row target (sized for v7x's
    64 MiB VMEM; v6e/v5e have headroom), preferring >=2 grid steps so both
    v7x TensorCores get work."""
    cap = max(1, target_rows // S)
    divisors = [d for d in range(1, B + 1) if B % d == 0 and d <= cap]
    pref = [d for d in divisors if B // d >= min_grid]
    return max(pref) if pref else (max(divisors) if divisors else 1)


def fused_forward(x, prepared, tb=None):
    """x: (B, S, D) f32 -> (B, S, V_PAD) f32 logits (lane padded)."""
    B, S, D = x.shape
    if tb is None:
        tb = _pick_tb(B, S)
    assert B % tb == 0
    wa, w2, out_w, pslab = (prepared['wa'], prepared['w2'],
                            prepared['out_w'], prepared['pslab'])
    in_specs = [
        pl.BlockSpec((tb, S, D), lambda b: (b, 0, 0)),
        pl.BlockSpec(wa.shape, lambda b: (0, 0, 0)),
        pl.BlockSpec(w2.shape, lambda b: (0, 0, 0)),
        pl.BlockSpec(out_w.shape, lambda b: (0, 0)),
        pl.BlockSpec(pslab.shape, lambda b: (0, 0)),
    ]
    return pl.pallas_call(
        fused_transformer_kernel,
        out_shape=jax.ShapeDtypeStruct((B, S, V_PAD), jnp.float32),
        grid_spec=pltpu.PrefetchScalarGridSpec(
            num_scalar_prefetch=0, grid=(B // tb,),
            in_specs=in_specs,
            out_specs=pl.BlockSpec((tb, S, V_PAD), lambda b: (b, 0, 0))),
        compiler_params=pltpu.CompilerParams(
            dimension_semantics=("parallel",),        # megacore batch sharding
            vmem_limit_bytes=32 * 1024 * 1024),       # fine on v5e/v6e/v7x
    )(x, wa, w2, out_w, pslab)


# ---------------------------------------------------------------------------
# Model glue (embedding lookup, positional encoding) — plain JAX, tiny
# ---------------------------------------------------------------------------
def positional_encoding(max_len, d_model):
    position = jnp.arange(max_len, dtype=jnp.float32)[:, None]
    div_term = jnp.exp(jnp.arange(0, d_model, 2, dtype=jnp.float32)
                       * (-math.log(10000.0) / d_model))
    pe = jnp.zeros((max_len, d_model), dtype=jnp.float32)
    pe = pe.at[:, 0::2].set(jnp.sin(position * div_term))
    pe = pe.at[:, 1::2].set(jnp.cos(position * div_term))
    return pe


def transformer_forward(src, embedding, pe, prepared):
    # src: (S, B) int32 tokens (PyTorch batch_first=False)
    S, B = src.shape
    x = embedding[src] * math.sqrt(D_MODEL)                   # (S, B, D)
    x = x + pe[:S][:, None, :]                                # positional encoding
    # pos-encoder dropout is identity in eval mode
    x = jnp.transpose(x, (1, 0, 2))                           # (B, S, D)
    out = fused_forward(x, prepared)                          # (B, S, V_PAD)
    out = out[:, :, :VOCAB_SIZE]                              # drop lane padding
    return jnp.transpose(out, (1, 0, 2))                      # (S, B, vocab)


def init_params(key):
    keys = jax.random.split(key, 2 + NUM_LAYERS)
    initrange = 0.1

    def xavier(k, shape):
        bound = math.sqrt(6.0 / (shape[0] + shape[1]))
        return jax.random.uniform(k, shape, jnp.float32, -bound, bound)

    emb = jax.random.uniform(keys[0], (VOCAB_SIZE, D_MODEL), jnp.float32,
                             -initrange, initrange)
    emb = emb.at[0].set(0.0)                                  # padding_idx=0
    out_w = jax.random.uniform(keys[1], (VOCAB_SIZE, D_MODEL), jnp.float32,
                               -initrange, initrange)
    out_b = jnp.zeros((1, VOCAB_SIZE), jnp.float32)           # linear.bias zeroed

    layers = []
    for i in range(NUM_LAYERS):
        lk = jax.random.split(keys[2 + i], 6)
        layers.append(dict(
            wqkv=xavier(lk[0], (3 * D_MODEL, D_MODEL)),
            bqkv=jnp.zeros((1, 3 * D_MODEL), jnp.float32),
            wo=xavier(lk[1], (D_MODEL, D_MODEL)),
            bo=jnp.zeros((1, D_MODEL), jnp.float32),
            ln1w=jnp.ones((1, D_MODEL), jnp.float32),
            ln1b=jnp.zeros((1, D_MODEL), jnp.float32),
            ln2w=jnp.ones((1, D_MODEL), jnp.float32),
            ln2b=jnp.zeros((1, D_MODEL), jnp.float32),
            w1=xavier(lk[2], (DIM_FF, D_MODEL)),
            b1=jax.random.uniform(lk[3], (1, DIM_FF), jnp.float32, -0.05, 0.05),
            w2=xavier(lk[4], (D_MODEL, DIM_FF)),
            b2=jax.random.uniform(lk[5], (1, D_MODEL), jnp.float32, -0.05, 0.05),
        ))
    return dict(embedding=emb, pe=positional_encoding(5000, D_MODEL),
                layers=layers, out_w=out_w, out_b=out_b)


if __name__ == "__main__":
    params = init_params(jax.random.PRNGKey(0))
    prepared = prepare_weights(params)     # one-time layout plumbing (hoisted)
    S, B = 8, 4
    src = jax.random.randint(jax.random.PRNGKey(1), (S, B), 0, VOCAB_SIZE,
                             dtype=jnp.int32)
    fwd = jax.jit(transformer_forward)
    out = fwd(src, params['embedding'], params['pe'], prepared)
    jax.block_until_ready(out)
    assert out.shape == (S, B, VOCAB_SIZE) and out.dtype == jnp.float32
    assert bool(jnp.all(jnp.isfinite(out)))
    print("KERNEL_OK")
</pallas_src>

<mosaic_0001>
module attributes {stable_mosaic.version = 11 : i64} {
  func.func @fused_transformer_kernel(%arg0: i32, %arg1: memref<2x8x128xf32, #tpu.memory_space<vmem>>, %arg2: memref<2x128x768xbf16, #tpu.memory_space<vmem>>, %arg3: memref<2x256x128xbf16, #tpu.memory_space<vmem>>, %arg4: memref<128x128xbf16, #tpu.memory_space<vmem>>, %arg5: memref<17x384xf32, #tpu.memory_space<vmem>>, %arg6: memref<2x8x128xf32, #tpu.memory_space<vmem>>) attributes {dimension_semantics = [#tpu.dimension_semantics<parallel>], iteration_bounds = array<i64: 2>, scalar_prefetch = 0 : i64, scratch_operands = 0 : i64, tpu.core_type = #tpu.core_type<tc>, window_params = [{transform_indices = @transform_0, window_bounds = array<i64: 2, 8, 128>}, {pipeline_mode = #tpu.pipeline_mode<synchronous>, transform_indices = @transform_1, window_bounds = array<i64: 2, 128, 768>}, {pipeline_mode = #tpu.pipeline_mode<synchronous>, transform_indices = @transform_2, window_bounds = array<i64: 2, 256, 128>}, {pipeline_mode = #tpu.pipeline_mode<synchronous>, transform_indices = @transform_3, window_bounds = array<i64: 128, 128>}, {pipeline_mode = #tpu.pipeline_mode<synchronous>, transform_indices = @transform_4, window_bounds = array<i64: 17, 384>}, {transform_indices = @transform_5, window_bounds = array<i64: 2, 8, 128>}]} {
    %c0 = arith.constant 0 : index
    %c0_0 = arith.constant 0 : index
    %c0_1 = arith.constant 0 : index
    %0 = vector.load %arg1[%c0, %c0_0, %c0_1] : memref<2x8x128xf32, #tpu.memory_space<vmem>>, vector<2x8x128xf32>
    %1 = vector.shape_cast %0 : vector<2x8x128xf32> to vector<16x128xf32>
    %c0_2 = arith.constant 0 : index
    %c0_3 = arith.constant 0 : index
    %2 = vector.load %arg5[%c0_2, %c0_3] : memref<17x384xf32, #tpu.memory_space<vmem>>, vector<17x384xf32>
    %c0_4 = arith.constant 0 : index
    %c0_5 = arith.constant 0 : index
    %c0_6 = arith.constant 0 : index
    %3 = vector.load %arg2[%c0_4, %c0_5, %c0_6] : memref<2x128x768xbf16, #tpu.memory_space<vmem>>, vector<1x128x768xbf16>
    %4 = vector.shape_cast %3 : vector<1x128x768xbf16> to vector<128x768xbf16>
    %5 = vector.extract_strided_slice %4 {offsets = [0, 0], sizes = [128, 384], strides = [1, 1]} : vector<128x768xbf16> to vector<128x384xbf16>
    %6 = vector.extract_strided_slice %4 {offsets = [0, 384], sizes = [128, 128], strides = [1, 1]} : vector<128x768xbf16> to vector<128x128xbf16>
    %7 = vector.extract_strided_slice %4 {offsets = [0, 512], sizes = [128, 256], strides = [1, 1]} : vector<128x768xbf16> to vector<128x256xbf16>
    %c0_7 = arith.constant 0 : index
    %c0_8 = arith.constant 0 : index
    %c0_9 = arith.constant 0 : index
    %8 = vector.load %arg3[%c0_7, %c0_8, %c0_9] : memref<2x256x128xbf16, #tpu.memory_space<vmem>>, vector<1x256x128xbf16>
    %9 = vector.shape_cast %8 : vector<1x256x128xbf16> to vector<256x128xbf16>
    %10 = vector.extract_strided_slice %2 {offsets = [0, 0], sizes = [1, 384], strides = [1, 1]} : vector<17x384xf32> to vector<1x384xf32>
    %11 = vector.extract_strided_slice %2 {offsets = [1, 0], sizes = [1, 128], strides = [1, 1]} : vector<17x384xf32> to vector<1x128xf32>
    %12 = vector.extract_strided_slice %2 {offsets = [2, 0], sizes = [1, 256], strides = [1, 1]} : vector<17x384xf32> to vector<1x256xf32>
    %13 = vector.extract_strided_slice %2 {offsets = [3, 0], sizes = [1, 128], strides = [1, 1]} : vector<17x384xf32> to vector<1x128xf32>
    %14 = vector.extract_strided_slice %2 {offsets = [4, 0], sizes = [1, 128], strides = [1, 1]} : vector<17x384xf32> to vector<1x128xf32>
    %15 = vector.extract_strided_slice %2 {offsets = [5, 0], sizes = [1, 128], strides = [1, 1]} : vector<17x384xf32> to vector<1x128xf32>
    %16 = vector.extract_strided_slice %2 {offsets = [6, 0], sizes = [1, 128], strides = [1, 1]} : vector<17x384xf32> to vector<1x128xf32>
    %17 = vector.extract_strided_slice %2 {offsets = [7, 0], sizes = [1, 128], strides = [1, 1]} : vector<17x384xf32> to vector<1x128xf32>
    %18 = arith.truncf %1 : vector<16x128xf32> to vector<16x128xbf16>
    %cst = arith.constant dense<0.000000e+00> : vector<16x384xf32>
    %19 = tpu.matmul %18, %5, %cst {dimension_numbers = #tpu.dot_dimension_numbers<[1], [0], [0], [1], [0, 0, 1, 1], [], []>} : vector<16x128xbf16>, vector<128x384xbf16>, vector<16x384xf32> -> vector<16x384xf32>
    %20 = vector.broadcast %10 : vector<1x384xf32> to vector<16x384xf32>
    %21 = arith.addf %19, %20 : vector<16x384xf32>
    %22 = vector.extract_strided_slice %21 {offsets = [0, 0], sizes = [16, 128], strides = [1, 1]} : vector<16x384xf32> to vector<16x128xf32>
    %23 = arith.truncf %22 : vector<16x128xf32> to vector<16x128xbf16>
    %24 = vector.extract_strided_slice %21 {offsets = [0, 128], sizes = [16, 128], strides = [1, 1]} : vector<16x384xf32> to vector<16x128xf32>
    %25 = arith.truncf %24 : vector<16x128xf32> to vector<16x128xbf16>
    %26 = vector.extract_strided_slice %21 {offsets = [0, 256], sizes = [16, 128], strides = [1, 1]} : vector<16x384xf32> to vector<16x128xf32>
    %27 = arith.truncf %26 : vector<16x128xf32> to vector<16x128xbf16>
    %28 = vector.extract_strided_slice %23 {offsets = [0, 0], sizes = [8, 32], strides = [1, 1]} : vector<16x128xbf16> to vector<8x32xbf16>
    %29 = vector.extract_strided_slice %25 {offsets = [0, 0], sizes = [8, 32], strides = [1, 1]} : vector<16x128xbf16> to vector<8x32xbf16>
    %30 = vector.extract_strided_slice %27 {offsets = [0, 0], sizes = [8, 32], strides = [1, 1]} : vector<16x128xbf16> to vector<8x32xbf16>
    %cst_10 = arith.constant dense<0.000000e+00> : vector<8x8xf32>
    %31 = tpu.matmul %28, %29, %cst_10 {dimension_numbers = #tpu.dot_dimension_numbers<[1], [1], [0], [0], [0, 0, 1, 0], [], []>} : vector<8x32xbf16>, vector<8x32xbf16>, vector<8x8xf32> -> vector<8x8xf32>
    %cst_11 = arith.constant dense<0xFF800000> : vector<8xf32>
    %32 = vector.multi_reduction <maximumf>, %31, %cst_11 [1] : vector<8x8xf32> to vector<8xf32>
    %33 = vector.shape_cast %32 : vector<8xf32> to vector<8x1xf32>
    %34 = vector.broadcast %33 : vector<8x1xf32> to vector<8x8xf32>
    %35 = arith.subf %31, %34 : vector<8x8xf32>
    %36 = math.exp %35 : vector<8x8xf32>
    %cst_12 = arith.constant dense<0.000000e+00> : vector<8xf32>
    %37 = vector.multi_reduction <add>, %36, %cst_12 [1] : vector<8x8xf32> to vector<8xf32>
    %38 = vector.shape_cast %37 : vector<8xf32> to vector<8x1xf32>
    %39 = tpu.reciprocal %38 {approx = true} : vector<8x1xf32> -> vector<8x1xf32>
    %40 = vector.broadcast %39 : vector<8x1xf32> to vector<8x8xf32>
    %41 = arith.mulf %36, %40 : vector<8x8xf32>
    %42 = arith.truncf %41 : vector<8x8xf32> to vector<8x8xbf16>
    %cst_13 = arith.constant dense<0.000000e+00> : vector<8x32xf32>
    %43 = tpu.matmul %42, %30, %cst_13 {dimension_numbers = #tpu.dot_dimension_numbers<[1], [0], [0], [1], [0, 0, 1, 1], [], []>} : vector<8x8xbf16>, vector<8x32xbf16>, vector<8x32xf32> -> vector<8x32xf32>
    %44 = arith.truncf %43 : vector<8x32xf32> to vector<8x32xbf16>
    %45 = vector.extract_strided_slice %23 {offsets = [0, 32], sizes = [8, 32], strides = [1, 1]} : vector<16x128xbf16> to vector<8x32xbf16>
    %46 = vector.extract_strided_slice %25 {offsets = [0, 32], sizes = [8, 32], strides = [1, 1]} : vector<16x128xbf16> to vector<8x32xbf16>
    %47 = vector.extract_strided_slice %27 {offsets = [0, 32], sizes = [8, 32], strides = [1, 1]} : vector<16x128xbf16> to vector<8x32xbf16>
    %cst_14 = arith.constant dense<0.000000e+00> : vector<8x8xf32>
    %48 = tpu.matmul %45, %46, %cst_14 {dimension_numbers = #tpu.dot_dimension_numbers<[1], [1], [0], [0], [0, 0, 1, 0], [], []>} : vector<8x32xbf16>, vector<8x32xbf16>, vector<8x8xf32> -> vector<8x8xf32>
    %cst_15 = arith.constant dense<0xFF800000> : vector<8xf32>
    %49 = vector.multi_reduction <maximumf>, %48, %cst_15 [1] : vector<8x8xf32> to vector<8xf32>
    %50 = vector.shape_cast %49 : vector<8xf32> to vector<8x1xf32>
    %51 = vector.broadcast %50 : vector<8x1xf32> to vector<8x8xf32>
    %52 = arith.subf %48, %51 : vector<8x8xf32>
    %53 = math.exp %52 : vector<8x8xf32>
    %cst_16 = arith.constant dense<0.000000e+00> : vector<8xf32>
    %54 = vector.multi_reduction <add>, %53, %cst_16 [1] : vector<8x8xf32> to vector<8xf32>
    %55 = vector.shape_cast %54 : vector<8xf32> to vector<8x1xf32>
    %56 = tpu.reciprocal %55 {approx = true} : vector<8x1xf32> -> vector<8x1xf32>
    %57 = vector.broadcast %56 : vector<8x1xf32> to vector<8x8xf32>
    %58 = arith.mulf %53, %57 : vector<8x8xf32>
    %59 = arith.truncf %58 : vector<8x8xf32> to vector<8x8xbf16>
    %cst_17 = arith.constant dense<0.000000e+00> : vector<8x32xf32>
    %60 = tpu.matmul %59, %47, %cst_17 {dimension_numbers = #tpu.dot_dimension_numbers<[1], [0], [0], [1], [0, 0, 1, 1], [], []>} : vector<8x8xbf16>, vector<8x32xbf16>, vector<8x32xf32> -> vector<8x32xf32>
    %61 = arith.truncf %60 : vector<8x32xf32> to vector<8x32xbf16>
    %62 = vector.extract_strided_slice %23 {offsets = [0, 64], sizes = [8, 32], strides = [1, 1]} : vector<16x128xbf16> to vector<8x32xbf16>
    %63 = vector.extract_strided_slice %25 {offsets = [0, 64], sizes = [8, 32], strides = [1, 1]} : vector<16x128xbf16> to vector<8x32xbf16>
    %64 = vector.extract_strided_slice %27 {offsets = [0, 64], sizes = [8, 32], strides = [1, 1]} : vector<16x128xbf16> to vector<8x32xbf16>
    %cst_18 = arith.constant dense<0.000000e+00> : vector<8x8xf32>
    %65 = tpu.matmul %62, %63, %cst_18 {dimension_numbers = #tpu.dot_dimension_numbers<[1], [1], [0], [0], [0, 0, 1, 0], [], []>} : vector<8x32xbf16>, vector<8x32xbf16>, vector<8x8xf32> -> vector<8x8xf32>
    %cst_19 = arith.constant dense<0xFF800000> : vector<8xf32>
    %66 = vector.multi_reduction <maximumf>, %65, %cst_19 [1] : vector<8x8xf32> to vector<8xf32>
    %67 = vector.shape_cast %66 : vector<8xf32> to vector<8x1xf32>
    %68 = vector.broadcast %67 : vector<8x1xf32> to vector<8x8xf32>
    %69 = arith.subf %65, %68 : vector<8x8xf32>
    %70 = math.exp %69 : vector<8x8xf32>
    %cst_20 = arith.constant dense<0.000000e+00> : vector<8xf32>
    %71 = vector.multi_reduction <add>, %70, %cst_20 [1] : vector<8x8xf32> to vector<8xf32>
    %72 = vector.shape_cast %71 : vector<8xf32> to vector<8x1xf32>
    %73 = tpu.reciprocal %72 {approx = true} : vector<8x1xf32> -> vector<8x1xf32>
    %74 = vector.broadcast %73 : vector<8x1xf32> to vector<8x8xf32>
    %75 = arith.mulf %70, %74 : vector<8x8xf32>
    %76 = arith.truncf %75 : vector<8x8xf32> to vector<8x8xbf16>
    %cst_21 = arith.constant dense<0.000000e+00> : vector<8x32xf32>
    %77 = tpu.matmul %76, %64, %cst_21 {dimension_numbers = #tpu.dot_dimension_numbers<[1], [0], [0], [1], [0, 0, 1, 1], [], []>} : vector<8x8xbf16>, vector<8x32xbf16>, vector<8x32xf32> -> vector<8x32xf32>
    %78 = arith.truncf %77 : vector<8x32xf32> to vector<8x32xbf16>
    %79 = vector.extract_strided_slice %23 {offsets = [0, 96], sizes = [8, 32], strides = [1, 1]} : vector<16x128xbf16> to vector<8x32xbf16>
    %80 = vector.extract_strided_slice %25 {offsets = [0, 96], sizes = [8, 32], strides = [1, 1]} : vector<16x128xbf16> to vector<8x32xbf16>
    %81 = vector.extract_strided_slice %27 {offsets = [0, 96], sizes = [8, 32], strides = [1, 1]} : vector<16x128xbf16> to vector<8x32xbf16>
    %cst_22 = arith.constant dense<0.000000e+00> : vector<8x8xf32>
    %82 = tpu.matmul %79, %80, %cst_22 {dimension_numbers = #tpu.dot_dimension_numbers<[1], [1], [0], [0], [0, 0, 1, 0], [], []>} : vector<8x32xbf16>, vector<8x32xbf16>, vector<8x8xf32> -> vector<8x8xf32>
    %cst_23 = arith.constant dense<0xFF800000> : vector<8xf32>
    %83 = vector.multi_reduction <maximumf>, %82, %cst_23 [1] : vector<8x8xf32> to vector<8xf32>
    %84 = vector.shape_cast %83 : vector<8xf32> to vector<8x1xf32>
    %85 = vector.broadcast %84 : vector<8x1xf32> to vector<8x8xf32>
    %86 = arith.subf %82, %85 : vector<8x8xf32>
    %87 = math.exp %86 : vector<8x8xf32>
    %cst_24 = arith.constant dense<0.000000e+00> : vector<8xf32>
    %88 = vector.multi_reduction <add>, %87, %cst_24 [1] : vector<8x8xf32> to vector<8xf32>
    %89 = vector.shape_cast %88 : vector<8xf32> to vector<8x1xf32>
    %90 = tpu.reciprocal %89 {approx = true} : vector<8x1xf32> -> vector<8x1xf32>
    %91 = vector.broadcast %90 : vector<8x1xf32> to vector<8x8xf32>
    %92 = arith.mulf %87, %91 : vector<8x8xf32>
    %93 = arith.truncf %92 : vector<8x8xf32> to vector<8x8xbf16>
    %cst_25 = arith.constant dense<0.000000e+00> : vector<8x32xf32>
    %94 = tpu.matmul %93, %81, %cst_25 {dimension_numbers = #tpu.dot_dimension_numbers<[1], [0], [0], [1], [0, 0, 1, 1], [], []>} : vector<8x8xbf16>, vector<8x32xbf16>, vector<8x32xf32> -> vector<8x32xf32>
    %95 = arith.truncf %94 : vector<8x32xf32> to vector<8x32xbf16>
    %96 = tpu.concatenate %44, %61, %78, %95 in 1 : vector<8x32xbf16>, vector<8x32xbf16>, vector<8x32xbf16>, vector<8x32xbf16> -> vector<8x128xbf16>
    %97 = vector.extract_strided_slice %23 {offsets = [8, 0], sizes = [8, 32], strides = [1, 1]} : vector<16x128xbf16> to vector<8x32xbf16>
    %98 = vector.extract_strided_slice %25 {offsets = [8, 0], sizes = [8, 32], strides = [1, 1]} : vector<16x128xbf16> to vector<8x32xbf16>
    %99 = vector.extract_strided_slice %27 {offsets = [8, 0], sizes = [8, 32], strides = [1, 1]} : vector<16x128xbf16> to vector<8x32xbf16>
    %cst_26 = arith.constant dense<0.000000e+00> : vector<8x8xf32>
    %100 = tpu.matmul %97, %98, %cst_26 {dimension_numbers = #tpu.dot_dimension_numbers<[1], [1], [0], [0], [0, 0, 1, 0], [], []>} : vector<8x32xbf16>, vector<8x32xbf16>, vector<8x8xf32> -> vector<8x8xf32>
    %cst_27 = arith.constant dense<0xFF800000> : vector<8xf32>
    %101 = vector.multi_reduction <maximumf>, %100, %cst_27 [1] : vector<8x8xf32> to vector<8xf32>
    %102 = vector.shape_cast %101 : vector<8xf32> to vector<8x1xf32>
    %103 = vector.broadcast %102 : vector<8x1xf32> to vector<8x8xf32>
    %104 = arith.subf %100, %103 : vector<8x8xf32>
    %105 = math.exp %104 : vector<8x8xf32>
    %cst_28 = arith.constant dense<0.000000e+00> : vector<8xf32>
    %106 = vector.multi_reduction <add>, %105, %cst_28 [1] : vector<8x8xf32> to vector<8xf32>
    %107 = vector.shape_cast %106 : vector<8xf32> to vector<8x1xf32>
    %108 = tpu.reciprocal %107 {approx = true} : vector<8x1xf32> -> vector<8x1xf32>
    %109 = vector.broadcast %108 : vector<8x1xf32> to vector<8x8xf32>
    %110 = arith.mulf %105, %109 : vector<8x8xf32>
    %111 = arith.truncf %110 : vector<8x8xf32> to vector<8x8xbf16>
    %cst_29 = arith.constant dense<0.000000e+00> : vector<8x32xf32>
    %112 = tpu.matmul %111, %99, %cst_29 {dimension_numbers = #tpu.dot_dimension_numbers<[1], [0], [0], [1], [0, 0, 1, 1], [], []>} : vector<8x8xbf16>, vector<8x32xbf16>, vector<8x32xf32> -> vector<8x32xf32>
    %113 = arith.truncf %112 : vector<8x32xf32> to vector<8x32xbf16>
    %114 = vector.extract_strided_slice %23 {offsets = [8, 32], sizes = [8, 32], strides = [1, 1]} : vector<16x128xbf16> to vector<8x32xbf16>
    %115 = vector.extract_strided_slice %25 {offsets = [8, 32], sizes = [8, 32], strides = [1, 1]} : vector<16x128xbf16> to vector<8x32xbf16>
    %116 = vector.extract_strided_slice %27 {offsets = [8, 32], sizes = [8, 32], strides = [1, 1]} : vector<16x128xbf16> to vector<8x32xbf16>
    %cst_30 = arith.constant dense<0.000000e+00> : vector<8x8xf32>
    %117 = tpu.matmul %114, %115, %cst_30 {dimension_numbers = #tpu.dot_dimension_numbers<[1], [1], [0], [0], [0, 0, 1, 0], [], []>} : vector<8x32xbf16>, vector<8x32xbf16>, vector<8x8xf32> -> vector<8x8xf32>
    %cst_31 = arith.constant dense<0xFF800000> : vector<8xf32>
    %118 = vector.multi_reduction <maximumf>, %117, %cst_31 [1] : vector<8x8xf32> to vector<8xf32>
    %119 = vector.shape_cast %118 : vector<8xf32> to vector<8x1xf32>
    %120 = vector.broadcast %119 : vector<8x1xf32> to vector<8x8xf32>
    %121 = arith.subf %117, %120 : vector<8x8xf32>
    %122 = math.exp %121 : vector<8x8xf32>
    %cst_32 = arith.constant dense<0.000000e+00> : vector<8xf32>
    %123 = vector.multi_reduction <add>, %122, %cst_32 [1] : vector<8x8xf32> to vector<8xf32>
    %124 = vector.shape_cast %123 : vector<8xf32> to vector<8x1xf32>
    %125 = tpu.reciprocal %124 {approx = true} : vector<8x1xf32> -> vector<8x1xf32>
    %126 = vector.broadcast %125 : vector<8x1xf32> to vector<8x8xf32>
    %127 = arith.mulf %122, %126 : vector<8x8xf32>
    %128 = arith.truncf %127 : vector<8x8xf32> to vector<8x8xbf16>
    %cst_33 = arith.constant dense<0.000000e+00> : vector<8x32xf32>
    %129 = tpu.matmul %128, %116, %cst_33 {dimension_numbers = #tpu.dot_dimension_numbers<[1], [0], [0], [1], [0, 0, 1, 1], [], []>} : vector<8x8xbf16>, vector<8x32xbf16>, vector<8x32xf32> -> vector<8x32xf32>
    %130 = arith.truncf %129 : vector<8x32xf32> to vector<8x32xbf16>
    %131 = vector.extract_strided_slice %23 {offsets = [8, 64], sizes = [8, 32], strides = [1, 1]} : vector<16x128xbf16> to vector<8x32xbf16>
    %132 = vector.extract_strided_slice %25 {offsets = [8, 64], sizes = [8, 32], strides = [1, 1]} : vector<16x128xbf16> to vector<8x32xbf16>
    %133 = vector.extract_strided_slice %27 {offsets = [8, 64], sizes = [8, 32], strides = [1, 1]} : vector<16x128xbf16> to vector<8x32xbf16>
    %cst_34 = arith.constant dense<0.000000e+00> : vector<8x8xf32>
    %134 = tpu.matmul %131, %132, %cst_34 {dimension_numbers = #tpu.dot_dimension_numbers<[1], [1], [0], [0], [0, 0, 1, 0], [], []>} : vector<8x32xbf16>, vector<8x32xbf16>, vector<8x8xf32> -> vector<8x8xf32>
    %cst_35 = arith.constant dense<0xFF800000> : vector<8xf32>
    %135 = vector.multi_reduction <maximumf>, %134, %cst_35 [1] : vector<8x8xf32> to vector<8xf32>
    %136 = vector.shape_cast %135 : vector<8xf32> to vector<8x1xf32>
    %137 = vector.broadcast %136 : vector<8x1xf32> to vector<8x8xf32>
    %138 = arith.subf %134, %137 : vector<8x8xf32>
    %139 = math.exp %138 : vector<8x8xf32>
    %cst_36 = arith.constant dense<0.000000e+00> : vector<8xf32>
    %140 = vector.multi_reduction <add>, %139, %cst_36 [1] : vector<8x8xf32> to vector<8xf32>
    %141 = vector.shape_cast %140 : vector<8xf32> to vector<8x1xf32>
    %142 = tpu.reciprocal %141 {approx = true} : vector<8x1xf32> -> vector<8x1xf32>
    %143 = vector.broadcast %142 : vector<8x1xf32> to vector<8x8xf32>
    %144 = arith.mulf %139, %143 : vector<8x8xf32>
    %145 = arith.truncf %144 : vector<8x8xf32> to vector<8x8xbf16>
    %cst_37 = arith.constant dense<0.000000e+00> : vector<8x32xf32>
    %146 = tpu.matmul %145, %133, %cst_37 {dimension_numbers = #tpu.dot_dimension_numbers<[1], [0], [0], [1], [0, 0, 1, 1], [], []>} : vector<8x8xbf16>, vector<8x32xbf16>, vector<8x32xf32> -> vector<8x32xf32>
    %147 = arith.truncf %146 : vector<8x32xf32> to vector<8x32xbf16>
    %148 = vector.extract_strided_slice %23 {offsets = [8, 96], sizes = [8, 32], strides = [1, 1]} : vector<16x128xbf16> to vector<8x32xbf16>
    %149 = vector.extract_strided_slice %25 {offsets = [8, 96], sizes = [8, 32], strides = [1, 1]} : vector<16x128xbf16> to vector<8x32xbf16>
    %150 = vector.extract_strided_slice %27 {offsets = [8, 96], sizes = [8, 32], strides = [1, 1]} : vector<16x128xbf16> to vector<8x32xbf16>
    %cst_38 = arith.constant dense<0.000000e+00> : vector<8x8xf32>
    %151 = tpu.matmul %148, %149, %cst_38 {dimension_numbers = #tpu.dot_dimension_numbers<[1], [1], [0], [0], [0, 0, 1, 0], [], []>} : vector<8x32xbf16>, vector<8x32xbf16>, vector<8x8xf32> -> vector<8x8xf32>
    %cst_39 = arith.constant dense<0xFF800000> : vector<8xf32>
    %152 = vector.multi_reduction <maximumf>, %151, %cst_39 [1] : vector<8x8xf32> to vector<8xf32>
    %153 = vector.shape_cast %152 : vector<8xf32> to vector<8x1xf32>
    %154 = vector.broadcast %153 : vector<8x1xf32> to vector<8x8xf32>
    %155 = arith.subf %151, %154 : vector<8x8xf32>
    %156 = math.exp %155 : vector<8x8xf32>
    %cst_40 = arith.constant dense<0.000000e+00> : vector<8xf32>
    %157 = vector.multi_reduction <add>, %156, %cst_40 [1] : vector<8x8xf32> to vector<8xf32>
    %158 = vector.shape_cast %157 : vector<8xf32> to vector<8x1xf32>
    %159 = tpu.reciprocal %158 {approx = true} : vector<8x1xf32> -> vector<8x1xf32>
    %160 = vector.broadcast %159 : vector<8x1xf32> to vector<8x8xf32>
    %161 = arith.mulf %156, %160 : vector<8x8xf32>
    %162 = arith.truncf %161 : vector<8x8xf32> to vector<8x8xbf16>
    %cst_41 = arith.constant dense<0.000000e+00> : vector<8x32xf32>
    %163 = tpu.matmul %162, %150, %cst_41 {dimension_numbers = #tpu.dot_dimension_numbers<[1], [0], [0], [1], [0, 0, 1, 1], [], []>} : vector<8x8xbf16>, vector<8x32xbf16>, vector<8x32xf32> -> vector<8x32xf32>
    %164 = arith.truncf %163 : vector<8x32xf32> to vector<8x32xbf16>
    %165 = tpu.concatenate %113, %130, %147, %164 in 1 : vector<8x32xbf16>, vector<8x32xbf16>, vector<8x32xbf16>, vector<8x32xbf16> -> vector<8x128xbf16>
    %166 = tpu.concatenate %96, %165 in 0 : vector<8x128xbf16>, vector<8x128xbf16> -> vector<16x128xbf16>
    %cst_42 = arith.constant dense<0.000000e+00> : vector<16x128xf32>
    %167 = tpu.matmul %166, %6, %cst_42 {dimension_numbers = #tpu.dot_dimension_numbers<[1], [0], [0], [1], [0, 0, 1, 1], [], []>} : vector<16x128xbf16>, vector<128x128xbf16>, vector<16x128xf32> -> vector<16x128xf32>
    %168 = vector.broadcast %11 : vector<1x128xf32> to vector<16x128xf32>
    %169 = arith.addf %167, %168 : vector<16x128xf32>
    %170 = arith.addf %1, %169 : vector<16x128xf32>
    %cst_43 = arith.constant dense<0.000000e+00> : vector<16xf32>
    %171 = vector.multi_reduction <add>, %170, %cst_43 [1] : vector<16x128xf32> to vector<16xf32>
    %172 = vector.shape_cast %171 : vector<16xf32> to vector<16x1xf32>
    %cst_44 = arith.constant 1.280000e+02 : f32
    %173 = vector.broadcast %cst_44 : f32 to vector<16x1xf32>
    %174 = arith.divf %172, %173 : vector<16x1xf32>
    %175 = vector.broadcast %174 : vector<16x1xf32> to vector<16x128xf32>
    %176 = arith.subf %170, %175 : vector<16x128xf32>
    %177 = arith.mulf %176, %176 : vector<16x128xf32>
    %cst_45 = arith.constant dense<0.000000e+00> : vector<16xf32>
    %178 = vector.multi_reduction <add>, %177, %cst_45 [1] : vector<16x128xf32> to vector<16xf32>
    %179 = vector.shape_cast %178 : vector<16xf32> to vector<16x1xf32>
    %cst_46 = arith.constant 1.280000e+02 : f32
    %180 = vector.broadcast %cst_46 : f32 to vector<16x1xf32>
    %181 = arith.divf %179, %180 : vector<16x1xf32>
    %182 = vector.broadcast %174 : vector<16x1xf32> to vector<16x128xf32>
    %183 = arith.subf %170, %182 : vector<16x128xf32>
    %cst_47 = arith.constant 9.99999974E-6 : f32
    %184 = vector.broadcast %cst_47 : f32 to vector<16x1xf32>
    %185 = arith.addf %181, %184 : vector<16x1xf32>
    %186 = math.rsqrt %185 : vector<16x1xf32>
    %187 = vector.broadcast %186 : vector<16x1xf32> to vector<16x128xf32>
    %188 = arith.mulf %183, %187 : vector<16x128xf32>
    %189 = vector.broadcast %14 : vector<1x128xf32> to vector<16x128xf32>
    %190 = arith.mulf %188, %189 : vector<16x128xf32>
    %191 = vector.broadcast %15 : vector<1x128xf32> to vector<16x128xf32>
    %192 = arith.addf %190, %191 : vector<16x128xf32>
    %193 = arith.truncf %192 : vector<16x128xf32> to vector<16x128xbf16>
    %cst_48 = arith.constant dense<0.000000e+00> : vector<16x256xf32>
    %194 = tpu.matmul %193, %7, %cst_48 {dimension_numbers = #tpu.dot_dimension_numbers<[1], [0], [0], [1], [0, 0, 1, 1], [], []>} : vector<16x128xbf16>, vector<128x256xbf16>, vector<16x256xf32> -> vector<16x256xf32>
    %195 = vector.broadcast %12 : vector<1x256xf32> to vector<16x256xf32>
    %196 = arith.addf %194, %195 : vector<16x256xf32>
    %cst_49 = arith.constant 0.000000e+00 : f32
    %197 = vector.broadcast %cst_49 : f32 to vector<16x256xf32>
    %198 = arith.maximumf %196, %197 : vector<16x256xf32>
    %199 = arith.truncf %198 : vector<16x256xf32> to vector<16x256xbf16>
    %cst_50 = arith.constant dense<0.000000e+00> : vector<16x128xf32>
    %200 = tpu.matmul %199, %9, %cst_50 {dimension_numbers = #tpu.dot_dimension_numbers<[1], [0], [0], [1], [0, 0, 1, 1], [], []>} : vector<16x256xbf16>, vector<256x128xbf16>, vector<16x128xf32> -> vector<16x128xf32>
    %201 = vector.broadcast %13 : vector<1x128xf32> to vector<16x128xf32>
    %202 = arith.addf %200, %201 : vector<16x128xf32>
    %203 = arith.addf %192, %202 : vector<16x128xf32>
    %cst_51 = arith.constant dense<0.000000e+00> : vector<16xf32>
    %204 = vector.multi_reduction <add>, %203, %cst_51 [1] : vector<16x128xf32> to vector<16xf32>
    %205 = vector.shape_cast %204 : vector<16xf32> to vector<16x1xf32>
    %cst_52 = arith.constant 1.280000e+02 : f32
    %206 = vector.broadcast %cst_52 : f32 to vector<16x1xf32>
    %207 = arith.divf %205, %206 : vector<16x1xf32>
    %208 = vector.broadcast %207 : vector<16x1xf32> to vector<16x128xf32>
    %209 = arith.subf %203, %208 : vector<16x128xf32>
    %210 = arith.mulf %209, %209 : vector<16x128xf32>
    %cst_53 = arith.constant dense<0.000000e+00> : vector<16xf32>
    %211 = vector.multi_reduction <add>, %210, %cst_53 [1] : vector<16x128xf32> to vector<16xf32>
    %212 = vector.shape_cast %211 : vector<16xf32> to vector<16x1xf32>
    %cst_54 = arith.constant 1.280000e+02 : f32
    %213 = vector.broadcast %cst_54 : f32 to vector<16x1xf32>
    %214 = arith.divf %212, %213 : vector<16x1xf32>
    %215 = vector.broadcast %207 : vector<16x1xf32> to vector<16x128xf32>
    %216 = arith.subf %203, %215 : vector<16x128xf32>
    %cst_55 = arith.constant 9.99999974E-6 : f32
    %217 = vector.broadcast %cst_55 : f32 to vector<16x1xf32>
    %218 = arith.addf %214, %217 : vector<16x1xf32>
    %219 = math.rsqrt %218 : vector<16x1xf32>
    %220 = vector.broadcast %219 : vector<16x1xf32> to vector<16x128xf32>
    %221 = arith.mulf %216, %220 : vector<16x128xf32>
    %222 = vector.broadcast %16 : vector<1x128xf32> to vector<16x128xf32>
    %223 = arith.mulf %221, %222 : vector<16x128xf32>
    %224 = vector.broadcast %17 : vector<1x128xf32> to vector<16x128xf32>
    %225 = arith.addf %223, %224 : vector<16x128xf32>
    %c1 = arith.constant 1 : index
    %c0_56 = arith.constant 0 : index
    %c0_57 = arith.constant 0 : index
    %226 = vector.load %arg2[%c1, %c0_56, %c0_57] : memref<2x128x768xbf16, #tpu.memory_space<vmem>>, vector<1x128x768xbf16>
    %227 = vector.shape_cast %226 : vector<1x128x768xbf16> to vector<128x768xbf16>
    %228 = vector.extract_strided_slice %227 {offsets = [0, 0], sizes = [128, 384], strides = [1, 1]} : vector<128x768xbf16> to vector<128x384xbf16>
    %229 = vector.extract_strided_slice %227 {offsets = [0, 384], sizes = [128, 128], strides = [1, 1]} : vector<128x768xbf16> to vector<128x128xbf16>
    %230 = vector.extract_strided_slice %227 {offsets = [0, 512], sizes = [128, 256], strides = [1, 1]} : vector<128x768xbf16> to vector<128x256xbf16>
    %c1_58 = arith.constant 1 : index
    %c0_59 = arith.constant 0 : index
    %c0_60 = arith.constant 0 : index
    %231 = vector.load %arg3[%c1_58, %c0_59, %c0_60] : memref<2x256x128xbf16, #tpu.memory_space<vmem>>, vector<1x256x128xbf16>
    %232 = vector.shape_cast %231 : vector<1x256x128xbf16> to vector<256x128xbf16>
    %233 = vector.extract_strided_slice %2 {offsets = [8, 0], sizes = [1, 384], strides = [1, 1]} : vector<17x384xf32> to vector<1x384xf32>
    %234 = vector.extract_strided_slice %2 {offsets = [9, 0], sizes = [1, 128], strides = [1, 1]} : vector<17x384xf32> to vector<1x128xf32>
    %235 = vector.extract_strided_slice %2 {offsets = [10, 0], sizes = [1, 256], strides = [1, 1]} : vector<17x384xf32> to vector<1x256xf32>
    %236 = vector.extract_strided_slice %2 {offsets = [11, 0], sizes = [1, 128], strides = [1, 1]} : vector<17x384xf32> to vector<1x128xf32>
    %237 = vector.extract_strided_slice %2 {offsets = [12, 0], sizes = [1, 128], strides = [1, 1]} : vector<17x384xf32> to vector<1x128xf32>
    %238 = vector.extract_strided_slice %2 {offsets = [13, 0], sizes = [1, 128], strides = [1, 1]} : vector<17x384xf32> to vector<1x128xf32>
    %239 = vector.extract_strided_slice %2 {offsets = [14, 0], sizes = [1, 128], strides = [1, 1]} : vector<17x384xf32> to vector<1x128xf32>
    %240 = vector.extract_strided_slice %2 {offsets = [15, 0], sizes = [1, 128], strides = [1, 1]} : vector<17x384xf32> to vector<1x128xf32>
    %241 = arith.truncf %225 : vector<16x128xf32> to vector<16x128xbf16>
    %cst_61 = arith.constant dense<0.000000e+00> : vector<16x384xf32>
    %242 = tpu.matmul %241, %228, %cst_61 {dimension_numbers = #tpu.dot_dimension_numbers<[1], [0], [0], [1], [0, 0, 1, 1], [], []>} : vector<16x128xbf16>, vector<128x384xbf16>, vector<16x384xf32> -> vector<16x384xf32>
    %243 = vector.broadcast %233 : vector<1x384xf32> to vector<16x384xf32>
    %244 = arith.addf %242, %243 : vector<16x384xf32>
    %245 = vector.extract_strided_slice %244 {offsets = [0, 0], sizes = [16, 128], strides = [1, 1]} : vector<16x384xf32> to vector<16x128xf32>
    %246 = arith.truncf %245 : vector<16x128xf32> to vector<16x128xbf16>
    %247 = vector.extract_strided_slice %244 {offsets = [0, 128], sizes = [16, 128], strides = [1, 1]} : vector<16x384xf32> to vector<16x128xf32>
    %248 = arith.truncf %247 : vector<16x128xf32> to vector<16x128xbf16>
    %249 = vector.extract_strided_slice %244 {offsets = [0, 256], sizes = [16, 128], strides = [1, 1]} : vector<16x384xf32> to vector<16x128xf32>
    %250 = arith.truncf %249 : vector<16x128xf32> to vector<16x128xbf16>
    %251 = vector.extract_strided_slice %246 {offsets = [0, 0], sizes = [8, 32], strides = [1, 1]} : vector<16x128xbf16> to vector<8x32xbf16>
    %252 = vector.extract_strided_slice %248 {offsets = [0, 0], sizes = [8, 32], strides = [1, 1]} : vector<16x128xbf16> to vector<8x32xbf16>
    %253 = vector.extract_strided_slice %250 {offsets = [0, 0], sizes = [8, 32], strides = [1, 1]} : vector<16x128xbf16> to vector<8x32xbf16>
    %cst_62 = arith.constant dense<0.000000e+00> : vector<8x8xf32>
    %254 = tpu.matmul %251, %252, %cst_62 {dimension_numbers = #tpu.dot_dimension_numbers<[1], [1], [0], [0], [0, 0, 1, 0], [], []>} : vector<8x32xbf16>, vector<8x32xbf16>, vector<8x8xf32> -> vector<8x8xf32>
    %cst_63 = arith.constant dense<0xFF800000> : vector<8xf32>
    %255 = vector.multi_reduction <maximumf>, %254, %cst_63 [1] : vector<8x8xf32> to vector<8xf32>
    %256 = vector.shape_cast %255 : vector<8xf32> to vector<8x1xf32>
    %257 = vector.broadcast %256 : vector<8x1xf32> to vector<8x8xf32>
    %258 = arith.subf %254, %257 : vector<8x8xf32>
    %259 = math.exp %258 : vector<8x8xf32>
    %cst_64 = arith.constant dense<0.000000e+00> : vector<8xf32>
    %260 = vector.multi_reduction <add>, %259, %cst_64 [1] : vector<8x8xf32> to vector<8xf32>
    %261 = vector.shape_cast %260 : vector<8xf32> to vector<8x1xf32>
    %262 = tpu.reciprocal %261 {approx = true} : vector<8x1xf32> -> vector<8x1xf32>
    %263 = vector.broadcast %262 : vector<8x1xf32> to vector<8x8xf32>
    %264 = arith.mulf %259, %263 : vector<8x8xf32>
    %265 = arith.truncf %264 : vector<8x8xf32> to vector<8x8xbf16>
    %cst_65 = arith.constant dense<0.000000e+00> : vector<8x32xf32>
    %266 = tpu.matmul %265, %253, %cst_65 {dimension_numbers = #tpu.dot_dimension_numbers<[1], [0], [0], [1], [0, 0, 1, 1], [], []>} : vector<8x8xbf16>, vector<8x32xbf16>, vector<8x32xf32> -> vector<8x32xf32>
    %267 = arith.truncf %266 : vector<8x32xf32> to vector<8x32xbf16>
    %268 = vector.extract_strided_slice %246 {offsets = [0, 32], sizes = [8, 32], strides = [1, 1]} : vector<16x128xbf16> to vector<8x32xbf16>
    %269 = vector.extract_strided_slice %248 {offsets = [0, 32], sizes = [8, 32], strides = [1, 1]} : vector<16x128xbf16> to vector<8x32xbf16>
    %270 = vector.extract_strided_slice %250 {offsets = [0, 32], sizes = [8, 32], strides = [1, 1]} : vector<16x128xbf16> to vector<8x32xbf16>
    %cst_66 = arith.constant dense<0.000000e+00> : vector<8x8xf32>
    %271 = tpu.matmul %268, %269, %cst_66 {dimension_numbers = #tpu.dot_dimension_numbers<[1], [1], [0], [0], [0, 0, 1, 0], [], []>} : vector<8x32xbf16>, vector<8x32xbf16>, vector<8x8xf32> -> vector<8x8xf32>
    %cst_67 = arith.constant dense<0xFF800000> : vector<8xf32>
    %272 = vector.multi_reduction <maximumf>, %271, %cst_67 [1] : vector<8x8xf32> to vector<8xf32>
    %273 = vector.shape_cast %272 : vector<8xf32> to vector<8x1xf32>
    %274 = vector.broadcast %273 : vector<8x1xf32> to vector<8x8xf32>
    %275 = arith.subf %271, %274 : vector<8x8xf32>
    %276 = math.exp %275 : vector<8x8xf32>
    %cst_68 = arith.constant dense<0.000000e+00> : vector<8xf32>
    %277 = vector.multi_reduction <add>, %276, %cst_68 [1] : vector<8x8xf32> to vector<8xf32>
    %278 = vector.shape_cast %277 : vector<8xf32> to vector<8x1xf32>
    %279 = tpu.reciprocal %278 {approx = true} : vector<8x1xf32> -> vector<8x1xf32>
    %280 = vector.broadcast %279 : vector<8x1xf32> to vector<8x8xf32>
    %281 = arith.mulf %276, %280 : vector<8x8xf32>
    %282 = arith.truncf %281 : vector<8x8xf32> to vector<8x8xbf16>
    %cst_69 = arith.constant dense<0.000000e+00> : vector<8x32xf32>
    %283 = tpu.matmul %282, %270, %cst_69 {dimension_numbers = #tpu.dot_dimension_numbers<[1], [0], [0], [1], [0, 0, 1, 1], [], []>} : vector<8x8xbf16>, vector<8x32xbf16>, vector<8x32xf32> -> vector<8x32xf32>
    %284 = arith.truncf %283 : vector<8x32xf32> to vector<8x32xbf16>
    %285 = vector.extract_strided_slice %246 {offsets = [0, 64], sizes = [8, 32], strides = [1, 1]} : vector<16x128xbf16> to vector<8x32xbf16>
    %286 = vector.extract_strided_slice %248 {offsets = [0, 64], sizes = [8, 32], strides = [1, 1]} : vector<16x128xbf16> to vector<8x32xbf16>
    %287 = vector.extract_strided_slice %250 {offsets = [0, 64], sizes = [8, 32], strides = [1, 1]} : vector<16x128xbf16> to vector<8x32xbf16>
    %cst_70 = arith.constant dense<0.000000e+00> : vector<8x8xf32>
    %288 = tpu.matmul %285, %286, %cst_70 {dimension_numbers = #tpu.dot_dimension_numbers<[1], [1], [0], [0], [0, 0, 1, 0], [], []>} : vector<8x32xbf16>, vector<8x32xbf16>, vector<8x8xf32> -> vector<8x8xf32>
    %cst_71 = arith.constant dense<0xFF800000> : vector<8xf32>
    %289 = vector.multi_reduction <maximumf>, %288, %cst_71 [1] : vector<8x8xf32> to vector<8xf32>
    %290 = vector.shape_cast %289 : vector<8xf32> to vector<8x1xf32>
    %291 = vector.broadcast %290 : vector<8x1xf32> to vector<8x8xf32>
    %292 = arith.subf %288, %291 : vector<8x8xf32>
    %293 = math.exp %292 : vector<8x8xf32>
    %cst_72 = arith.constant dense<0.000000e+00> : vector<8xf32>
    %294 = vector.multi_reduction <add>, %293, %cst_72 [1] : vector<8x8xf32> to vector<8xf32>
    %295 = vector.shape_cast %294 : vector<8xf32> to vector<8x1xf32>
    %296 = tpu.reciprocal %295 {approx = true} : vector<8x1xf32> -> vector<8x1xf32>
    %297 = vector.broadcast %296 : vector<8x1xf32> to vector<8x8xf32>
    %298 = arith.mulf %293, %297 : vector<8x8xf32>
    %299 = arith.truncf %298 : vector<8x8xf32> to vector<8x8xbf16>
    %cst_73 = arith.constant dense<0.000000e+00> : vector<8x32xf32>
    %300 = tpu.matmul %299, %287, %cst_73 {dimension_numbers = #tpu.dot_dimension_numbers<[1], [0], [0], [1], [0, 0, 1, 1], [], []>} : vector<8x8xbf16>, vector<8x32xbf16>, vector<8x32xf32> -> vector<8x32xf32>
    %301 = arith.truncf %300 : vector<8x32xf32> to vector<8x32xbf16>
    %302 = vector.extract_strided_slice %246 {offsets = [0, 96], sizes = [8, 32], strides = [1, 1]} : vector<16x128xbf16> to vector<8x32xbf16>
    %303 = vector.extract_strided_slice %248 {offsets = [0, 96], sizes = [8, 32], strides = [1, 1]} : vector<16x128xbf16> to vector<8x32xbf16>
    %304 = vector.extract_strided_slice %250 {offsets = [0, 96], sizes = [8, 32], strides = [1, 1]} : vector<16x128xbf16> to vector<8x32xbf16>
    %cst_74 = arith.constant dense<0.000000e+00> : vector<8x8xf32>
    %305 = tpu.matmul %302, %303, %cst_74 {dimension_numbers = #tpu.dot_dimension_numbers<[1], [1], [0], [0], [0, 0, 1, 0], [], []>} : vector<8x32xbf16>, vector<8x32xbf16>, vector<8x8xf32> -> vector<8x8xf32>
    %cst_75 = arith.constant dense<0xFF800000> : vector<8xf32>
    %306 = vector.multi_reduction <maximumf>, %305, %cst_75 [1] : vector<8x8xf32> to vector<8xf32>
    %307 = vector.shape_cast %306 : vector<8xf32> to vector<8x1xf32>
    %308 = vector.broadcast %307 : vector<8x1xf32> to vector<8x8xf32>
    %309 = arith.subf %305, %308 : vector<8x8xf32>
    %310 = math.exp %309 : vector<8x8xf32>
    %cst_76 = arith.constant dense<0.000000e+00> : vector<8xf32>
    %311 = vector.multi_reduction <add>, %310, %cst_76 [1] : vector<8x8xf32> to vector<8xf32>
    %312 = vector.shape_cast %311 : vector<8xf32> to vector<8x1xf32>
    %313 = tpu.reciprocal %312 {approx = true} : vector<8x1xf32> -> vector<8x1xf32>
    %314 = vector.broadcast %313 : vector<8x1xf32> to vector<8x8xf32>
    %315 = arith.mulf %310, %314 : vector<8x8xf32>
    %316 = arith.truncf %315 : vector<8x8xf32> to vector<8x8xbf16>
    %cst_77 = arith.constant dense<0.000000e+00> : vector<8x32xf32>
    %317 = tpu.matmul %316, %304, %cst_77 {dimension_numbers = #tpu.dot_dimension_numbers<[1], [0], [0], [1], [0, 0, 1, 1], [], []>} : vector<8x8xbf16>, vector<8x32xbf16>, vector<8x32xf32> -> vector<8x32xf32>
    %318 = arith.truncf %317 : vector<8x32xf32> to vector<8x32xbf16>
    %319 = tpu.concatenate %267, %284, %301, %318 in 1 : vector<8x32xbf16>, vector<8x32xbf16>, vector<8x32xbf16>, vector<8x32xbf16> -> vector<8x128xbf16>
    %320 = vector.extract_strided_slice %246 {offsets = [8, 0], sizes = [8, 32], strides = [1, 1]} : vector<16x128xbf16> to vector<8x32xbf16>
    %321 = vector.extract_strided_slice %248 {offsets = [8, 0], sizes = [8, 32], strides = [1, 1]} : vector<16x128xbf16> to vector<8x32xbf16>
    %322 = vector.extract_strided_slice %250 {offsets = [8, 0], sizes = [8, 32], strides = [1, 1]} : vector<16x128xbf16> to vector<8x32xbf16>
    %cst_78 = arith.constant dense<0.000000e+00> : vector<8x8xf32>
    %323 = tpu.matmul %320, %321, %cst_78 {dimension_numbers = #tpu.dot_dimension_numbers<[1], [1], [0], [0], [0, 0, 1, 0], [], []>} : vector<8x32xbf16>, vector<8x32xbf16>, vector<8x8xf32> -> vector<8x8xf32>
    %cst_79 = arith.constant dense<0xFF800000> : vector<8xf32>
    %324 = vector.multi_reduction <maximumf>, %323, %cst_79 [1] : vector<8x8xf32> to vector<8xf32>
    %325 = vector.shape_cast %324 : vector<8xf32> to vector<8x1xf32>
    %326 = vector.broadcast %325 : vector<8x1xf32> to vector<8x8xf32>
    %327 = arith.subf %323, %326 : vector<8x8xf32>
    %328 = math.exp %327 : vector<8x8xf32>
    %cst_80 = arith.constant dense<0.000000e+00> : vector<8xf32>
    %329 = vector.multi_reduction <add>, %328, %cst_80 [1] : vector<8x8xf32> to vector<8xf32>
    %330 = vector.shape_cast %329 : vector<8xf32> to vector<8x1xf32>
    %331 = tpu.reciprocal %330 {approx = true} : vector<8x1xf32> -> vector<8x1xf32>
    %332 = vector.broadcast %331 : vector<8x1xf32> to vector<8x8xf32>
    %333 = arith.mulf %328, %332 : vector<8x8xf32>
    %334 = arith.truncf %333 : vector<8x8xf32> to vector<8x8xbf16>
    %cst_81 = arith.constant dense<0.000000e+00> : vector<8x32xf32>
    %335 = tpu.matmul %334, %322, %cst_81 {dimension_numbers = #tpu.dot_dimension_numbers<[1], [0], [0], [1], [0, 0, 1, 1], [], []>} : vector<8x8xbf16>, vector<8x32xbf16>, vector<8x32xf32> -> vector<8x32xf32>
    %336 = arith.truncf %335 : vector<8x32xf32> to vector<8x32xbf16>
    %337 = vector.extract_strided_slice %246 {offsets = [8, 32], sizes = [8, 32], strides = [1, 1]} : vector<16x128xbf16> to vector<8x32xbf16>
    %338 = vector.extract_strided_slice %248 {offsets = [8, 32], sizes = [8, 32], strides = [1, 1]} : vector<16x128xbf16> to vector<8x32xbf16>
    %339 = vector.extract_strided_slice %250 {offsets = [8, 32], sizes = [8, 32], strides = [1, 1]} : vector<16x128xbf16> to vector<8x32xbf16>
    %cst_82 = arith.constant dense<0.000000e+00> : vector<8x8xf32>
    %340 = tpu.matmul %337, %338, %cst_82 {dimension_numbers = #tpu.dot_dimension_numbers<[1], [1], [0], [0], [0, 0, 1, 0], [], []>} : vector<8x32xbf16>, vector<8x32xbf16>, vector<8x8xf32> -> vector<8x8xf32>
    %cst_83 = arith.constant dense<0xFF800000> : vector<8xf32>
    %341 = vector.multi_reduction <maximumf>, %340, %cst_83 [1] : vector<8x8xf32> to vector<8xf32>
    %342 = vector.shape_cast %341 : vector<8xf32> to vector<8x1xf32>
    %343 = vector.broadcast %342 : vector<8x1xf32> to vector<8x8xf32>
    %344 = arith.subf %340, %343 : vector<8x8xf32>
    %345 = math.exp %344 : vector<8x8xf32>
    %cst_84 = arith.constant dense<0.000000e+00> : vector<8xf32>
    %346 = vector.multi_reduction <add>, %345, %cst_84 [1] : vector<8x8xf32> to vector<8xf32>
    %347 = vector.shape_cast %346 : vector<8xf32> to vector<8x1xf32>
    %348 = tpu.reciprocal %347 {approx = true} : vector<8x1xf32> -> vector<8x1xf32>
    %349 = vector.broadcast %348 : vector<8x1xf32> to vector<8x8xf32>
    %350 = arith.mulf %345, %349 : vector<8x8xf32>
    %351 = arith.truncf %350 : vector<8x8xf32> to vector<8x8xbf16>
    %cst_85 = arith.constant dense<0.000000e+00> : vector<8x32xf32>
    %352 = tpu.matmul %351, %339, %cst_85 {dimension_numbers = #tpu.dot_dimension_numbers<[1], [0], [0], [1], [0, 0, 1, 1], [], []>} : vector<8x8xbf16>, vector<8x32xbf16>, vector<8x32xf32> -> vector<8x32xf32>
    %353 = arith.truncf %352 : vector<8x32xf32> to vector<8x32xbf16>
    %354 = vector.extract_strided_slice %246 {offsets = [8, 64], sizes = [8, 32], strides = [1, 1]} : vector<16x128xbf16> to vector<8x32xbf16>
    %355 = vector.extract_strided_slice %248 {offsets = [8, 64], sizes = [8, 32], strides = [1, 1]} : vector<16x128xbf16> to vector<8x32xbf16>
    %356 = vector.extract_strided_slice %250 {offsets = [8, 64], sizes = [8, 32], strides = [1, 1]} : vector<16x128xbf16> to vector<8x32xbf16>
    %cst_86 = arith.constant dense<0.000000e+00> : vector<8x8xf32>
    %357 = tpu.matmul %354, %355, %cst_86 {dimension_numbers = #tpu.dot_dimension_numbers<[1], [1], [0], [0], [0, 0, 1, 0], [], []>} : vector<8x32xbf16>, vector<8x32xbf16>, vector<8x8xf32> -> vector<8x8xf32>
    %cst_87 = arith.constant dense<0xFF800000> : vector<8xf32>
    %358 = vector.multi_reduction <maximumf>, %357, %cst_87 [1] : vector<8x8xf32> to vector<8xf32>
    %359 = vector.shape_cast %358 : vector<8xf32> to vector<8x1xf32>
    %360 = vector.broadcast %359 : vector<8x1xf32> to vector<8x8xf32>
    %361 = arith.subf %357, %360 : vector<8x8xf32>
    %362 = math.exp %361 : vector<8x8xf32>
    %cst_88 = arith.constant dense<0.000000e+00> : vector<8xf32>
    %363 = vector.multi_reduction <add>, %362, %cst_88 [1] : vector<8x8xf32> to vector<8xf32>
    %364 = vector.shape_cast %363 : vector<8xf32> to vector<8x1xf32>
    %365 = tpu.reciprocal %364 {approx = true} : vector<8x1xf32> -> vector<8x1xf32>
    %366 = vector.broadcast %365 : vector<8x1xf32> to vector<8x8xf32>
    %367 = arith.mulf %362, %366 : vector<8x8xf32>
    %368 = arith.truncf %367 : vector<8x8xf32> to vector<8x8xbf16>
    %cst_89 = arith.constant dense<0.000000e+00> : vector<8x32xf32>
    %369 = tpu.matmul %368, %356, %cst_89 {dimension_numbers = #tpu.dot_dimension_numbers<[1], [0], [0], [1], [0, 0, 1, 1], [], []>} : vector<8x8xbf16>, vector<8x32xbf16>, vector<8x32xf32> -> vector<8x32xf32>
    %370 = arith.truncf %369 : vector<8x32xf32> to vector<8x32xbf16>
    %371 = vector.extract_strided_slice %246 {offsets = [8, 96], sizes = [8, 32], strides = [1, 1]} : vector<16x128xbf16> to vector<8x32xbf16>
    %372 = vector.extract_strided_slice %248 {offsets = [8, 96], sizes = [8, 32], strides = [1, 1]} : vector<16x128xbf16> to vector<8x32xbf16>
    %373 = vector.extract_strided_slice %250 {offsets = [8, 96], sizes = [8, 32], strides = [1, 1]} : vector<16x128xbf16> to vector<8x32xbf16>
    %cst_90 = arith.constant dense<0.000000e+00> : vector<8x8xf32>
    %374 = tpu.matmul %371, %372, %cst_90 {dimension_numbers = #tpu.dot_dimension_numbers<[1], [1], [0], [0], [0, 0, 1, 0], [], []>} : vector<8x32xbf16>, vector<8x32xbf16>, vector<8x8xf32> -> vector<8x8xf32>
    %cst_91 = arith.constant dense<0xFF800000> : vector<8xf32>
    %375 = vector.multi_reduction <maximumf>, %374, %cst_91 [1] : vector<8x8xf32> to vector<8xf32>
    %376 = vector.shape_cast %375 : vector<8xf32> to vector<8x1xf32>
    %377 = vector.broadcast %376 : vector<8x1xf32> to vector<8x8xf32>
    %378 = arith.subf %374, %377 : vector<8x8xf32>
    %379 = math.exp %378 : vector<8x8xf32>
    %cst_92 = arith.constant dense<0.000000e+00> : vector<8xf32>
    %380 = vector.multi_reduction <add>, %379, %cst_92 [1] : vector<8x8xf32> to vector<8xf32>
    %381 = vector.shape_cast %380 : vector<8xf32> to vector<8x1xf32>
    %382 = tpu.reciprocal %381 {approx = true} : vector<8x1xf32> -> vector<8x1xf32>
    %383 = vector.broadcast %382 : vector<8x1xf32> to vector<8x8xf32>
    %384 = arith.mulf %379, %383 : vector<8x8xf32>
    %385 = arith.truncf %384 : vector<8x8xf32> to vector<8x8xbf16>
    %cst_93 = arith.constant dense<0.000000e+00> : vector<8x32xf32>
    %386 = tpu.matmul %385, %373, %cst_93 {dimension_numbers = #tpu.dot_dimension_numbers<[1], [0], [0], [1], [0, 0, 1, 1], [], []>} : vector<8x8xbf16>, vector<8x32xbf16>, vector<8x32xf32> -> vector<8x32xf32>
    %387 = arith.truncf %386 : vector<8x32xf32> to vector<8x32xbf16>
    %388 = tpu.concatenate %336, %353, %370, %387 in 1 : vector<8x32xbf16>, vector<8x32xbf16>, vector<8x32xbf16>, vector<8x32xbf16> -> vector<8x128xbf16>
    %389 = tpu.concatenate %319, %388 in 0 : vector<8x128xbf16>, vector<8x128xbf16> -> vector<16x128xbf16>
    %cst_94 = arith.constant dense<0.000000e+00> : vector<16x128xf32>
    %390 = tpu.matmul %389, %229, %cst_94 {dimension_numbers = #tpu.dot_dimension_numbers<[1], [0], [0], [1], [0, 0, 1, 1], [], []>} : vector<16x128xbf16>, vector<128x128xbf16>, vector<16x128xf32> -> vector<16x128xf32>
    %391 = vector.broadcast %234 : vector<1x128xf32> to vector<16x128xf32>
    %392 = arith.addf %390, %391 : vector<16x128xf32>
    %393 = arith.addf %225, %392 : vector<16x128xf32>
    %cst_95 = arith.constant dense<0.000000e+00> : vector<16xf32>
    %394 = vector.multi_reduction <add>, %393, %cst_95 [1] : vector<16x128xf32> to vector<16xf32>
    %395 = vector.shape_cast %394 : vector<16xf32> to vector<16x1xf32>
    %cst_96 = arith.constant 1.280000e+02 : f32
    %396 = vector.broadcast %cst_96 : f32 to vector<16x1xf32>
    %397 = arith.divf %395, %396 : vector<16x1xf32>
    %398 = vector.broadcast %397 : vector<16x1xf32> to vector<16x128xf32>
    %399 = arith.subf %393, %398 : vector<16x128xf32>
    %400 = arith.mulf %399, %399 : vector<16x128xf32>
    %cst_97 = arith.constant dense<0.000000e+00> : vector<16xf32>
    %401 = vector.multi_reduction <add>, %400, %cst_97 [1] : vector<16x128xf32> to vector<16xf32>
    %402 = vector.shape_cast %401 : vector<16xf32> to vector<16x1xf32>
    %cst_98 = arith.constant 1.280000e+02 : f32
    %403 = vector.broadcast %cst_98 : f32 to vector<16x1xf32>
    %404 = arith.divf %402, %403 : vector<16x1xf32>
    %405 = vector.broadcast %397 : vector<16x1xf32> to vector<16x128xf32>
    %406 = arith.subf %393, %405 : vector<16x128xf32>
    %cst_99 = arith.constant 9.99999974E-6 : f32
    %407 = vector.broadcast %cst_99 : f32 to vector<16x1xf32>
    %408 = arith.addf %404, %407 : vector<16x1xf32>
    %409 = math.rsqrt %408 : vector<16x1xf32>
    %410 = vector.broadcast %409 : vector<16x1xf32> to vector<16x128xf32>
    %411 = arith.mulf %406, %410 : vector<16x128xf32>
    %412 = vector.broadcast %237 : vector<1x128xf32> to vector<16x128xf32>
    %413 = arith.mulf %411, %412 : vector<16x128xf32>
    %414 = vector.broadcast %238 : vector<1x128xf32> to vector<16x128xf32>
    %415 = arith.addf %413, %414 : vector<16x128xf32>
    %416 = arith.truncf %415 : vector<16x128xf32> to vector<16x128xbf16>
    %cst_100 = arith.constant dense<0.000000e+00> : vector<16x256xf32>
    %417 = tpu.matmul %416, %230, %cst_100 {dimension_numbers = #tpu.dot_dimension_numbers<[1], [0], [0], [1], [0, 0, 1, 1], [], []>} : vector<16x128xbf16>, vector<128x256xbf16>, vector<16x256xf32> -> vector<16x256xf32>
    %418 = vector.broadcast %235 : vector<1x256xf32> to vector<16x256xf32>
    %419 = arith.addf %417, %418 : vector<16x256xf32>
    %cst_101 = arith.constant 0.000000e+00 : f32
    %420 = vector.broadcast %cst_101 : f32 to vector<16x256xf32>
    %421 = arith.maximumf %419, %420 : vector<16x256xf32>
    %422 = arith.truncf %421 : vector<16x256xf32> to vector<16x256xbf16>
    %cst_102 = arith.constant dense<0.000000e+00> : vector<16x128xf32>
    %423 = tpu.matmul %422, %232, %cst_102 {dimension_numbers = #tpu.dot_dimension_numbers<[1], [0], [0], [1], [0, 0, 1, 1], [], []>} : vector<16x256xbf16>, vector<256x128xbf16>, vector<16x128xf32> -> vector<16x128xf32>
    %424 = vector.broadcast %236 : vector<1x128xf32> to vector<16x128xf32>
    %425 = arith.addf %423, %424 : vector<16x128xf32>
    %426 = arith.addf %415, %425 : vector<16x128xf32>
    %cst_103 = arith.constant dense<0.000000e+00> : vector<16xf32>
    %427 = vector.multi_reduction <add>, %426, %cst_103 [1] : vector<16x128xf32> to vector<16xf32>
    %428 = vector.shape_cast %427 : vector<16xf32> to vector<16x1xf32>
    %cst_104 = arith.constant 1.280000e+02 : f32
    %429 = vector.broadcast %cst_104 : f32 to vector<16x1xf32>
    %430 = arith.divf %428, %429 : vector<16x1xf32>
    %431 = vector.broadcast %430 : vector<16x1xf32> to vector<16x128xf32>
    %432 = arith.subf %426, %431 : vector<16x128xf32>
    %433 = arith.mulf %432, %432 : vector<16x128xf32>
    %cst_105 = arith.constant dense<0.000000e+00> : vector<16xf32>
    %434 = vector.multi_reduction <add>, %433, %cst_105 [1] : vector<16x128xf32> to vector<16xf32>
    %435 = vector.shape_cast %434 : vector<16xf32> to vector<16x1xf32>
    %cst_106 = arith.constant 1.280000e+02 : f32
    %436 = vector.broadcast %cst_106 : f32 to vector<16x1xf32>
    %437 = arith.divf %435, %436 : vector<16x1xf32>
    %438 = vector.broadcast %430 : vector<16x1xf32> to vector<16x128xf32>
    %439 = arith.subf %426, %438 : vector<16x128xf32>
    %cst_107 = arith.constant 9.99999974E-6 : f32
    %440 = vector.broadcast %cst_107 : f32 to vector<16x1xf32>
    %441 = arith.addf %437, %440 : vector<16x1xf32>
    %442 = math.rsqrt %441 : vector<16x1xf32>
    %443 = vector.broadcast %442 : vector<16x1xf32> to vector<16x128xf32>
    %444 = arith.mulf %439, %443 : vector<16x128xf32>
    %445 = vector.broadcast %239 : vector<1x128xf32> to vector<16x128xf32>
    %446 = arith.mulf %444, %445 : vector<16x128xf32>
    %447 = vector.broadcast %240 : vector<1x128xf32> to vector<16x128xf32>
    %448 = arith.addf %446, %447 : vector<16x128xf32>
    %449 = vector.extract_strided_slice %2 {offsets = [16, 0], sizes = [1, 128], strides = [1, 1]} : vector<17x384xf32> to vector<1x128xf32>
    %450 = arith.truncf %448 : vector<16x128xf32> to vector<16x128xbf16>
    %c0_108 = arith.constant 0 : index
    %c0_109 = arith.constant 0 : index
    %451 = vector.load %arg4[%c0_108, %c0_109] : memref<128x128xbf16, #tpu.memory_space<vmem>>, vector<128x128xbf16>
    %cst_110 = arith.constant dense<0.000000e+00> : vector<16x128xf32>
    %452 = tpu.matmul %450, %451, %cst_110 {dimension_numbers = #tpu.dot_dimension_numbers<[1], [0], [0], [1], [0, 0, 1, 1], [], []>} : vector<16x128xbf16>, vector<128x128xbf16>, vector<16x128xf32> -> vector<16x128xf32>
    %453 = vector.broadcast %449 : vector<1x128xf32> to vector<16x128xf32>
    %454 = arith.addf %452, %453 : vector<16x128xf32>
    %455 = vector.shape_cast %454 : vector<16x128xf32> to vector<2x8x128xf32>
    %c0_111 = arith.constant 0 : index
    %c0_112 = arith.constant 0 : index
    %c0_113 = arith.constant 0 : index
    %456 = vector.load %arg6[%c0_111, %c0_112, %c0_113] : memref<2x8x128xf32, #tpu.memory_space<vmem>>, vector<2x8x128xf32>
    tpu.vector_store %arg6[%c0_111, %c0_112, %c0_113], %455 {strides = array<i32>} : memref<2x8x128xf32, #tpu.memory_space<vmem>>, vector<2x8x128xf32>,
    return
  }
  func.func @transform_0(%arg0: i32) -> (i32, i32, i32) {
    %c0_i32 = arith.constant 0 : i32
    %c0_i32_0 = arith.constant 0 : i32
    %c0_i32_1 = arith.constant 0 : i32
    return %arg0, %c0_i32, %c0_i32_0 : i32, i32, i32
  }
  func.func @transform_1(%arg0: i32) -> (i32, i32, i32) {
    %c0_i32 = arith.constant 0 : i32
    %c0_i32_0 = arith.constant 0 : i32
    %c0_i32_1 = arith.constant 0 : i32
    %c0_i32_2 = arith.constant 0 : i32
    return %c0_i32, %c0_i32_0, %c0_i32_1 : i32, i32, i32
  }
  func.func @transform_2(%arg0: i32) -> (i32, i32, i32) {
    %c0_i32 = arith.constant 0 : i32
    %c0_i32_0 = arith.constant 0 : i32
    %c0_i32_1 = arith.constant 0 : i32
    %c0_i32_2 = arith.constant 0 : i32
    return %c0_i32, %c0_i32_0, %c0_i32_1 : i32, i32, i32
  }
  func.func @transform_3(%arg0: i32) -> (i32, i32) {
    %c0_i32 = arith.constant 0 : i32
    %c0_i32_0 = arith.constant 0 : i32
    %c0_i32_1 = arith.constant 0 : i32
    return %c0_i32, %c0_i32_0 : i32, i32
  }
  func.func @transform_4(%arg0: i32) -> (i32, i32) {
    %c0_i32 = arith.constant 0 : i32
    %c0_i32_0 = arith.constant 0 : i32
    %c0_i32_1 = arith.constant 0 : i32
    return %c0_i32, %c0_i32_0 : i32, i32
  }
  func.func @transform_5(%arg0: i32) -> (i32, i32, i32) {
    %c0_i32 = arith.constant 0 : i32
    %c0_i32_0 = arith.constant 0 : i32
    %c0_i32_1 = arith.constant 0 : i32
    return %arg0, %c0_i32, %c0_i32_0 : i32, i32, i32
  }
}

</mosaic_0001>

<bundles_post_ra>
// kernel: transformer_forward.1
= control target key start
LH: loop header
LB: loop body
LE: loop exit
PB: predicated region body
PF: predicated region fallthrough
CT: control target
= control target key end

     0   :  { %10 = vsyncpa [#allocation3], 0  ;;  %s5626_s0 = inlined_call_operand.vmem [shape: f32[4,8,128], index: 0, kind: input, shape index: {}]   ;;  %s5627_s1 = inlined_call_operand.hbm [shape: bf16[2,128,768], index: 1, kind: input, shape index: {}]   ;;  %s5628_s2 = inlined_call_operand.hbm [shape: bf16[2,256,128], index: 2, kind: input, shape index: {}]   ;;  %s5629_s3 = inlined_call_operand.hbm [shape: bf16[128,128], index: 3, kind: input, shape index: {}]   ;;  %s5630_s4 = inlined_call_operand.hbm [shape: f32[17,384], index: 4, kind: input, shape index: {}]   ;;  %s5631_s5 = inlined_call_operand.vmem [shape: f32[4,8,128], index: 5, kind: output, shape index: {}]  }
   0x1   :  { %11 = vsyncpa [#allocation5], 0 }
   0x2   :  { %12 = vsyncpa [#allocation8], 0  ;;  %s4961_s18 = smov 0  }
   0x3 LB: > { %s4917_s19 = smov [#allocation4]   ;;  %s3824_s21 = sadd.s32 4294967295, %s4915_s18   ;;  %s4915_s18 = sphi %s4961_s18, %s18_s18  }
   0x4   : > { %s184_s20 = sshll.u32 %s4917_s19, 4  ;;  %p3826_p0 = scmp.ge.s32.totalorder %s4915_s18, 1  ;;  %s4975_s20 = int_to_ptr.vmem [resolvable:$true] %s184_s20 }
   0x5   : > { %p159_p1 = scmp.lt.s32.totalorder %s4915_s18, 3  ;;  %p4971_p2 = scmp.eq.s32.totalorder %s3824_s21, 0 }
   0x6   : > { %s4918_s24 = smov [#allocation2]   ;;  %s4919_s27 = smov [#allocation6]  }
   0x7   : > { %s5635_s22 = scalar_select %p4971_p2, 1, 0 }
   0x8   : > { %p4977_p3 = pnand %p3826_p0, %p159_p1  ;;  %s171_s25 = sshll.u32 %s4918_s24, 4  ;;  %s4983_s25 = int_to_ptr.vmem [resolvable:$true] %s171_s25 }
   0x9   : > { %s4991_s28 = sshll.u32 %s4919_s27, 4  ;;  %s4785_s6 = scalar_lea.hbm %s5628_s2, 4096  ;;  %s198_s28 = int_to_ptr.vmem [resolvable:$true] %s4991_s28 }
   0xa   : > { %s5636_s23 = scalar_select %p4977_p3, 1, 0 }
   0xb   : > { %p4473_p4 = pneg %p4977_p3  ;;  %p4786_p6 = scmp.ne.s32.totalorder %s5628_s2, %s4785_s6 }
   0xc   : > { %p4792_p10 = scmp.lt.u32.totalorder %s4785_s6, %s5628_s2 }
   0xd   : > { %p4987_p5 = pnand %p4971_p2, %p4473_p4 }
   0xf   : > { %p5001_p7 = pneg %p4987_p5 }
  0x11   : > { %p4788_p8 = pnand %p5001_p7, %p4786_p6 }
  0x13   : > { %p4789_p9 = pneg %p4788_p8 }
  0x15   : > { %p4794_p11 = pnand %p4792_p10, %p4789_p9 }
  0x17   : > { %4797 = shalt.err (!%p4794_p11)
}
  0x18   : > { %s4798_s12 = scalar_lea.vmem %s4975_s20, 4096  ;;  %p4806_p1 = scmp.lt.s32.totalorder %s4975_s20, %s4975_s20 }
  0x19   : > { %p4799_p12 = scmp.ne.s32.totalorder %s4975_s20, %s4798_s12  ;;  %p4807_p4 = scmp.lt.s32.totalorder %s4798_s12, %s4798_s12 }
  0x1b   : > { %p4801_p13 = pnand %p4799_p12, %p5001_p7  ;;  %p4808_p6 = por %p4807_p4, %p4806_p1 }
  0x1d   : > { %p4802_p0 = pneg %p4801_p13 }
  0x1f   : > { %p4809_p8 = pnand %p4808_p6, %p4802_p0 }
  0x21   : > { %4812 = shalt.err (!%p4809_p8)
}
  0x22   : > { %s4920_s13 = smov 64   ;;  %s4921_s14 = smov 4  }
  0x23   : > { %4479 = dma.hbm_to_vmem [thread:$0]  (!%p4987_p5), %s5628_s2, 4096, %s4975_s20, [#allocation5], %s4920_s13, %s4920_s13, %s4921_s14  }
  0x24   : > { %s4813_s24 = scalar_lea.hbm %s5627_s1, 12288 }
  0x25   : > { %p4814_p9 = scmp.ne.s32.totalorder %s5627_s1, %s4813_s24  ;;  %p4820_p12 = scmp.lt.u32.totalorder %s4813_s24, %s5627_s1 }
  0x27   : > { %p4816_p10 = pnand %p4814_p9, %p5001_p7 }
  0x29   : > { %p4817_p11 = pneg %p4816_p10 }
  0x2b   : > { %p4822_p13 = pnand %p4820_p12, %p4817_p11 }
  0x2d   : > { %4825 = shalt.err (!%p4822_p13)
}
  0x2e   : > { %s4826_s20 = scalar_lea.vmem %s4983_s25, 12288  ;;  %p4834_p6 = scmp.lt.s32.totalorder %s4983_s25, %s4983_s25 }
  0x2f   : > { %p4827_p0 = scmp.ne.s32.totalorder %s4983_s25, %s4826_s20  ;;  %p4835_p8 = scmp.lt.s32.totalorder %s4826_s20, %s4826_s20 }
  0x31   : > { %p4829_p1 = pnand %p4827_p0, %p5001_p7  ;;  %p4836_p9 = por %p4835_p8, %p4834_p6 }
  0x33   : > { %p4830_p4 = pneg %p4829_p1 }
  0x35   : > { %p4837_p10 = pnand %p4836_p9, %p4830_p4 }
  0x37   : > { %4840 = shalt.err (!%p4837_p10)
}
  0x38   : > { %s4922_s7 = smov 384   ;;  %s4923_s8 = smov 24  }
  0x39   : > { %4476 = dma.hbm_to_vmem [thread:$0]  (!%p4987_p5), %s5627_s1, 12288, %s4983_s25, [#allocation3], %s4922_s7, %s4922_s7, %s4923_s8  }
  0x3a   : > { %s4924_s12 = smov [#allocation7]   ;;  %s4841_s19 = scalar_lea.hbm %s5629_s3, 1024 }
  0x3b   : > { %s210_s15 = sshll.u32 %s4924_s12, 4  ;;  %p4842_p11 = scmp.ne.s32.totalorder %s5629_s3, %s4841_s19  ;;  %s211_s15 = int_to_ptr.vmem [resolvable:$true] %s210_s15 }
  0x3c   : > { %p4848_p0 = scmp.lt.u32.totalorder %s4841_s19, %s5629_s3 }
  0x3d   : > { %p4844_p12 = pnand %p4842_p11, %p5001_p7 }
  0x3f   : > { %p4845_p13 = pneg %p4844_p12 }
  0x41   : > { %p4850_p1 = pnand %p4848_p0, %p4845_p13 }
  0x43   : > { %4853 = shalt.err (!%p4850_p1)
}
  0x44   : > { %s4854_s25 = scalar_lea.vmem %s198_s28, 1024  ;;  %p4862_p9 = scmp.lt.s32.totalorder %s198_s28, %s198_s28 }
  0x45   : > { %p4855_p4 = scmp.ne.s32.totalorder %s198_s28, %s4854_s25  ;;  %p4863_p10 = scmp.lt.s32.totalorder %s4854_s25, %s4854_s25 }
  0x47   : > { %p4857_p6 = pnand %p4855_p4, %p5001_p7  ;;  %p4864_p2 = por %p4863_p10, %p4862_p9 }
  0x49   : > { %p4858_p8 = pneg %p4857_p6 }
  0x4b   : > { %p4865_p3 = pnand %p4864_p2, %p4858_p8 }
  0x4d   : > { %4868 = shalt.err (!%p4865_p3)
}
  0x4e   : > { %4482 = dma.hbm_to_vmem [thread:$0]  (!%p4987_p5), %s5629_s3, 1024, %s198_s28, [#allocation5], %s4920_s13, %s4920_s13, %s4921_s14  }
  0x4f   : > { %s4869_s12 = scalar_lea.hbm %s5630_s4, 1152 }
  0x50   : > { %p4870_p2 = scmp.ne.s32.totalorder %s5630_s4, %s4869_s12  ;;  %p4876_p12 = scmp.lt.u32.totalorder %s4869_s12, %s5630_s4 }
  0x52   : > { %p4872_p3 = pnand %p4870_p2, %p5001_p7 }
  0x54   : > { %p4873_p11 = pneg %p4872_p3 }
  0x56   : > { %p4878_p13 = pnand %p4876_p12, %p4873_p11 }
  0x58   : > { %4881 = shalt.err (!%p4878_p13)
}
  0x59   : > { %s4882_s27 = scalar_lea.vmem %s211_s15, 1152  ;;  %p4890_p6 = scmp.lt.s32.totalorder %s211_s15, %s211_s15 }
  0x5a   : > { %p4883_p0 = scmp.ne.s32.totalorder %s211_s15, %s4882_s27  ;;  %p4891_p8 = scmp.lt.s32.totalorder %s4882_s27, %s4882_s27 }
  0x5c   : > { %p4885_p1 = pnand %p4883_p0, %p5001_p7  ;;  %p4892_p9 = por %p4891_p8, %p4890_p6 }
  0x5e   : > { %p4886_p4 = pneg %p4885_p1 }
  0x60   : > { %p4893_p10 = pnand %p4892_p9, %p4886_p4 }
  0x62   : > { %4896 = shalt.err (!%p4893_p10)
}
  0x63   : > { %4485 = dma.hbm_to_vmem [thread:$0]  (!%p4987_p5), %s5630_s4, 1152, %s211_s15, [#allocation8], %s4922_s7, %s4922_s7, %s4923_s8  }
  0x64   : > { %p5639_p2 = scmp.ne.s32.totalorder %s5636_s23, 0 }
  0x65   : > { %p5640_p7 = scmp.ne.s32.totalorder (!%p5639_p2), %s5635_s22, 0 }
  0x66   : > { %235 = sbr.rel (%p5639_p2) target bundleno = 5932 (0x172c), region = 40 }
  0x6d   : > { %4902 = dma.done.wait (%p5640_p7), [#allocation3], 12288  }
  0x6e   : > { %4904 = vsyncadd (%p5640_p7), [#allocation3], 4294955008 }
  0x6f   : > { %4906 = dma.done.wait (%p5640_p7), [#allocation5], 5120  }
  0x70   : > { %4908 = vsyncadd (%p5640_p7), [#allocation5], 4294962176 }
  0x71   : > { %4910 = dma.done.wait (%p5640_p7), [#allocation8], 1152  }
  0x72   : > { %4912 = vsyncadd (%p5640_p7), [#allocation8], 4294966144  ;;  %v4925_v0 = vmov 0   ;;  %v4516_v1 = vld [vmem:[#allocation2 + $0x4] ss:$24 sps:$4 sm:$0xff]   ;;  %s3837_s23 = sshll.u32 %s3824_s21, 1  ;;  %v378_v21 = vlaneseq }
  0x73   : > { %550 = vmatprep.mubr.bf16.mxu0 %v4925_v0  ;;  %v4518_v2 = vld [vmem:[#allocation2] ss:$24 sps:$4 sm:$0xff]   ;;  %518 = vmatprep.subr.bf16.mxu0 %v4516_v1  ;;  %v4519_v3 = vld [vmem:[#allocation2 + $0x34] ss:$24 sps:$4 sm:$0xff]   ;;  %v4521_v4 = vld [vmem:[#allocation2 + $0x30] ss:$24 sps:$4 sm:$0xff]  }
  0x74   : > { %519 = vmatpush1.bf16.msra.mxu0 %v4518_v2  ;;  %v4522_v5 = vld [vmem:[#allocation2 + $0x64] ss:$24 sps:$4 sm:$0xff]   ;;  %v4524_v6 = vld [vmem:[#allocation2 + $0x60] ss:$24 sps:$4 sm:$0xff]   ;;  %v4525_v7 = vld [vmem:[#allocation2 + $0x94] ss:$24 sps:$4 sm:$0xff]  }
  0x75   : > { %520 = vmatprep.subr.bf16.mxu0 %v4519_v3  ;;  %v4527_v8 = vld [vmem:[#allocation2 + $0x90] ss:$24 sps:$4 sm:$0xff]   ;;  %v4528_v9 = vld [vmem:[#allocation2 + $0xc4] ss:$24 sps:$4 sm:$0xff]   ;;  %p276_p5 = scmp.lt.s32.totalorder %s3837_s23, 3  ;;  %v4926_v20 = vmov 0.0  }
  0x76   : > { %v4530_v10 = vld [vmem:[#allocation2 + $0xc0] ss:$24 sps:$4 sm:$0xff]   ;;  %v4531_v11 = vld [vmem:[#allocation2 + $0xf4] ss:$24 sps:$4 sm:$0xff]   ;;  %v4533_v12 = vld [vmem:[#allocation2 + $0xf0] ss:$24 sps:$4 sm:$0xff]   ;;  %4165 = vmatprep.subr.bf16.mxu1 %v4926_v20 }
  0x77   : > { %s5642_s23 = smov (!%p276_p5, %s3837_s23), 3  ;;  %v4534_v13 = vld [vmem:[#allocation2 + $0x124] ss:$24 sps:$4 sm:$0xff]   ;;  %v4536_v14 = vld [vmem:[#allocation2 + $0x120] ss:$24 sps:$4 sm:$0xff]   ;;  %vm4927_vm0 = vmmov 0  }
  0x78   : > { %521 = vmatpush1.bf16.msra.mxu0 %v4521_v4  ;;  %s3838_s22 = sshll.u32 %s5642_s23, 3  ;;  %v4537_v15 = vld [vmem:[#allocation2 + $0x154] ss:$24 sps:$4 sm:$0xff]   ;;  %v4539_v16 = vld [vmem:[#allocation2 + $0x150] ss:$24 sps:$4 sm:$0xff]   ;;  %4181 = vmatprep.mubr.msk.bf16.mxu1 %vm4927_vm0, %v4926_v20  ;;  %v5132_v22 = vshrl.u32 %v378_v21, 7 }
  0x79   : > { %522 = vmatprep.subr.bf16.mxu0 %v4522_v5  ;;  %s5119_s9 = scalar_lea.vmem %s5626_s0, %s3838_s22  ;;  %v5137_v24 = vld [vmem:[#allocation7] sm:$0xff]  ;;  %v291_v25 = vld [vmem:[#allocation7 + $0x8] sm:$0xff]  ;;  %vm605_vm1 = vcmask 261120   ;;  %s4928_s14 = smov 64   ;;  %v4543_v42 = vld [vmem:[#allocation2 + $0x38] ss:$24 sps:$4 sm:$0xff]  }
  0x7a   : > { %v288_v17 = vld [vmem:[%s5119_s9] sm:$0xff]  ;;  %v289_v18 = vld [vmem:[%s5119_s9 + $0x8] sm:$0xff]  ;;  %v5135_v23 = vsub.s32 0, %v5132_v22  ;;  %s4929_s7 = smov 96   ;;  %s4930_s8 = smov 32   ;;  %vm652_vm2 = vcmask 64512  }
  0x7b   : > { %v5123_v19 = vpack.c.bf16 %v289_v18, %v288_v17  ;;  %v4540_v41 = vld [vmem:[#allocation2 + $0x8] ss:$24 sps:$4 sm:$0xff]   ;;  %v4549_v44 = vld [vmem:[#allocation2 + $0x98] ss:$24 sps:$4 sm:$0xff]   ;;  %v4542_v4 = vld [vmem:[#allocation2 + $0xc] ss:$24 sps:$4 sm:$0xff]   ;;  %s285_s30 = scalar_lea.vmem %s5631_s5, %s3838_s22 }
  0x7c   : > { %523 = vmatpush1.bf16.msra.mxu0 %v4524_v6  ;;  %v381_v26 = vrot.slane %v5137_v24, %v5135_v23  ;;  %v385_v28 = vrot.slane %v291_v25, %v5135_v23  ;;  %4166 = vmatpush3.bf16.msra.mxu1 %v4540_v41  ;;  %v4546_v43 = vld [vmem:[#allocation2 + $0x68] ss:$24 sps:$4 sm:$0xff]   ;;  %v4555_v46 = vld [vmem:[#allocation2 + $0xf8] ss:$24 sps:$4 sm:$0xff]   ;;  %v4545_v6 = vld [vmem:[#allocation2 + $0x3c] ss:$24 sps:$4 sm:$0xff]  }
  0x7d   : > { %524 = vmatprep.subr.bf16.mxu0 %v4525_v7  ;;  %4167 = vmatprep.subr.bf16.mxu1 %v4926_v20  ;;  %v4552_v45 = vld [vmem:[#allocation2 + $0xc8] ss:$24 sps:$4 sm:$0xff]   ;;  %v4561_v51 = vld [vmem:[#allocation2 + $0x158] ss:$24 sps:$4 sm:$0xff]   ;;  %v4548_v7 = vld [vmem:[#allocation2 + $0x6c] ss:$24 sps:$4 sm:$0xff]  }
  0x7e   : > { %v4558_v49 = vld [vmem:[#allocation2 + $0x128] ss:$24 sps:$4 sm:$0xff]   ;;  %vm668_vm3 = vcmask 1043456   ;;  %vm1064_vm4 = vcmask 785408   ;;  %vm1061_vm5 = vcmask 523264  }
  0x80   : > { %525 = vmatpush1.bf16.msra.mxu0 %v4527_v8  ;;  %4168 = vmatpush3.bf16.msra.mxu1 %v4543_v42  ;;  %v4551_v8 = vld [vmem:[#allocation2 + $0x9c] ss:$24 sps:$4 sm:$0xff]  }
  0x81   : > { %526 = vmatprep.subr.bf16.mxu0 %v4528_v9  ;;  %4169 = vmatprep.subr.bf16.mxu1 %v4926_v20  ;;  %v4554_v9 = vld [vmem:[#allocation2 + $0xcc] ss:$24 sps:$4 sm:$0xff]  }
  0x84   : > { %527 = vmatpush1.bf16.msra.mxu0 %v4530_v10  ;;  %4170 = vmatpush3.bf16.msra.mxu1 %v4546_v43  ;;  %v4557_v10 = vld [vmem:[#allocation2 + $0xfc] ss:$24 sps:$4 sm:$0xff]  }
  0x85   : > { %528 = vmatprep.subr.bf16.mxu0 %v4531_v11  ;;  %4171 = vmatprep.subr.bf16.mxu1 %v4926_v20  ;;  %v4560_v11 = vld [vmem:[#allocation2 + $0x12c] ss:$24 sps:$4 sm:$0xff]  }
  0x88   : > { %529 = vmatpush1.bf16.msra.mxu0 %v4533_v12  ;;  %4172 = vmatpush3.bf16.msra.mxu1 %v4549_v44  ;;  %v4563_v12 = vld [vmem:[#allocation2 + $0x15c] ss:$24 sps:$4 sm:$0xff]  }
  0x89   : > { %530 = vmatprep.subr.bf16.mxu0 %v4534_v13  ;;  %4173 = vmatprep.subr.bf16.mxu1 %v4926_v20 }
  0x8c   : > { %531 = vmatpush1.bf16.msra.mxu0 %v4536_v14  ;;  %4174 = vmatpush3.bf16.msra.mxu1 %v4552_v45 }
  0x8d   : > { %532 = vmatprep.subr.bf16.mxu0 %v4537_v15  ;;  %4175 = vmatprep.subr.bf16.mxu1 %v4926_v20 }
  0x90   : > { %533 = vmatpush1.bf16.msra.mxu0 %v4539_v16  ;;  %4176 = vmatpush3.bf16.msra.mxu1 %v4555_v46 }
  0x91   : > { %4185 = vmatprep.subr.bf16.mxu0 %v4926_v20  ;;  %4177 = vmatprep.subr.bf16.mxu1 %v4926_v20 }
  0x93   : > { %551 = vmatmul.mubr.bf16.vlgmr.msra.gmra.mrb[0].mxu0 %v5123_v19 }
  0x94   : > { %4187 = vmatprep.mubr.msk.bf16.mxu0 %vm4927_vm0, %v4926_v20  ;;  %4178 = vmatpush3.bf16.msra.mxu1 %v4558_v49 }
  0x95   : > { %4179 = vmatprep.subr.bf16.mxu1 %v4926_v20 }
  0x98   : > { %4180 = vmatpush3.bf16.msra.mxu1 %v4561_v51 }
  0x99   : > { %4191 = vmatprep.subr.bf16.mxu1 %v4926_v20 }
  0x9b   : > { %4182 = vmatmul.mubr.bf16.vlgmr.msra.gmra.mrb[0].mxu1 %v5123_v19 }
  0x9c   : > { %4193 = vmatprep.mubr.msk.bf16.mxu1 %vm4927_vm0, %v4926_v20 }
 0x166   : > { %v552_v27 = vpop.f32.mrb[0].mxu0 }
 0x167   : > { %v554_v29 = vpop.f32.mrb[1].mxu0  ;;  %v553_v31 = vadd.f32 %v552_v27, %v381_v26 }
 0x168   : > { %v556_v30 = vpop.f32.mrb[2].mxu0  ;;  %v555_v34 = vadd.f32 %v554_v29, %v385_v28 }
 0x169   : > { %v557_v32 = vadd.f32 %v556_v30, %v381_v26  ;;  %v558_v33 = vpop.f32.mrb[3].mxu0 }
 0x16a   : > { %v559_v35 = vadd.f32 %v558_v33, %v385_v28 }
 0x16b   : > { %v602_v36 = vpack.c.bf16 %v557_v32, %v553_v31 }
 0x16c   : > { %v603_v37 = vpack.c.bf16 %v559_v35, %v555_v34 }
 0x16d   : > { %v1067_v40 = vrot.slane %v602_v36, 4 }
 0x16e   : > { %829 = vrot.lane.b32.xlu1 %v603_v37, %s4928_s14  ;;  %717 = vrot.lane.b32.xlu0 %v603_v37, %s4929_s7  ;;  %v610_v38 = vsel %vm605_vm1, %v603_v37, 0  ;;  %v1068_v39 = vrot.slane %v603_v37, 4 }
 0x16f   : > { %4186 = vmatpush3.bf16.xpose.msra.mxu0 %v610_v38 }
 0x170   : > { %4197 = vmatprep.subr.bf16.mxu0 %v4926_v20  ;;  %v1073_v58 = vsel %vm605_vm1, %v1068_v39, 0 }
 0x172   : > { %827 = vrot.lane.b32.xlu1 %v602_v36, %s4928_s14  ;;  %714 = vrot.lane.b32.xlu0 %v602_v36, %s4929_s7 }
 0x176   : > { %938 = vrot.lane.b32.xlu1 %v602_v36, %s4930_s8  ;;  %940 = vrot.lane.b32.xlu0 %v603_v37, %s4930_s8 }
 0x177   : > { %4188 = vmatmul.mubr.msk.bf16.vlgmr.msra.gmra.mrb[4].mxu0 %vm605_vm1, %v602_v36 }
 0x178   : > { %4199 = vmatprep.mubr.msk.bf16.mxu0 %vm4927_vm0, %v4926_v20 }
 0x17a   : > { %1177 = vrot.lane.b32.xlu0 %v1068_v39, %s4929_s7  ;;  %1175 = vrot.lane.b32.xlu1 %v1067_v40, %s4929_s7 }
 0x17e   : > { %1288 = vrot.lane.b32.xlu0 %v1068_v39, %s4928_s14  ;;  %1286 = vrot.lane.b32.xlu1 %v1067_v40, %s4928_s14 }
 0x182   : > { %1399 = vrot.lane.b32.xlu0 %v1068_v39, %s4930_s8  ;;  %1397 = vrot.lane.b32.xlu1 %v1067_v40, %s4930_s8 }
 0x1e0   : > { %v718_v47 = vpop.permute.xlu0 %717  ;;  %v830_v50 = vpop.permute.xlu1 %829 }
 0x1e1   : > { %v723_v48 = vsel %vm605_vm1, %v718_v47, 0  ;;  %v835_v53 = vsel %vm605_vm1, %v830_v50, 0 }
 0x1e2   : > { %4198 = vmatpush3.bf16.xpose.msra.mxu0 %v723_v48 }
 0x1e3   : > { %4209 = vmatprep.subr.bf16.mxu0 %v4926_v20 }
 0x1e4   : > { %v715_v52 = vpop.permute.xlu0 %714  ;;  %v828_v55 = vpop.permute.xlu1 %827 }
 0x1e8   : > { %v941_v54 = vpop.permute.xlu0 %940  ;;  %v939_v57 = vpop.permute.xlu1 %938 }
 0x1e9   : > { %4200 = vmatmul.mubr.msk.bf16.vlgmr.msra.gmra.mrb[8].mxu0 %vm605_vm1, %v715_v52  ;;  %v946_v56 = vsel %vm605_vm1, %v941_v54, 0 }
 0x1ea   : > { %4210 = vmatpush3.bf16.xpose.msra.mxu0 %v835_v53  ;;  %4211 = vmatprep.mubr.msk.bf16.mxu0 %vm4927_vm0, %v4926_v20 }
 0x1eb   : > { %4221 = vmatprep.subr.bf16.mxu0 %v4926_v20 }
 0x1ec   : > { %v1178_v59 = vpop.permute.xlu0 %1177  ;;  %v1176_v62 = vpop.permute.xlu1 %1175 }
 0x1ed   : > { %v1183_v60 = vsel %vm605_vm1, %v1178_v59, 0 }
 0x1f0   : > { %v1289_v61 = vpop.permute.xlu0 %1288  ;;  %v1287_v2 = vpop.permute.xlu1 %1286 }
 0x1f1   : > { %4212 = vmatmul.mubr.msk.bf16.vlgmr.msra.gmra.mrb[12].mxu0 %vm605_vm1, %v828_v55  ;;  %v1294_v63 = vsel %vm605_vm1, %v1289_v61, 0 }
 0x1f2   : > { %4222 = vmatpush3.bf16.xpose.msra.mxu0 %v946_v56  ;;  %4223 = vmatprep.mubr.msk.bf16.mxu0 %vm4927_vm0, %v4926_v20  ;;  %v292_v56 = vld [vmem:[#allocation7 + $0x10] sm:$0xff] }
 0x1f3   : > { %4233 = vmatprep.subr.bf16.mxu0 %v4926_v20 }
 0x1f4   : > { %v1400_v1 = vpop.permute.xlu0 %1399  ;;  %v1398_v5 = vpop.permute.xlu1 %1397 }
 0x1f5   : > { %v1405_v3 = vsel %vm605_vm1, %v1400_v1, 0 }
 0x1f9   : > { %4224 = vmatmul.mubr.msk.bf16.vlgmr.msra.gmra.mrb[16].mxu0 %vm605_vm1, %v939_v57  ;;  %v595_v57 = vpop.f32.mrb[0].mxu1 }
 0x1fa   : > { %4234 = vmatpush3.bf16.xpose.msra.mxu0 %v1073_v58  ;;  %4235 = vmatprep.mubr.msk.bf16.mxu0 %vm4927_vm0, %v4926_v20  ;;  %v4183_v59 = vpop.f32.mrb[1].mxu1 }
 0x1fb   : > { %4245 = vmatprep.subr.bf16.mxu0 %v4926_v20 }
 0x201   : > { %4236 = vmatmul.mubr.msk.bf16.vlgmr.msra.gmra.mrb[20].mxu0 %vm605_vm1, %v1067_v40 }
 0x202   : > { %4246 = vmatpush3.bf16.xpose.msra.mxu0 %v1183_v60  ;;  %4247 = vmatprep.mubr.msk.bf16.mxu0 %vm4927_vm0, %v4926_v20  ;;  %v389_v60 = vrot.slane %v292_v56, %v5135_v23 }
 0x203   : > { %4257 = vmatprep.subr.bf16.mxu0 %v4926_v20 }
 0x209   : > { %4248 = vmatmul.mubr.msk.bf16.vlgmr.msra.gmra.mrb[24].mxu0 %vm605_vm1, %v1176_v62 }
 0x20a   : > { %4258 = vmatpush3.bf16.xpose.msra.mxu0 %v1294_v63  ;;  %4259 = vmatprep.mubr.msk.bf16.mxu0 %vm4927_vm0, %v4926_v20 }
 0x20b   : > { %4269 = vmatprep.subr.bf16.mxu0 %v4926_v20 }
 0x211   : > { %4260 = vmatmul.mubr.msk.bf16.vlgmr.msra.gmra.mrb[28].mxu0 %vm605_vm1, %v1287_v2  ;;  %v596_v2 = vadd.f32 %v595_v57, %v389_v60 }
 0x212   : > { %4270 = vmatpush3.bf16.xpose.msra.mxu0 %v1405_v3  ;;  %4271 = vmatprep.mubr.msk.bf16.mxu0 %vm4927_vm0, %v4926_v20  ;;  %v598_v3 = vpop.f32.mrb[2].mxu1 }
 0x213   : > { %4281 = vmatprep.subr.bf16.mxu0 %v4926_v20 }
 0x219   : > { %4272 = vmatmul.mubr.msk.bf16.vlgmr.msra.gmra.mrb[32].mxu0 %vm605_vm1, %v1398_v5  ;;  %v4184_v5 = vpop.f32.mrb[3].mxu1 }
 0x21a   : > { %4282 = vmatpush3.bf16.msra.mxu0 %v4542_v4  ;;  %4297 = vmatprep.mubr.msk.bf16.mxu0 %vm4927_vm0, %v4926_v20 }
 0x21b   : > { %4283 = vmatprep.subr.bf16.mxu0 %v4926_v20 }
 0x21e   : > { %4284 = vmatpush3.bf16.msra.mxu0 %v4545_v6  ;;  %v599_v6 = vadd.f32 %v598_v3, %v389_v60 }
 0x21f   : > { %4285 = vmatprep.subr.bf16.mxu0 %v4926_v20 }
 0x222   : > { %4286 = vmatpush3.bf16.msra.mxu0 %v4548_v7  ;;  %v5237_v7 = vpack.c.bf16 %v599_v6, %v596_v2 }
 0x223   : > { %4287 = vmatprep.subr.bf16.mxu0 %v4926_v20 }
 0x226   : > { %4288 = vmatpush3.bf16.msra.mxu0 %v4551_v8  ;;  %v670_v8 = vsel %vm668_vm3, %v5237_v7, 0 }
 0x227   : > { %4289 = vmatprep.subr.bf16.mxu0 %v4926_v20  ;;  %4192 = vmatpush3.bf16.msra.mxu1 %v670_v8 }
 0x228   : > { %4203 = vmatprep.subr.bf16.mxu1 %v4926_v20 }
 0x22a   : > { %4290 = vmatpush3.bf16.msra.mxu0 %v4554_v9 }
 0x22b   : > { %4291 = vmatprep.subr.bf16.mxu0 %v4926_v20 }
 0x22e   : > { %4292 = vmatpush3.bf16.msra.mxu0 %v4557_v10 }
 0x22f   : > { %4293 = vmatprep.subr.bf16.mxu0 %v4926_v20 }
 0x232   : > { %4294 = vmatpush3.bf16.msra.mxu0 %v4560_v11 }
 0x233   : > { %4295 = vmatprep.subr.bf16.mxu0 %v4926_v20 }
 0x236   : > { %4296 = vmatpush3.bf16.msra.mxu0 %v4563_v12 }
 0x24a   : > { %v646_v13 = vpop.f32.mrb[4].mxu0 }
 0x24b   : > { %v4189_v14 = vpop.f32.mrb[5].mxu0  ;;  %v653_v15 = vsel %vm652_vm2, %v646_v13, -inf }
 0x24c   : > { %654 = vmax.xlane.f32.xlu0 %v653_v15  ;;  %v649_v16 = vpop.f32.mrb[6].mxu0 }
 0x24d   : > { %v4190_v17 = vpop.f32.mrb[7].mxu0 }
 0x2bc   : > { %v5213_v18 = vpop.f32.mrb[8].mxu0 }
 0x2bd   : > { %v4201_v19 = vpop.f32.mrb[9].mxu0  ;;  %v765_v21 = vsel %vm652_vm2, %v5213_v18, -inf }
 0x2be   : > { %766 = vmax.xlane.f32.xlu1 %v765_v21  ;;  %v762_v25 = vpop.f32.mrb[10].mxu0 }
 0x2bf   : > { %v4202_v26 = vpop.f32.mrb[11].mxu0 }
 0x2c4   : > { %v871_v27 = vpop.f32.mrb[12].mxu0 }
 0x2c5   : > { %v4213_v28 = vpop.f32.mrb[13].mxu0  ;;  %v877_v29 = vsel %vm652_vm2, %v871_v27, -inf }
 0x2c6   : > { %878 = vmax.xlane.f32.xlu0 %v877_v29  ;;  %v874_v30 = vpop.f32.mrb[14].mxu0 }
 0x2c7   : > { %v4214_v31 = vpop.f32.mrb[15].mxu0 }
 0x2cc   : > { %v5218_v32 = vpop.f32.mrb[16].mxu0 }
 0x2cd   : > { %v4225_v33 = vpop.f32.mrb[17].mxu0  ;;  %v988_v34 = vsel %vm652_vm2, %v5218_v32, -inf }
 0x2ce   : > { %989 = vmax.xlane.f32.xlu0 %v988_v34  ;;  %v985_v35 = vpop.f32.mrb[18].mxu0 }
 0x2cf   : > { %v4226_v36 = vpop.f32.mrb[19].mxu0 }
 0x2d4   : > { %v5222_v37 = vpop.f32.mrb[20].mxu0 }
 0x2d5   : > { %v4237_v38 = vpop.f32.mrb[21].mxu0  ;;  %v1115_v39 = vsel %vm652_vm2, %v5222_v37, -inf }
 0x2d6   : > { %1116 = vmax.xlane.f32.xlu1 %v1115_v39  ;;  %v1112_v40 = vpop.f32.mrb[22].mxu0 }
 0x2d7   : > { %v4238_v41 = vpop.f32.mrb[23].mxu0 }
 0x2d9   : > { %v655_v42 = vpop.xlane.xlu0 %654 }
 0x2da   : > { %v656_v43 = vsub.f32 %v646_v13, %v655_v42 }
 0x2dc   : > { %v657_v44 = vmul.f32 1.442695, %v656_v43  ;;  %v5226_v45 = vpop.f32.mrb[24].mxu0 }
 0x2dd   : > { %v4249_v46 = vpop.f32.mrb[25].mxu0  ;;  %v1225_v47 = vsel %vm652_vm2, %v5226_v45, -inf }
 0x2de   : > { %4700 = vpow2.f32 %v657_v44  ;;  %1226 = vmax.xlane.f32.xlu0 %v1225_v47  ;;  %v1222_v48 = vpop.f32.mrb[26].mxu0 }
 0x2df   : > { %v4250_v49 = vpop.f32.mrb[27].mxu0 }
 0x2e4   : > { %v5230_v50 = vpop.f32.mrb[28].mxu0 }
 0x2e5   : > { %v4261_v51 = vpop.f32.mrb[29].mxu0  ;;  %v1336_v52 = vsel %vm652_vm2, %v5230_v50, -inf }
 0x2e6   : > { %1337 = vmax.xlane.f32.xlu1 %v1336_v52  ;;  %v1333_v53 = vpop.f32.mrb[30].mxu0  ;;  %v1127_v52 = vrot.slane %v5237_v7, 4 }
 0x2e7   : > { %v4262_v54 = vpop.f32.mrb[31].mxu0 }
 0x2e8   : > { %v4701_v55 = vpop.eup %4700  ;;  %v1132_v8 = vsel %vm668_vm3, %v1127_v52, 0 }
 0x2e9   : > { %v659_v58 = vsel %vm652_vm2, %v4701_v55, 0.0 }
 0x2ea   : > { %660 = vadd.xlane.f32.xlu1 %v659_v58 }
 0x2ec   : > { %v1441_v61 = vpop.f32.mrb[32].mxu0 }
 0x2ed   : > { %v4273_v62 = vpop.f32.mrb[33].mxu0  ;;  %v1447_v63 = vsel %vm652_vm2, %v1441_v61, -inf }
 0x2ee   : > { %1448 = vmax.xlane.f32.xlu0 %v1447_v63  ;;  %v1444_v1 = vpop.f32.mrb[34].mxu0 }
 0x2ef   : > { %v4274_v4 = vpop.f32.mrb[35].mxu0 }
 0x34b   : > { %v767_v9 = vpop.xlane.xlu1 %766 }
 0x34c   : > { %v768_v10 = vsub.f32 %v5213_v18, %v767_v9 }
 0x34e   : > { %v769_v11 = vmul.f32 1.442695, %v768_v10 }
 0x350   : > { %4702 = vpow2.f32 %v769_v11 }
 0x353   : > { %v879_v12 = vpop.xlane.xlu0 %878 }
 0x354   : > { %v880_v13 = vsub.f32 %v871_v27, %v879_v12 }
 0x356   : > { %v881_v14 = vmul.f32 1.442695, %v880_v13 }
 0x358   : > { %4704 = vpow2.f32 %v881_v14 }
 0x35a   : > { %v4703_v15 = vpop.eup %4702 }
 0x35b   : > { %v990_v16 = vpop.xlane.xlu0 %989  ;;  %v771_v17 = vsel %vm652_vm2, %v4703_v15, 0.0 }
 0x35c   : > { %v991_v19 = vsub.f32 %v5218_v32, %v990_v16  ;;  %772 = vadd.xlane.f32.xlu0 %v771_v17 }
 0x35e   : > { %v992_v21 = vmul.f32 1.442695, %v991_v19 }
 0x360   : > { %4706 = vpow2.f32 %v992_v21 }
 0x362   : > { %v5245_v25 = vpop.eup %4704 }
 0x363   : > { %v883_v18 = vsel %vm652_vm2, %v5245_v25, 0.0  ;;  %v1117_v28 = vpop.xlane.xlu1 %1116 }
 0x364   : > { %884 = vadd.xlane.f32.xlu1 %v883_v18  ;;  %v1118_v34 = vsub.f32 %v5222_v37, %v1117_v28 }
 0x366   : > { %v1119_v38 = vmul.f32 1.442695, %v1118_v34 }
 0x36a   : > { %v5249_v26 = vpop.eup %4706 }
 0x36b   : > { %v994_v27 = vsel %vm652_vm2, %v5249_v26, 0.0  ;;  %v1227_v35 = vpop.xlane.xlu0 %1226 }
 0x36c   : > { %995 = vadd.xlane.f32.xlu0 %v994_v27  ;;  %v1228_v36 = vsub.f32 %v5226_v45, %v1227_v35 }
 0x36e   : > { %v1229_v41 = vmul.f32 1.442695, %v1228_v36 }
 0x373   : > { %v1338_v29 = vpop.xlane.xlu1 %1337 }
 0x374   : > { %v1339_v39 = vsub.f32 %v5230_v50, %v1338_v29 }
 0x375   : > { %889 = vrot.lane.b32.xlu1 %v5237_v7, %s4928_s14 }
 0x376   : > { %v1340_v42 = vmul.f32 1.442695, %v1339_v39 }
 0x377   : > { %v661_v30 = vpop.xlane.xlu1 %660 }
 0x378   : > { %4708 = vrcp.f32 %v661_v30 }
 0x379   : > { %1000 = vrot.lane.b32.xlu1 %v5237_v7, %s4930_s8  ;;  %4710 = vpow2.f32 %v1119_v38 }
 0x37a   : > { %4712 = vpow2.f32 %v1229_v41 }
 0x37b   : > { %v1449_v40 = vpop.xlane.xlu0 %1448  ;;  %4714 = vpow2.f32 %v1340_v42 }
 0x37c   : > { %v1450_v43 = vsub.f32 %v1441_v61, %v1449_v40 }
 0x37e   : > { %v1451_v44 = vmul.f32 1.442695, %v1450_v43 }
 0x380   : > { %4716 = vpow2.f32 %v1451_v44 }
 0x382   : > { %778 = vrot.lane.b32.xlu0 %v5237_v7, %s4929_s7  ;;  %v4709_v31 = vpop.eup %4708 }
 0x383   : > { %v663_v32 = vmul.f32 %v4709_v31, %v4701_v55  ;;  %v4711_v37 = vpop.eup %4710 }
 0x384   : > { %v5265_v46 = vpop.eup %4712  ;;  %v1121_v47 = vsel %vm652_vm2, %v4711_v37, 0.0 }
 0x385   : > { %v664_v33 = vpack.c.bf16 %v663_v32, %v663_v32  ;;  %v5268_v48 = vpop.eup %4714  ;;  %v1231_v45 = vsel %vm652_vm2, %v5265_v46, 0.0 }
 0x386   : > { %v1342_v49 = vsel %vm652_vm2, %v5268_v48, 0.0 }
 0x387   : > { %4194 = vmatmul.mubr.msk.bf16.vlgmr.msra.gmra.mrb[4].mxu1 %vm652_vm2, %v664_v33 }
 0x388   : > { %4205 = vmatprep.mubr.msk.bf16.mxu1 %vm4927_vm0, %v4926_v20 }
 0x38a   : > { %v5274_v50 = vpop.eup %4716 }
 0x38b   : > { %v1453_v51 = vsel %vm652_vm2, %v5274_v50, 0.0 }
 0x39d   : > { %1122 = vadd.xlane.f32.xlu1 %v1121_v47 }
 0x3a1   : > { %1232 = vadd.xlane.f32.xlu1 %v1231_v45  ;;  %1343 = vadd.xlane.f32.xlu0 %v1342_v49 }
 0x3a5   : > { %1454 = vadd.xlane.f32.xlu1 %v1453_v51 }
 0x3b6   : > { %1348 = vrot.lane.b32.xlu1 %v1127_v52, %s4928_s14 }
 0x3b7   : > { %1237 = vrot.lane.b32.xlu0 %v1127_v52, %s4929_s7 }
 0x3bb   : > { %1459 = vrot.lane.b32.xlu0 %v1127_v52, %s4930_s8 }
 0x3e9   : > { %v773_v53 = vpop.xlane.xlu0 %772 }
 0x3ea   : > { %4718 = vrcp.f32 %v773_v53 }
 0x3f1   : > { %v885_v54 = vpop.xlane.xlu1 %884 }
 0x3f2   : > { %4720 = vrcp.f32 %v885_v54 }
 0x3f4   : > { %v4719_v55 = vpop.eup %4718 }
 0x3f5   : > { %v775_v57 = vmul.f32 %v4719_v55, %v4703_v15  ;;  %v890_v60 = vpop.permute.xlu1 %889 }
 0x3f6   : > { %v895_v63 = vsel %vm668_vm3, %v890_v60, 0 }
 0x3f7   : > { %v776_v61 = vpack.c.bf16 %v775_v57, %v775_v57 }
 0x3f9   : > { %v996_v56 = vpop.xlane.xlu0 %995  ;;  %v1001_v2 = vpop.permute.xlu1 %1000 }
 0x3fa   : > { %4722 = vrcp.f32 %v996_v56  ;;  %v1006_v5 = vsel %vm668_vm3, %v1001_v2, 0 }
 0x3fc   : > { %v4721_v62 = vpop.eup %4720 }
 0x3fd   : > { %v779_v58 = vpop.permute.xlu0 %778  ;;  %v887_v1 = vmul.f32 %v4721_v62, %v5245_v25 }
 0x3fe   : > { %v784_v59 = vsel %vm668_vm3, %v779_v58, 0 }
 0x3ff   : > { %4204 = vmatpush3.bf16.msra.mxu1 %v784_v59  ;;  %v888_v3 = vpack.c.bf16 %v887_v1, %v887_v1 }
 0x400   : > { %4215 = vmatprep.subr.bf16.mxu1 %v4926_v20 }
 0x402   : > { %4206 = vmatmul.mubr.msk.bf16.vlgmr.msra.gmra.mrb[8].mxu1 %vm652_vm2, %v776_v61 }
 0x403   : > { %4216 = vmatpush3.bf16.msra.mxu1 %v895_v63  ;;  %4217 = vmatprep.mubr.msk.bf16.mxu1 %vm4927_vm0, %v4926_v20 }
 0x404   : > { %4227 = vmatprep.subr.bf16.mxu1 %v4926_v20  ;;  %v4723_v4 = vpop.eup %4722 }
 0x405   : > { %v998_v6 = vmul.f32 %v4723_v4, %v5249_v26 }
 0x407   : > { %v999_v7 = vpack.c.bf16 %v998_v6, %v998_v6 }
 0x40a   : > { %4218 = vmatmul.mubr.msk.bf16.vlgmr.msra.gmra.mrb[12].mxu1 %vm652_vm2, %v888_v3 }
 0x40b   : > { %4228 = vmatpush3.bf16.msra.mxu1 %v1006_v5  ;;  %4229 = vmatprep.mubr.msk.bf16.mxu1 %vm4927_vm0, %v4926_v20 }
 0x40c   : > { %4239 = vmatprep.subr.bf16.mxu1 %v4926_v20 }
 0x412   : > { %4230 = vmatmul.mubr.msk.bf16.vlgmr.msra.gmra.mrb[16].mxu1 %vm652_vm2, %v999_v7 }
 0x413   : > { %4240 = vmatpush3.bf16.msra.mxu1 %v1132_v8  ;;  %4241 = vmatprep.mubr.msk.bf16.mxu1 %vm4927_vm0, %v4926_v20 }
 0x414   : > { %4251 = vmatprep.subr.bf16.mxu1 %v4926_v20 }
 0x42a   : > { %v1123_v9 = vpop.xlane.xlu1 %1122 }
 0x42b   : > { %4724 = vrcp.f32 %v1123_v9 }
 0x42e   : > { %v1233_v10 = vpop.xlane.xlu1 %1232  ;;  %v1344_v11 = vpop.xlane.xlu0 %1343 }
 0x42f   : > { %4726 = vrcp.f32 %v1233_v10 }
 0x430   : > { %4728 = vrcp.f32 %v1344_v11 }
 0x432   : > { %v1238_v14 = vpop.permute.xlu0 %1237  ;;  %v1455_v17 = vpop.xlane.xlu1 %1454 }
 0x433   : > { %v1243_v19 = vsel %vm668_vm3, %v1238_v14, 0  ;;  %4730 = vrcp.f32 %v1455_v17 }
 0x435   : > { %v4725_v12 = vpop.eup %4724 }
 0x436   : > { %v1125_v13 = vmul.f32 %v4725_v12, %v4711_v37  ;;  %v1349_v25 = vpop.permute.xlu1 %1348  ;;  %v1460_v29 = vpop.permute.xlu0 %1459 }
 0x437   : > { %v1354_v27 = vsel %vm668_vm3, %v1349_v25, 0  ;;  %v1465_v32 = vsel %vm668_vm3, %v1460_v29, 0 }
 0x438   : > { %v1126_v15 = vpack.c.bf16 %v1125_v13, %v1125_v13 }
 0x439   : > { %v4727_v16 = vpop.eup %4726 }
 0x43a   : > { %4242 = vmatmul.mubr.msk.bf16.vlgmr.msra.gmra.mrb[20].mxu1 %vm652_vm2, %v1126_v15  ;;  %v1235_v21 = vmul.f32 %v4727_v16, %v5265_v46  ;;  %v4729_v26 = vpop.eup %4728 }
 0x43b   : > { %4252 = vmatpush3.bf16.msra.mxu1 %v1243_v19  ;;  %4253 = vmatprep.mubr.msk.bf16.mxu1 %vm4927_vm0, %v4926_v20  ;;  %v1346_v28 = vmul.f32 %v4729_v26, %v5268_v48 }
 0x43c   : > { %4263 = vmatprep.subr.bf16.mxu1 %v4926_v20  ;;  %v1236_v18 = vpack.c.bf16 %v1235_v21, %v1235_v21 }
 0x43d   : > { %v1347_v30 = vpack.c.bf16 %v1346_v28, %v1346_v28  ;;  %v4731_v31 = vpop.eup %4730 }
 0x43e   : > { %v1457_v33 = vmul.f32 %v4731_v31, %v5274_v50 }
 0x440   : > { %v1458_v34 = vpack.c.bf16 %v1457_v33, %v1457_v33 }
 0x442   : > { %4254 = vmatmul.mubr.msk.bf16.vlgmr.msra.gmra.mrb[24].mxu1 %vm652_vm2, %v1236_v18 }
 0x443   : > { %4264 = vmatpush3.bf16.msra.mxu1 %v1354_v27  ;;  %4265 = vmatprep.mubr.msk.bf16.mxu1 %vm4927_vm0, %v4926_v20 }
 0x444   : > { %4275 = vmatprep.subr.bf16.mxu1 %v4926_v20 }
 0x44a   : > { %4266 = vmatmul.mubr.msk.bf16.vlgmr.msra.gmra.mrb[28].mxu1 %vm652_vm2, %v1347_v30  ;;  %v1531_v30 = vsub.s32 1, %v5132_v22 }
 0x44b   : > { %4276 = vmatpush3.bf16.msra.mxu1 %v1465_v32  ;;  %4277 = vmatprep.mubr.msk.bf16.mxu1 %vm4927_vm0, %v4926_v20 }
 0x44c   : > { %v1532_v31 = vrot.slane %v5137_v24, %v1531_v30 }
 0x452   : > { %4278 = vmatmul.mubr.msk.bf16.vlgmr.msra.gmra.mrb[32].mxu1 %vm652_vm2, %v1458_v34 }
 0x453   : > { %1764 = vmatprep.mubr.bf16.mxu1 %v4925_v0 }
 0x45a   : > { %v706_v35 = vpop.f32.mrb[4].mxu1 }
 0x45b   : > { %v4195_v36 = vpop.f32.mrb[5].mxu1  ;;  %v712_v17 = vpack.c.bf16 %v706_v35, %v706_v35 }
 0x45c   : > { %v709_v38 = vpop.f32.mrb[6].mxu1 }
 0x45d   : > { %v4196_v39 = vpop.f32.mrb[7].mxu1 }
 0x45e   : > { %v4780_v39 = vld [vmem:[%s5119_s9] sm:$0xff] }
 0x4d5   : > { %v820_v40 = vpop.f32.mrb[8].mxu1 }
 0x4d6   : > { %v826_v41 = vpack.c.bf16 %v820_v40, %v820_v40  ;;  %v4207_v42 = vpop.f32.mrb[9].mxu1 }
 0x4d7   : > { %v823_v43 = vpop.f32.mrb[10].mxu1 }
 0x4d8   : > { %1050 = vrot.lane.b32.xlu0 %v826_v41, %s4930_s8  ;;  %v4208_v44 = vpop.f32.mrb[11].mxu1  ;;  %v4781_v41 = vld [vmem:[%s5119_s9 + $0x8] sm:$0xff]  ;;  %v4564_v43 = vld [vmem:[#allocation2 + $0x10] ss:$24 sps:$4 sm:$0xff]  }
 0x4d9   : > { %v4566_v44 = vld [vmem:[#allocation2 + $0x14] ss:$24 sps:$4 sm:$0xff]  }
 0x4da   : > { %1732 = vmatprep.subr.bf16.mxu1 %v4566_v44  ;;  %v5362_v44 = vld [vmem:[#allocation7] sm:$0xff] }
 0x4db   : > { %1733 = vmatpush1.bf16.msra.mxu1 %v4564_v43  ;;  %v4603_v43 = vld [vmem:[#allocation4 + $0x38] sm:$0xff]  }
 0x4dd   : > { %v931_v37 = vpop.f32.mrb[12].mxu1 }
 0x4de   : > { %v4219_v46 = vpop.f32.mrb[13].mxu1  ;;  %v937_v61 = vpack.c.bf16 %v931_v37, %v931_v37  ;;  %v4569_v37 = vld [vmem:[#allocation2 + $0x44] ss:$24 sps:$4 sm:$0xff]  }
 0x4df   : > { %v934_v47 = vpop.f32.mrb[14].mxu1  ;;  %v4567_v46 = vld [vmem:[#allocation2 + $0x40] ss:$24 sps:$4 sm:$0xff]   ;;  %1734 = vmatprep.subr.bf16.mxu1 %v4569_v37 }
 0x4e0   : > { %v4220_v48 = vpop.f32.mrb[15].mxu1  ;;  %1735 = vmatpush1.bf16.msra.mxu1 %v4567_v46  ;;  %v4783_v46 = vld [vmem:[#allocation7 + $0x8] sm:$0xff] }
 0x4e5   : > { %v1042_v45 = vpop.f32.mrb[16].mxu1 }
 0x4e6   : > { %v4231_v49 = vpop.f32.mrb[17].mxu1  ;;  %v1048_v9 = vpack.c.bf16 %v1042_v45, %v1042_v45 }
 0x4e7   : > { %v1045_v50 = vpop.f32.mrb[18].mxu1 }
 0x4e8   : > { %v4232_v51 = vpop.f32.mrb[19].mxu1 }
 0x50d   : > { %v1168_v52 = vpop.f32.mrb[20].mxu1 }
 0x50e   : > { %v4243_v53 = vpop.f32.mrb[21].mxu1  ;;  %v1174_v13 = vpack.c.bf16 %v1168_v52, %v1168_v52 }
 0x50f   : > { %v1171_v54 = vpop.f32.mrb[22].mxu1 }
 0x510   : > { %v4244_v55 = vpop.f32.mrb[23].mxu1  ;;  %v4572_v54 = vld [vmem:[#allocation2 + $0x74] ss:$24 sps:$4 sm:$0xff]  }
 0x511   : > { %v4570_v55 = vld [vmem:[#allocation2 + $0x70] ss:$24 sps:$4 sm:$0xff]   ;;  %1736 = vmatprep.subr.bf16.mxu1 %v4572_v54 }
 0x512   : > { %1737 = vmatpush1.bf16.msra.mxu1 %v4570_v55 }
 0x515   : > { %v1279_v56 = vpop.f32.mrb[24].mxu1 }
 0x516   : > { %v1285_v57 = vpack.c.bf16 %v1279_v56, %v1279_v56  ;;  %v4255_v58 = vpop.f32.mrb[25].mxu1  ;;  %v4575_v56 = vld [vmem:[#allocation2 + $0xa4] ss:$24 sps:$4 sm:$0xff]  }
 0x517   : > { %v1282_v59 = vpop.f32.mrb[26].mxu1  ;;  %1738 = vmatprep.subr.bf16.mxu1 %v4575_v56  ;;  %v4578_v58 = vld [vmem:[#allocation2 + $0xd4] ss:$24 sps:$4 sm:$0xff]  }
 0x518   : > { %1509 = vrot.lane.b32.xlu0 %v1285_v57, %s4930_s8  ;;  %v4256_v60 = vpop.f32.mrb[27].mxu1  ;;  %v4573_v57 = vld [vmem:[#allocation2 + $0xa0] ss:$24 sps:$4 sm:$0xff]   ;;  %v4576_v59 = vld [vmem:[#allocation2 + $0xd0] ss:$24 sps:$4 sm:$0xff]  }
 0x519   : > { %1739 = vmatpush1.bf16.msra.mxu1 %v4573_v57  ;;  %v4581_v60 = vld [vmem:[#allocation2 + $0x104] ss:$24 sps:$4 sm:$0xff]  }
 0x51a   : > { %1740 = vmatprep.subr.bf16.mxu1 %v4578_v58 }
 0x51c   : > { %1053 = vrot.lane.b32.xlu0 %v937_v61, %s4928_s14  ;;  %v4579_v61 = vld [vmem:[#allocation2 + $0x100] ss:$24 sps:$4 sm:$0xff]  }
 0x51d   : > { %v1390_v62 = vpop.f32.mrb[28].mxu1  ;;  %1741 = vmatpush1.bf16.msra.mxu1 %v4576_v59 }
 0x51e   : > { %v1396_v63 = vpack.c.bf16 %v1390_v62, %v1390_v62  ;;  %v4267_v1 = vpop.f32.mrb[29].mxu1  ;;  %1742 = vmatprep.subr.bf16.mxu1 %v4581_v60  ;;  %v4584_v62 = vld [vmem:[#allocation2 + $0x134] ss:$24 sps:$4 sm:$0xff]  }
 0x51f   : > { %v1393_v2 = vpop.f32.mrb[30].mxu1  ;;  %v4587_v1 = vld [vmem:[#allocation2 + $0x164] ss:$24 sps:$4 sm:$0xff]  }
 0x520   : > { %1512 = vrot.lane.b32.xlu1 %v1396_v63, %s4928_s14  ;;  %v4268_v3 = vpop.f32.mrb[31].mxu1  ;;  %v4582_v63 = vld [vmem:[#allocation2 + $0x130] ss:$24 sps:$4 sm:$0xff]   ;;  %v4585_v2 = vld [vmem:[#allocation2 + $0x160] ss:$24 sps:$4 sm:$0xff]  }
 0x521   : > { %1743 = vmatpush1.bf16.msra.mxu1 %v4579_v61  ;;  %v4588_v3 = vld [vmem:[#allocation4 + $0x40] sm:$0xff]   ;;  %v1783_v61 = vsub.s32 3, %v5132_v22 }
 0x522   : > { %1744 = vmatprep.subr.bf16.mxu1 %v4584_v62  ;;  %4062 = vmatprep.subr.bf16.mxu0 %v4588_v3 }
 0x525   : > { %v1501_v4 = vpop.f32.mrb[32].mxu1  ;;  %1745 = vmatpush1.bf16.msra.mxu1 %v4582_v63  ;;  %v1784_v63 = vrot.slane %v5362_v44, %v1783_v61 }
 0x526   : > { %v1507_v5 = vpack.c.bf16 %v1501_v4, %v1501_v4  ;;  %v4279_v6 = vpop.f32.mrb[33].mxu1  ;;  %1746 = vmatprep.subr.bf16.mxu1 %v4587_v1  ;;  %v4589_v4 = vld [vmem:[#allocation4] sm:$0xff]  }
 0x527   : > { %v1504_v7 = vpop.f32.mrb[34].mxu1  ;;  %v4591_v6 = vld [vmem:[#allocation4 + $0x8] sm:$0xff]  }
 0x528   : > { %1515 = vrot.lane.b32.xlu1 %v1507_v5, %s4929_s7  ;;  %v4280_v8 = vpop.f32.mrb[35].mxu1  ;;  %v4590_v5 = vld [vmem:[#allocation4 + $0x48] sm:$0xff]   ;;  %v4592_v7 = vld [vmem:[#allocation4 + $0x50] sm:$0xff]  }
 0x529   : > { %1747 = vmatpush1.bf16.msra.mxu1 %v4585_v2  ;;  %v4593_v8 = vld [vmem:[#allocation4 + $0x10] sm:$0xff]  }
 0x52c   : > { %1056 = vrot.lane.b32.xlu1 %v1048_v9, %s4929_s7  ;;  %v4594_v9 = vld [vmem:[#allocation4 + $0x58] sm:$0xff]  }
 0x54a   : > { %v1051_v10 = vpop.permute.xlu0 %1050 }
 0x54b   : > { %v1060_v25 = vsel %vm605_vm1, %v712_v17, %v1051_v10  ;;  %v4595_v10 = vld [vmem:[#allocation4 + $0x18] sm:$0xff]  }
 0x58a   : > { %v1510_v11 = vpop.permute.xlu0 %1509 }
 0x58b   : > { %v1519_v14 = vsel %vm605_vm1, %v1174_v13, %v1510_v11  ;;  %v4596_v11 = vld [vmem:[#allocation4 + $0x60] sm:$0xff]   ;;  %v4598_v13 = vld [vmem:[#allocation4 + $0x68] sm:$0xff]  }
 0x58e   : > { %v1054_v19 = vpop.permute.xlu0 %1053 }
 0x58f   : > { %v1063_v18 = vsel %vm1061_vm5, %v1060_v25, %v1054_v19  ;;  %v1633_v25 = vsub.s32 4, %v5132_v22 }
 0x592   : > { %v1513_v12 = vpop.permute.xlu1 %1512 }
 0x593   : > { %v1521_v15 = vsel %vm1061_vm5, %v1519_v14, %v1513_v12  ;;  %v4597_v12 = vld [vmem:[#allocation4 + $0x20] sm:$0xff]  }
 0x59a   : > { %v1516_v16 = vpop.permute.xlu1 %1515 }
 0x59b   : > { %v1523_v21 = vsel %vm1064_vm4, %v1521_v15, %v1516_v16 }
 0x59c   : > { %v1525_v26 = vrot.slane %v1523_v21, 4 }
 0x59e   : > { %v1057_v27 = vpop.permute.xlu1 %1056 }
 0x59f   : > { %v1066_v28 = vsel %vm1064_vm4, %v1063_v18, %v1057_v27  ;;  %v1634_v27 = vrot.slane %v5137_v24, %v1633_v25 }
 0x5a0   : > { %v1527_v29 = vsel %vm668_vm3, %v1066_v28, %v1525_v26  ;;  %v1639_v28 = vsub.s32 5, %v5132_v22 }
 0x5a1   : > { %4298 = vmatmul.mubr.bf16.vlgmr.msra.gmra.mrb[36].mxu0 %v1527_v29 }
 0x5a2   : > { %4063 = vmatpush3.bf16.msra.mxu0 %v4589_v4 }
 0x5a3   : > { %4064 = vmatprep.subr.bf16.mxu0 %v4590_v5 }
 0x5a6   : > { %4065 = vmatpush3.bf16.msra.mxu0 %v4591_v6 }
 0x5a7   : > { %4066 = vmatprep.subr.bf16.mxu0 %v4592_v7 }
 0x5aa   : > { %4067 = vmatpush3.bf16.msra.mxu0 %v4593_v8 }
 0x5ab   : > { %4068 = vmatprep.subr.bf16.mxu0 %v4594_v9 }
 0x5ae   : > { %4069 = vmatpush3.bf16.msra.mxu0 %v4595_v10  ;;  %v4604_v10 = vld [vmem:[#allocation2 + $0x180] ss:$24 sps:$4 sm:$0xff]  }
 0x5af   : > { %4070 = vmatprep.subr.bf16.mxu0 %v4596_v11  ;;  %v4606_v11 = vld [vmem:[#allocation2 + $0x184] ss:$24 sps:$4 sm:$0xff]  }
 0x5b0   : > { %2181 = vmatprep.subr.bf16.mxu1 %v4606_v11 }
 0x5b2   : > { %4071 = vmatpush3.bf16.msra.mxu0 %v4597_v12  ;;  %v4607_v12 = vld [vmem:[#allocation2 + $0x188] ss:$24 sps:$4 sm:$0xff]  }
 0x5b3   : > { %4072 = vmatprep.subr.bf16.mxu0 %v4598_v13  ;;  %v4611_v13 = vld [vmem:[#allocation2 + $0x1b4] ss:$24 sps:$4 sm:$0xff]  }
 0x674   : > { %v1599_v32 = vpop.f32.mrb[36].mxu0 }
 0x675   : > { %v1600_v33 = vadd.f32 %v1599_v32, %v1532_v31  ;;  %v4299_v34 = vpop.f32.mrb[37].mxu0 }
 0x676   : > { %v1602_v35 = vpop.f32.mrb[38].mxu0 }
 0x677   : > { %v1603_v36 = vadd.f32 %v1602_v35, %v1532_v31  ;;  %v4300_v38 = vpop.f32.mrb[39].mxu0  ;;  %v1606_v40 = vadd.f32 %v4780_v39, %v1600_v33  ;;  %v1640_v33 = vrot.slane %v5137_v24, %v1639_v28  ;;  %v4599_v39 = vld [vmem:[#allocation4 + $0x28] sm:$0xff]   ;;  %v5360_v24 = vsub.s32 2, %v5132_v22 }
 0x678   : > { %4073 = vmatpush3.bf16.msra.mxu0 %v4599_v39  ;;  %v4624_v39 = vld [vmem:[#allocation2 + $0x240] ss:$24 sps:$4 sm:$0xff]  }
 0x679   : > { %1608 = vadd.xlane.f32.xlu0 %v1606_v40  ;;  %v1607_v42 = vadd.f32 %v4781_v41, %v1603_v36  ;;  %v4601_v41 = vld [vmem:[#allocation4 + $0x30] sm:$0xff]   ;;  %v1647_v37 = vrot.slane %v5362_v44, %v5360_v24 }
 0x67b   : > { %1610 = vadd.xlane.f32.xlu1 %v1607_v42 }
 0x706   : > { %v1609_v47 = vpop.xlane.xlu0 %1608 }
 0x707   : > { %v1613_v48 = vmul.f32 0.0078125, %v1609_v47  ;;  %v1651_v47 = vrot.slane %v4783_v46, %v5360_v24  ;;  %v4634_v46 = vld [vmem:[#allocation2 + $0x2a0] ss:$24 sps:$4 sm:$0xff]  }
 0x708   : > { %v1611_v45 = vpop.xlane.xlu1 %1610 }
 0x709   : > { %v5339_v49 = vsub.f32 %v1606_v40, %v1613_v48  ;;  %v1614_v50 = vmul.f32 0.0078125, %v1611_v45  ;;  %v4600_v40 = vld [vmem:[#allocation4 + $0x70] sm:$0xff]  }
 0x70a   : > { %4074 = vmatprep.subr.bf16.mxu0 %v4600_v40  ;;  %v4627_v40 = vld [vmem:[#allocation2 + $0x248] ss:$24 sps:$4 sm:$0xff]  }
 0x70b   : > { %v5341_v51 = vsub.f32 %v1607_v42, %v1614_v50  ;;  %v1617_v52 = vmul.f32 %v5339_v49, %v5339_v49  ;;  %4075 = vmatpush3.bf16.msra.mxu0 %v4601_v41  ;;  %v4602_v42 = vld [vmem:[#allocation4 + $0x78] sm:$0xff]   ;;  %v4631_v41 = vld [vmem:[#allocation2 + $0x274] ss:$24 sps:$4 sm:$0xff]  }
 0x70c   : > { %4076 = vmatprep.subr.bf16.mxu0 %v4602_v42  ;;  %v4629_v42 = vld [vmem:[#allocation2 + $0x270] ss:$24 sps:$4 sm:$0xff]  }
 0x70d   : > { %1619 = vadd.xlane.f32.xlu0 %v1617_v52  ;;  %v1618_v53 = vmul.f32 %v5341_v51, %v5341_v51 }
 0x70f   : > { %4077 = vmatpush3.bf16.msra.mxu0 %v4603_v43  ;;  %v4632_v43 = vld [vmem:[#allocation2 + $0x278] ss:$24 sps:$4 sm:$0xff]  }
 0x710   : > { %4301 = vmatprep.subr.bf16.mxu0 %v4926_v20 }
 0x711   : > { %1621 = vadd.xlane.f32.xlu0 %v1618_v53 }
 0x79a   : > { %v1620_v14 = vpop.xlane.xlu0 %1619 }
 0x79b   : > { %v1623_v15 = vmul.f32 0.0078125, %v1620_v14  ;;  %v4612_v14 = vld [vmem:[#allocation2 + $0x1b8] ss:$24 sps:$4 sm:$0xff]  }
 0x79d   : > { %v1625_v16 = vadd.f32 1e-05, %v1623_v15  ;;  %v4609_v15 = vld [vmem:[#allocation2 + $0x1b0] ss:$24 sps:$4 sm:$0xff]  }
 0x79e   : > { %v1622_v17 = vpop.xlane.xlu0 %1621 }
 0x79f   : > { %4732 = vrsqrt.f32 %v1625_v16  ;;  %v1624_v19 = vmul.f32 0.0078125, %v1622_v17 }
 0x7a1   : > { %v1626_v21 = vadd.f32 1e-05, %v1624_v19 }
 0x7a3   : > { %4734 = vrsqrt.f32 %v1626_v21 }
 0x7a9   : > { %v4733_v18 = vpop.eup %4732 }
 0x7aa   : > { %v1629_v26 = vmul.f32 %v4733_v18, %v5339_v49 }
 0x7ac   : > { %v1635_v32 = vmul.f32 %v1634_v27, %v1629_v26 }
 0x7ad   : > { %v4735_v29 = vpop.eup %4734 }
 0x7ae   : > { %v1630_v31 = vmul.f32 %v4735_v29, %v5341_v51  ;;  %v1641_v35 = vadd.f32 %v1640_v33, %v1635_v32  ;;  %v4614_v32 = vld [vmem:[#allocation2 + $0x1e0] ss:$24 sps:$4 sm:$0xff]  }
 0x7b0   : > { %v1636_v34 = vmul.f32 %v1634_v27, %v1630_v31  ;;  %v4616_v31 = vld [vmem:[#allocation2 + $0x1e4] ss:$24 sps:$4 sm:$0xff]  }
 0x7b2   : > { %v1642_v36 = vadd.f32 %v1640_v33, %v1636_v34  ;;  %v4617_v33 = vld [vmem:[#allocation2 + $0x1e8] ss:$24 sps:$4 sm:$0xff]   ;;  %v4621_v34 = vld [vmem:[#allocation2 + $0x214] ss:$24 sps:$4 sm:$0xff]  }
 0x7b4   : > { %v1643_v38 = vpack.c.bf16 %v1642_v36, %v1641_v35 }
 0x7b6   : > { %1765 = vmatmul.mubr.bf16.vlgmr.msra.gmra.mrb[36].mxu1 %v1643_v38  ;;  %v4626_v38 = vld [vmem:[#allocation2 + $0x244] ss:$24 sps:$4 sm:$0xff]  }
 0x7b7   : > { %2213 = vmatprep.mubr.bf16.mxu1 %v4925_v0  ;;  %2182 = vmatpush1.bf16.msra.mxu1 %v4604_v10 }
 0x7b8   : > { %2183 = vmatprep.subr.bf16.mxu1 %v4611_v13 }
 0x7bb   : > { %2184 = vmatpush1.bf16.msra.mxu1 %v4609_v15 }
 0x7bc   : > { %2185 = vmatprep.subr.bf16.mxu1 %v4616_v31 }
 0x7bf   : > { %2186 = vmatpush1.bf16.msra.mxu1 %v4614_v32 }
 0x7c0   : > { %2187 = vmatprep.subr.bf16.mxu1 %v4621_v34 }
 0x889   : > { %v1766_v48 = vpop.f32.mrb[36].mxu1 }
 0x88a   : > { %v1767_v45 = vadd.f32 %v1766_v48, %v1647_v37  ;;  %v1768_v49 = vpop.f32.mrb[37].mxu1  ;;  %v4641_v48 = vld [vmem:[#allocation2 + $0x2d4] ss:$24 sps:$4 sm:$0xff]  }
 0x88b   : > { %v1769_v50 = vadd.f32 %v1768_v49, %v1651_v47  ;;  %v1770_v51 = vpop.f32.mrb[38].mxu1  ;;  %v4642_v49 = vld [vmem:[#allocation2 + $0x2d8] ss:$24 sps:$4 sm:$0xff]  }
 0x88c   : > { %v1771_v52 = vadd.f32 %v1770_v51, %v1647_v37  ;;  %v1772_v53 = vpop.f32.mrb[39].mxu1  ;;  %v1775_v55 = vmax.f32 %v1767_v45, 0.0  ;;  %v4636_v37 = vld [vmem:[#allocation2 + $0x2a4] ss:$24 sps:$4 sm:$0xff]   ;;  %v4639_v45 = vld [vmem:[#allocation2 + $0x2d0] ss:$24 sps:$4 sm:$0xff]  }
 0x88d   : > { %v1773_v54 = vadd.f32 %v1772_v53, %v1651_v47  ;;  %v1776_v57 = vmax.f32 %v1769_v50, 0.0  ;;  %v4637_v47 = vld [vmem:[#allocation2 + $0x2a8] ss:$24 sps:$4 sm:$0xff]  }
 0x88e   : > { %v1777_v56 = vmax.f32 %v1771_v52, 0.0 }
 0x88f   : > { %v1778_v58 = vmax.f32 %v1773_v54, 0.0 }
 0x890   : > { %v1779_v59 = vpack.c.bf16 %v1777_v56, %v1775_v55  ;;  %v1948_v56 = vsub.s32 6, %v5132_v22 }
 0x891   : > { %v1780_v60 = vpack.c.bf16 %v1778_v58, %v1776_v57  ;;  %v1954_v58 = vsub.s32 7, %v5132_v22 }
 0x892   : > { %v1949_v57 = vrot.slane %v5362_v44, %v1948_v56 }
 0x893   : > { %1913 = vmatprep.mubr.bf16.mxu0 %v1780_v60 }
 0x894   : > { %1914 = vmatmul.mubr.bf16.vlgmr.msra.gmra.mrb[40].mxu0 %v1779_v59 }
 0x895   : > { %4317 = vmatprep.mubr.msk.bf16.mxu0 %vm4927_vm0, %v4926_v20  ;;  %4302 = vmatpush3.bf16.msra.mxu0 %v4607_v12 }
 0x896   : > { %4303 = vmatprep.subr.bf16.mxu0 %v4926_v20 }
 0x899   : > { %4304 = vmatpush3.bf16.msra.mxu0 %v4612_v14 }
 0x89a   : > { %4305 = vmatprep.subr.bf16.mxu0 %v4926_v20 }
 0x89d   : > { %4306 = vmatpush3.bf16.msra.mxu0 %v4617_v33 }
 0x89e   : > { %4307 = vmatprep.subr.bf16.mxu0 %v4926_v20 }
 0x967   : > { %v4078_v62 = vpop.f32.mrb[40].mxu0 }
 0x968   : > { %v4079_v1 = vpop.f32.mrb[41].mxu0 }
 0x969   : > { %v4080_v2 = vadd.f32 %v4079_v1, %v4078_v62  ;;  %v4081_v3 = vpop.f32.mrb[42].mxu0 }
 0x96a   : > { %v4082_v4 = vpop.f32.mrb[43].mxu0 }
 0x96b   : > { %v1916_v5 = vadd.f32 %v4080_v2, %v1784_v63  ;;  %v4083_v6 = vadd.f32 %v4082_v4, %v4081_v3  ;;  %v1955_v2 = vrot.slane %v5362_v44, %v1954_v58  ;;  %v5402_v44 = vld [vmem:[#allocation7 + $0x20] sm:$0xff] }
 0x96c   : > { %v2048_v13 = vrot.slane %v5402_v44, %v5135_v23 }
 0x96d   : > { %v1919_v7 = vadd.f32 %v4083_v6, %v1784_v63  ;;  %v1922_v8 = vadd.f32 %v1916_v5, %v1641_v35  ;;  %v4619_v35 = vld [vmem:[#allocation2 + $0x210] ss:$24 sps:$4 sm:$0xff]  }
 0x96e   : > { %2188 = vmatpush1.bf16.msra.mxu1 %v4619_v35 }
 0x96f   : > { %1924 = vadd.xlane.f32.xlu1 %v1922_v8  ;;  %v1923_v9 = vadd.f32 %v1919_v7, %v1642_v36  ;;  %v4622_v36 = vld [vmem:[#allocation2 + $0x218] ss:$24 sps:$4 sm:$0xff]   ;;  %2189 = vmatprep.subr.bf16.mxu1 %v4626_v38 }
 0x970   : > { %4308 = vmatpush3.bf16.msra.mxu0 %v4622_v36  ;;  %v5400_v7 = vld [vmem:[#allocation7 + $0x18] sm:$0xff] }
 0x971   : > { %1926 = vadd.xlane.f32.xlu0 %v1923_v9  ;;  %4309 = vmatprep.subr.bf16.mxu0 %v4926_v20 }
 0x972   : > { %2190 = vmatpush1.bf16.msra.mxu1 %v4624_v39 }
 0x973   : > { %2191 = vmatprep.subr.bf16.mxu1 %v4631_v41 }
 0x974   : > { %4310 = vmatpush3.bf16.msra.mxu0 %v4627_v40 }
 0x975   : > { %4311 = vmatprep.subr.bf16.mxu0 %v4926_v20 }
 0x976   : > { %2192 = vmatpush1.bf16.msra.mxu1 %v4629_v42 }
 0x977   : > { %2193 = vmatprep.subr.bf16.mxu1 %v4636_v37 }
 0x978   : > { %4312 = vmatpush3.bf16.msra.mxu0 %v4632_v43 }
 0x979   : > { %4313 = vmatprep.subr.bf16.mxu0 %v4926_v20 }
 0x97a   : > { %2194 = vmatpush1.bf16.msra.mxu1 %v4634_v46 }
 0x97b   : > { %2195 = vmatprep.subr.bf16.mxu1 %v4641_v48 }
 0x97c   : > { %4314 = vmatpush3.bf16.msra.mxu0 %v4637_v47 }
 0x97d   : > { %4315 = vmatprep.subr.bf16.mxu0 %v4926_v20 }
 0x97e   : > { %2196 = vmatpush1.bf16.msra.mxu1 %v4639_v45 }
 0x97f   : > { %4321 = vmatprep.subr.bf16.mxu1 %v4926_v20 }
 0x980   : > { %4316 = vmatpush3.bf16.msra.mxu0 %v4642_v49 }
 0x981   : > { %4345 = vmatprep.subr.bf16.mxu0 %v4926_v20 }
 0x9fc   : > { %v1925_v16 = vpop.xlane.xlu1 %1924 }
 0x9fd   : > { %v1928_v17 = vmul.f32 0.0078125, %v1925_v16 }
 0x9fe   : > { %v1927_v19 = vpop.xlane.xlu0 %1926 }
 0x9ff   : > { %v1930_v21 = vsub.f32 %v1922_v8, %v1928_v17  ;;  %v1929_v18 = vmul.f32 0.0078125, %v1927_v19  ;;  %v295_v8 = vld [vmem:[#allocation7 + $0x28] sm:$0xff] }
 0xa00   : > { %v2052_v10 = vrot.slane %v295_v8, %v5135_v23 }
 0xa01   : > { %v1931_v26 = vsub.f32 %v1923_v9, %v1929_v18  ;;  %v1932_v27 = vmul.f32 %v1930_v21, %v1930_v21  ;;  %v2044_v9 = vrot.slane %v5400_v7, %v5135_v23 }
 0xa03   : > { %1934 = vadd.xlane.f32.xlu1 %v1932_v27  ;;  %v1933_v29 = vmul.f32 %v1931_v26, %v1931_v26 }
 0xa05   : > { %1936 = vadd.xlane.f32.xlu0 %v1933_v29 }
 0xa90   : > { %v1935_v50 = vpop.xlane.xlu1 %1934 }
 0xa91   : > { %v1938_v51 = vmul.f32 0.0078125, %v1935_v50 }
 0xa92   : > { %v1937_v52 = vpop.xlane.xlu0 %1936 }
 0xa93   : > { %v1940_v53 = vadd.f32 1e-05, %v1938_v51  ;;  %v1939_v54 = vmul.f32 0.0078125, %v1937_v52 }
 0xa95   : > { %4736 = vrsqrt.f32 %v1940_v53  ;;  %v1941_v55 = vadd.f32 1e-05, %v1939_v54 }
 0xa97   : > { %4738 = vrsqrt.f32 %v1941_v55 }
 0xa9f   : > { %v4737_v59 = vpop.eup %4736 }
 0xaa0   : > { %v1944_v60 = vmul.f32 %v4737_v59, %v1930_v21 }
 0xaa1   : > { %v4739_v62 = vpop.eup %4738 }
 0xaa2   : > { %v1945_v63 = vmul.f32 %v4739_v62, %v1931_v26  ;;  %v1950_v1 = vmul.f32 %v1949_v57, %v1944_v60 }
 0xaa4   : > { %v1951_v3 = vmul.f32 %v1949_v57, %v1945_v63  ;;  %v5390_v4 = vadd.f32 %v1955_v2, %v1950_v1 }
 0xaa6   : > { %v5392_v5 = vadd.f32 %v1955_v2, %v1951_v3 }
 0xaa8   : > { %v2040_v6 = vpack.c.bf16 %v5392_v5, %v5390_v4 }
 0xaaa   : > { %2214 = vmatmul.mubr.bf16.vlgmr.msra.gmra.mrb[40].mxu1 %v2040_v6  ;;  %4318 = vmatmul.mubr.bf16.vlgmr.msra.gmra.mrb[44].mxu0 %v2040_v6 }
 0xaab   : > { %4323 = vmatprep.mubr.msk.bf16.mxu1 %vm4927_vm0, %v4926_v20  ;;  %4347 = vmatprep.mubr.msk.bf16.mxu0 %vm4927_vm0, %v4926_v20 }
 0xb7d   : > { %v2215_v11 = vpop.f32.mrb[40].mxu1  ;;  %v2258_v12 = vpop.f32.mrb[44].mxu0 }
 0xb7e   : > { %v2217_v14 = vpop.f32.mrb[41].mxu1  ;;  %v4319_v15 = vpop.f32.mrb[45].mxu0  ;;  %v2216_v19 = vadd.f32 %v2215_v11, %v2044_v9  ;;  %v2259_v21 = vadd.f32 %v2258_v12, %v2052_v10 }
 0xb7f   : > { %v2219_v16 = vpop.f32.mrb[42].mxu1  ;;  %v2261_v17 = vpop.f32.mrb[46].mxu0  ;;  %v2218_v31 = vadd.f32 %v2217_v14, %v2048_v13 }
 0xb80   : > { %v2220_v18 = vadd.f32 %v2219_v16, %v2044_v9  ;;  %v2262_v26 = vadd.f32 %v2261_v17, %v2052_v10  ;;  %v2221_v27 = vpop.f32.mrb[43].mxu1  ;;  %v4320_v29 = vpop.f32.mrb[47].mxu0 }
 0xb81   : > { %v2222_v32 = vadd.f32 %v2221_v27, %v2048_v13 }
 0xb82   : > { %v2265_v33 = vpack.c.bf16 %v2220_v18, %v2216_v19  ;;  %v5409_v34 = vpack.c.bf16 %v2262_v26, %v2259_v21 }
 0xb83   : > { %v2266_v35 = vpack.c.bf16 %v2222_v32, %v2218_v31 }
 0xb84   : > { %v2330_v23 = vsel %vm668_vm3, %v5409_v34, 0  ;;  %v2725_v43 = vrot.slane %v2265_v33, 4 }
 0xb85   : > { %v2272_v36 = vsel %vm605_vm1, %v2266_v35, 0  ;;  %v2726_v53 = vrot.slane %v2266_v35, 4 }
 0xb86   : > { %4322 = vmatpush3.bf16.xpose.msra.mxu1 %v2272_v36 }
 0xb87   : > { %4327 = vmatprep.subr.bf16.mxu1 %v4926_v20  ;;  %v2731_v3 = vsel %vm605_vm1, %v2726_v53, 0 }
 0xb8d   : > { %4324 = vmatmul.mubr.msk.bf16.vlgmr.msra.gmra.mrb[44].mxu1 %vm605_vm1, %v2265_v33 }
 0xb8e   : > { %4328 = vmatpush3.bf16.msra.mxu1 %v2330_v23  ;;  %4329 = vmatprep.mubr.msk.bf16.mxu1 %vm4927_vm0, %v4926_v20 }
 0xb8f   : > { %4333 = vmatprep.subr.bf16.mxu1 %v4926_v20 }
 0xc60   : > { %v2308_v38 = vpop.f32.mrb[44].mxu1 }
 0xc61   : > { %v4325_v39 = vpop.f32.mrb[45].mxu1  ;;  %v2314_v40 = vsel %vm652_vm2, %v2308_v38, -inf }
 0xc62   : > { %2315 = vmax.xlane.f32.xlu1 %v2314_v40  ;;  %v2311_v41 = vpop.f32.mrb[46].mxu1 }
 0xc63   : > { %v4326_v42 = vpop.f32.mrb[47].mxu1 }
 0xc73   : > { %2377 = vrot.lane.b32.xlu1 %v2266_v35, %s4929_s7 }
 0xc77   : > { %2489 = vrot.lane.b32.xlu1 %v2266_v35, %s4928_s14 }
 0xc7b   : > { %2487 = vrot.lane.b32.xlu1 %v2265_v33, %s4928_s14 }
 0xc7f   : > { %2598 = vrot.lane.b32.xlu1 %v2265_v33, %s4930_s8 }
 0xc83   : > { %2833 = vrot.lane.b32.xlu1 %v2725_v43, %s4929_s7 }
 0xc87   : > { %2944 = vrot.lane.b32.xlu1 %v2725_v43, %s4928_s14 }
 0xc8b   : > { %3055 = vrot.lane.b32.xlu1 %v2725_v43, %s4930_s8 }
 0xcef   : > { %v2316_v37 = vpop.xlane.xlu1 %2315 }
 0xcf0   : > { %v2317_v46 = vsub.f32 %v2308_v38, %v2316_v37 }
 0xcf2   : > { %v2318_v47 = vmul.f32 1.442695, %v2317_v46 }
 0xcf3   : > { %v2378_v48 = vpop.permute.xlu1 %2377 }
 0xcf4   : > { %4740 = vpow2.f32 %v2318_v47  ;;  %v2383_v1 = vsel %vm605_vm1, %v2378_v48, 0 }
 0xcf7   : > { %v2490_v45 = vpop.permute.xlu1 %2489 }
 0xcf8   : > { %v2495_v49 = vsel %vm605_vm1, %v2490_v45, 0 }
 0xcf9   : > { %4346 = vmatpush3.bf16.xpose.msra.mxu0 %v2495_v49 }
 0xcfa   : > { %4357 = vmatprep.subr.bf16.mxu0 %v4926_v20 }
 0xcfb   : > { %v2488_v51 = vpop.permute.xlu1 %2487 }
 0xcfe   : > { %v4741_v50 = vpop.eup %4740 }
 0xcff   : > { %v2320_v52 = vsel %vm652_vm2, %v4741_v50, 0.0  ;;  %v2599_v2 = vpop.permute.xlu1 %2598 }
 0xd00   : > { %2321 = vadd.xlane.f32.xlu0 %v2320_v52  ;;  %4348 = vmatmul.mubr.msk.bf16.vlgmr.msra.gmra.mrb[48].mxu0 %vm605_vm1, %v2488_v51 }
 0xd01   : > { %4359 = vmatprep.mubr.msk.bf16.mxu0 %vm4927_vm0, %v4926_v20 }
 0xd03   : > { %v2834_v10 = vpop.permute.xlu1 %2833 }
 0xd07   : > { %v2945_v13 = vpop.permute.xlu1 %2944 }
 0xd0b   : > { %v3056_v15 = vpop.permute.xlu1 %3055 }
 0xd16   : > { %2374 = vrot.lane.b32.xlu0 %v2265_v33, %s4929_s7 }
 0xd1a   : > { %2600 = vrot.lane.b32.xlu0 %v2266_v35, %s4930_s8 }
 0xd1e   : > { %2835 = vrot.lane.b32.xlu0 %v2726_v53, %s4929_s7 }
 0xd22   : > { %2946 = vrot.lane.b32.xlu0 %v2726_v53, %s4928_s14 }
 0xd26   : > { %3057 = vrot.lane.b32.xlu0 %v2726_v53, %s4930_s8 }
 0xd8d   : > { %v2322_v54 = vpop.xlane.xlu0 %2321 }
 0xd8e   : > { %4742 = vrcp.f32 %v2322_v54 }
 0xd91   : > { %v2375_v55 = vpop.permute.xlu0 %2374 }
 0xd95   : > { %v2601_v57 = vpop.permute.xlu0 %2600 }
 0xd96   : > { %v2606_v59 = vsel %vm605_vm1, %v2601_v57, 0 }
 0xd97   : > { %4358 = vmatpush3.bf16.xpose.msra.mxu0 %v2606_v59 }
 0xd98   : > { %v4743_v60 = vpop.eup %4742  ;;  %4369 = vmatprep.subr.bf16.mxu0 %v4926_v20 }
 0xd99   : > { %v2324_v62 = vmul.f32 %v4743_v60, %v4741_v50  ;;  %v2836_v6 = vpop.permute.xlu0 %2835 }
 0xd9a   : > { %v2841_v8 = vsel %vm605_vm1, %v2836_v6, 0 }
 0xd9b   : > { %v2325_v63 = vpack.c.bf16 %v2324_v62, %v2324_v62 }
 0xd9d   : > { %4330 = vmatmul.mubr.msk.bf16.vlgmr.msra.gmra.mrb[48].mxu1 %vm652_vm2, %v2325_v63  ;;  %v2947_v9 = vpop.permute.xlu0 %2946 }
 0xd9e   : > { %4334 = vmatpush3.bf16.xpose.msra.mxu1 %v2383_v1  ;;  %4360 = vmatmul.mubr.msk.bf16.vlgmr.msra.gmra.mrb[52].mxu0 %vm605_vm1, %v2599_v2  ;;  %v2952_v11 = vsel %vm605_vm1, %v2947_v9, 0 }
 0xd9f   : > { %4370 = vmatpush3.bf16.xpose.msra.mxu0 %v2731_v3  ;;  %4335 = vmatprep.mubr.msk.bf16.mxu1 %vm4927_vm0, %v4926_v20 }
 0xda0   : > { %4371 = vmatprep.mubr.msk.bf16.mxu0 %vm4927_vm0, %v4926_v20  ;;  %4381 = vmatprep.subr.bf16.mxu0 %v4926_v20 }
 0xda1   : > { %4339 = vmatprep.subr.bf16.mxu1 %v4926_v20  ;;  %v3058_v12 = vpop.permute.xlu0 %3057 }
 0xda2   : > { %v3063_v14 = vsel %vm605_vm1, %v3058_v12, 0 }
 0xda5   : > { %4336 = vmatmul.mubr.msk.bf16.vlgmr.msra.gmra.mrb[52].mxu1 %vm605_vm1, %v2375_v55 }
 0xda6   : > { %4372 = vmatmul.mubr.msk.bf16.vlgmr.msra.gmra.mrb[56].mxu0 %vm605_vm1, %v2725_v43  ;;  %4341 = vmatprep.mubr.msk.bf16.mxu1 %vm4927_vm0, %v4926_v20 }
 0xda7   : > { %4382 = vmatpush3.bf16.xpose.msra.mxu0 %v2841_v8  ;;  %4383 = vmatprep.mubr.msk.bf16.mxu0 %vm4927_vm0, %v4926_v20 }
 0xda8   : > { %4393 = vmatprep.subr.bf16.mxu0 %v4926_v20 }
 0xdae   : > { %4384 = vmatmul.mubr.msk.bf16.vlgmr.msra.gmra.mrb[60].mxu0 %vm605_vm1, %v2834_v10 }
 0xdaf   : > { %4394 = vmatpush3.bf16.xpose.msra.mxu0 %v2952_v11  ;;  %4395 = vmatprep.mubr.msk.bf16.mxu0 %vm4927_vm0, %v4926_v20 }
 0xdb0   : > { %4405 = vmatprep.subr.bf16.mxu0 %v4926_v20 }
 0xdb6   : > { %4396 = vmatmul.mubr.msk.bf16.vlgmr.msra.gmra.mrb[64].mxu0 %vm605_vm1, %v2945_v13 }
 0xdb7   : > { %4406 = vmatpush3.bf16.xpose.msra.mxu0 %v3063_v14  ;;  %4407 = vmatprep.mubr.msk.bf16.mxu0 %vm4927_vm0, %v4926_v20 }
 0xdb8   : > { %4417 = vmatprep.subr.bf16.mxu0 %v4926_v20 }
 0xdbe   : > { %4408 = vmatmul.mubr.msk.bf16.vlgmr.msra.gmra.mrb[68].mxu0 %vm605_vm1, %v3056_v15 }
 0xdbf   : > { %4433 = vmatprep.mubr.msk.bf16.mxu0 %vm4927_vm0, %v4926_v20 }
 0xdd3   : > { %v2531_v16 = vpop.f32.mrb[48].mxu0 }
 0xdd4   : > { %v4349_v17 = vpop.f32.mrb[49].mxu0  ;;  %v2537_v19 = vsel %vm652_vm2, %v2531_v16, -inf }
 0xdd5   : > { %2538 = vmax.xlane.f32.xlu1 %v2537_v19  ;;  %v2534_v21 = vpop.f32.mrb[50].mxu0 }
 0xdd6   : > { %v4350_v18 = vpop.f32.mrb[51].mxu0 }
 0xe62   : > { %v2539_v48 = vpop.xlane.xlu1 %2538 }
 0xe63   : > { %v2540_v45 = vsub.f32 %v2531_v16, %v2539_v48 }
 0xe65   : > { %v2541_v55 = vmul.f32 1.442695, %v2540_v45 }
 0xe67   : > { %4744 = vpow2.f32 %v2541_v55 }
 0xe70   : > { %v5472_v26 = vpop.f32.mrb[48].mxu1 }
 0xe71   : > { %v4331_v27 = vpop.f32.mrb[49].mxu1  ;;  %v2642_v29 = vpop.f32.mrb[52].mxu0 }
 0xe72   : > { %v2369_v31 = vpop.f32.mrb[50].mxu1  ;;  %v4361_v32 = vpop.f32.mrb[53].mxu0  ;;  %v2648_v47 = vsel %vm652_vm2, %v2642_v29, -inf }
 0xe73   : > { %v4332_v33 = vpop.f32.mrb[51].mxu1  ;;  %v2645_v35 = vpop.f32.mrb[54].mxu0 }
 0xe74   : > { %v4362_v36 = vpop.f32.mrb[55].mxu0  ;;  %v5480_v6 = vpop.eup %4744 }
 0xe75   : > { %v2543_v10 = vsel %vm652_vm2, %v5480_v6, 0.0 }
 0xe78   : > { %v2419_v23 = vpop.f32.mrb[52].mxu1 }
 0xe79   : > { %v4337_v38 = vpop.f32.mrb[53].mxu1  ;;  %v2767_v39 = vpop.f32.mrb[56].mxu0  ;;  %v2425_v40 = vsel %vm652_vm2, %v2419_v23, -inf }
 0xe7a   : > { %v4373_v41 = vpop.f32.mrb[57].mxu0  ;;  %2426 = vmax.xlane.f32.xlu0 %v2425_v40  ;;  %v2422_v42 = vpop.f32.mrb[54].mxu1  ;;  %v2773_v50 = vsel %vm652_vm2, %v2767_v39, -inf }
 0xe7b   : > { %v4338_v43 = vpop.f32.mrb[55].mxu1  ;;  %v2770_v37 = vpop.f32.mrb[58].mxu0 }
 0xe7c   : > { %v4374_v46 = vpop.f32.mrb[59].mxu0 }
 0xe7e   : > { %2649 = vmax.xlane.f32.xlu0 %v2648_v47 }
 0xe81   : > { %v2877_v49 = vpop.f32.mrb[60].mxu0 }
 0xe82   : > { %v4385_v51 = vpop.f32.mrb[61].mxu0  ;;  %2774 = vmax.xlane.f32.xlu0 %v2773_v50  ;;  %v2883_v52 = vsel %vm652_vm2, %v2877_v49, -inf  ;;  %v2785_v50 = vrot.slane %v5409_v34, 4 }
 0xe83   : > { %2884 = vmax.xlane.f32.xlu1 %v2883_v52  ;;  %v2880_v53 = vpop.f32.mrb[62].mxu0 }
 0xe84   : > { %v4386_v54 = vpop.f32.mrb[63].mxu0 }
 0xe89   : > { %v2988_v57 = vpop.f32.mrb[64].mxu0 }
 0xe8a   : > { %v4397_v59 = vpop.f32.mrb[65].mxu0  ;;  %v2994_v60 = vsel %vm652_vm2, %v2988_v57, -inf }
 0xe8b   : > { %v2991_v62 = vpop.f32.mrb[66].mxu0  ;;  %2995 = vmax.xlane.f32.xlu0 %v2994_v60 }
 0xe8c   : > { %v4398_v63 = vpop.f32.mrb[67].mxu0 }
 0xe91   : > { %v3099_v1 = vpop.f32.mrb[68].mxu0 }
 0xe92   : > { %v4409_v2 = vpop.f32.mrb[69].mxu0  ;;  %v3105_v3 = vsel %vm652_vm2, %v3099_v1, -inf }
 0xe93   : > { %3106 = vmax.xlane.f32.xlu1 %v3105_v3  ;;  %v3102_v8 = vpop.f32.mrb[70].mxu0 }
 0xe94   : > { %v4410_v9 = vpop.f32.mrb[71].mxu0 }
 0xe97   : > { %2544 = vadd.xlane.f32.xlu1 %v2543_v10 }
 0xf07   : > { %v2427_v11 = vpop.xlane.xlu0 %2426 }
 0xf08   : > { %v2428_v12 = vsub.f32 %v2419_v23, %v2427_v11 }
 0xf0a   : > { %v2429_v15 = vmul.f32 1.442695, %v2428_v12 }
 0xf0b   : > { %v2650_v13 = vpop.xlane.xlu0 %2649 }
 0xf0c   : > { %v2651_v14 = vsub.f32 %v2642_v29, %v2650_v13 }
 0xf0e   : > { %v2652_v16 = vmul.f32 1.442695, %v2651_v14  ;;  %v2790_v14 = vsel %vm668_vm3, %v2785_v50, 0 }
 0xf0f   : > { %v2775_v17 = vpop.xlane.xlu0 %2774 }
 0xf10   : > { %4746 = vpow2.f32 %v2652_v16  ;;  %v2776_v19 = vsub.f32 %v2767_v39, %v2775_v17  ;;  %v2885_v21 = vpop.xlane.xlu1 %2884 }
 0xf11   : > { %v2886_v18 = vsub.f32 %v2877_v49, %v2885_v21  ;;  %4748 = vpow2.f32 %v2429_v15 }
 0xf12   : > { %v2777_v27 = vmul.f32 1.442695, %v2776_v19 }
 0xf13   : > { %v2887_v31 = vmul.f32 1.442695, %v2886_v18 }
 0xf14   : > { %4750 = vpow2.f32 %v2777_v27 }
 0xf15   : > { %4752 = vpow2.f32 %v2887_v31 }
 0xf18   : > { %v2996_v40 = vpop.xlane.xlu0 %2995 }
 0xf19   : > { %v2997_v41 = vsub.f32 %v2988_v57, %v2996_v40 }
 0xf1a   : > { %v5484_v32 = vpop.eup %4746 }
 0xf1b   : > { %v2654_v33 = vsel %vm652_vm2, %v5484_v32, 0.0  ;;  %v4749_v35 = vpop.eup %4748  ;;  %v2998_v42 = vmul.f32 1.442695, %v2997_v41 }
 0xf1c   : > { %2655 = vadd.xlane.f32.xlu0 %v2654_v33  ;;  %v2431_v36 = vsel %vm652_vm2, %v4749_v35, 0.0 }
 0xf1d   : > { %4754 = vpow2.f32 %v2998_v42 }
 0xf1e   : > { %v5488_v29 = vpop.eup %4750 }
 0xf1f   : > { %v2779_v23 = vsel %vm652_vm2, %v5488_v29, 0.0  ;;  %v5493_v38 = vpop.eup %4752 }
 0xf20   : > { %2432 = vadd.xlane.f32.xlu0 %v2431_v36  ;;  %2780 = vadd.xlane.f32.xlu1 %v2779_v23  ;;  %v2889_v39 = vsel %vm652_vm2, %v5493_v38, 0.0  ;;  %v3107_v43 = vpop.xlane.xlu1 %3106 }
 0xf21   : > { %v3108_v37 = vsub.f32 %v3099_v1, %v3107_v43  ;;  %v4644_v43 = vld [vmem:[#allocation2 + $0x18c] ss:$24 sps:$4 sm:$0xff]  }
 0xf22   : > { %4418 = vmatpush3.bf16.msra.mxu0 %v4644_v43 }
 0xf23   : > { %v3109_v46 = vmul.f32 1.442695, %v3108_v37  ;;  %v4645_v37 = vld [vmem:[#allocation2 + $0x1bc] ss:$24 sps:$4 sm:$0xff]   ;;  %4419 = vmatprep.subr.bf16.mxu0 %v4926_v20 }
 0xf24   : > { %2890 = vadd.xlane.f32.xlu1 %v2889_v39  ;;  %v2545_v52 = vpop.xlane.xlu1 %2544 }
 0xf25   : > { %4756 = vpow2.f32 %v3109_v46  ;;  %v4646_v46 = vld [vmem:[#allocation2 + $0x1ec] ss:$24 sps:$4 sm:$0xff]  }
 0xf26   : > { %4420 = vmatpush3.bf16.msra.mxu0 %v4645_v37 }
 0xf27   : > { %v5503_v47 = vpop.eup %4754  ;;  %4421 = vmatprep.subr.bf16.mxu0 %v4926_v20 }
 0xf28   : > { %v3000_v48 = vsel %vm652_vm2, %v5503_v47, 0.0 }
 0xf2a   : > { %4422 = vmatpush3.bf16.msra.mxu0 %v4646_v46 }
 0xf2b   : > { %4423 = vmatprep.subr.bf16.mxu0 %v4926_v20 }
 0xf2f   : > { %v5507_v45 = vpop.eup %4756 }
 0xf30   : > { %v3111_v49 = vsel %vm652_vm2, %v5507_v45, 0.0 }
 0xf35   : > { %2549 = vrot.lane.b32.xlu1 %v5409_v34, %s4928_s14 }
 0xf36   : > { %2438 = vrot.lane.b32.xlu0 %v5409_v34, %s4929_s7 }
 0xf39   : > { %2660 = vrot.lane.b32.xlu1 %v5409_v34, %s4930_s8 }
 0xf55   : > { %3001 = vadd.xlane.f32.xlu0 %v3000_v48 }
 0xf5d   : > { %3112 = vadd.xlane.f32.xlu1 %v3111_v49 }
 0xf6b   : > { %2895 = vrot.lane.b32.xlu0 %v2785_v50, %s4929_s7 }
 0xf6e   : > { %3006 = vrot.lane.b32.xlu1 %v2785_v50, %s4928_s14 }
 0xf6f   : > { %3117 = vrot.lane.b32.xlu0 %v2785_v50, %s4930_s8 }
 0xfa9   : > { %v2656_v51 = vpop.xlane.xlu0 %2655 }
 0xfad   : > { %v2433_v53 = vpop.xlane.xlu0 %2432  ;;  %v2781_v54 = vpop.xlane.xlu1 %2780 }
 0xfae   : > { %4758 = vrcp.f32 %v2433_v53 }
 0xfaf   : > { %4760 = vrcp.f32 %v2545_v52 }
 0xfb0   : > { %4762 = vrcp.f32 %v2656_v51 }
 0xfb1   : > { %v2439_v55 = vpop.permute.xlu0 %2438  ;;  %v2891_v59 = vpop.xlane.xlu1 %2890  ;;  %4764 = vrcp.f32 %v2781_v54 }
 0xfb2   : > { %v2444_v57 = vsel %vm668_vm3, %v2439_v55, 0  ;;  %4766 = vrcp.f32 %v2891_v59 }
 0xfb3   : > { %4340 = vmatpush3.bf16.msra.mxu1 %v2444_v57 }
 0xfb4   : > { %4351 = vmatprep.subr.bf16.mxu1 %v4926_v20 }
 0xfb5   : > { %v2550_v62 = vpop.permute.xlu1 %2549 }
 0xfb6   : > { %v2555_v2 = vsel %vm668_vm3, %v2550_v62, 0 }
 0xfb8   : > { %v4759_v34 = vpop.eup %4758 }
 0xfb9   : > { %v2435_v60 = vmul.f32 %v4759_v34, %v4749_v35  ;;  %v4761_v1 = vpop.eup %4760  ;;  %v2661_v8 = vpop.permute.xlu1 %2660 }
 0xfba   : > { %v2547_v3 = vmul.f32 %v4761_v1, %v5480_v6  ;;  %v4763_v10 = vpop.eup %4762  ;;  %v2666_v11 = vsel %vm668_vm3, %v2661_v8, 0  ;;  %v4647_v1 = vld [vmem:[#allocation2 + $0x21c] ss:$24 sps:$4 sm:$0xff]  }
 0xfbb   : > { %v2436_v63 = vpack.c.bf16 %v2435_v60, %v2435_v60  ;;  %v2658_v12 = vmul.f32 %v4763_v10, %v5484_v32  ;;  %v4765_v6 = vpop.eup %4764  ;;  %4424 = vmatpush3.bf16.msra.mxu0 %v4647_v1 }
 0xfbc   : > { %v2548_v9 = vpack.c.bf16 %v2547_v3, %v2547_v3  ;;  %v2783_v15 = vmul.f32 %v4765_v6, %v5488_v29  ;;  %v4767_v17 = vpop.eup %4766  ;;  %4425 = vmatprep.subr.bf16.mxu0 %v4926_v20  ;;  %v4649_v3 = vld [vmem:[#allocation2 + $0x27c] ss:$24 sps:$4 sm:$0xff]  }
 0xfbd   : > { %4342 = vmatmul.mubr.msk.bf16.vlgmr.msra.gmra.mrb[56].mxu1 %vm652_vm2, %v2436_v63  ;;  %v2659_v13 = vpack.c.bf16 %v2658_v12, %v2658_v12  ;;  %v2893_v21 = vmul.f32 %v4767_v17, %v5493_v38 }
 0xfbe   : > { %4352 = vmatpush3.bf16.msra.mxu1 %v2555_v2  ;;  %4353 = vmatprep.mubr.msk.bf16.mxu1 %vm4927_vm0, %v4926_v20  ;;  %v2784_v16 = vpack.c.bf16 %v2783_v15, %v2783_v15  ;;  %v4648_v2 = vld [vmem:[#allocation2 + $0x24c] ss:$24 sps:$4 sm:$0xff]  }
 0xfbf   : > { %4363 = vmatprep.subr.bf16.mxu1 %v4926_v20  ;;  %v2894_v31 = vpack.c.bf16 %v2893_v21, %v2893_v21  ;;  %4426 = vmatpush3.bf16.msra.mxu0 %v4648_v2 }
 0xfc0   : > { %4427 = vmatprep.subr.bf16.mxu0 %v4926_v20 }
 0xfc3   : > { %4428 = vmatpush3.bf16.msra.mxu0 %v4649_v3 }
 0xfc4   : > { %4429 = vmatprep.subr.bf16.mxu0 %v4926_v20 }
 0xfc5   : > { %4354 = vmatmul.mubr.msk.bf16.vlgmr.msra.gmra.mrb[60].mxu1 %vm652_vm2, %v2548_v9  ;;  %v4650_v9 = vld [vmem:[#allocation2 + $0x2ac] ss:$24 sps:$4 sm:$0xff]  }
 0xfc6   : > { %4364 = vmatpush3.bf16.msra.mxu1 %v2666_v11  ;;  %4365 = vmatprep.mubr.msk.bf16.mxu1 %vm4927_vm0, %v4926_v20 }
 0xfc7   : > { %4375 = vmatprep.subr.bf16.mxu1 %v4926_v20  ;;  %4430 = vmatpush3.bf16.msra.mxu0 %v4650_v9 }
 0xfc8   : > { %4431 = vmatprep.subr.bf16.mxu0 %v4926_v20 }
 0xfcd   : > { %4366 = vmatmul.mubr.msk.bf16.vlgmr.msra.gmra.mrb[64].mxu1 %vm652_vm2, %v2659_v13 }
 0xfce   : > { %4376 = vmatpush3.bf16.msra.mxu1 %v2790_v14  ;;  %4377 = vmatprep.mubr.msk.bf16.mxu1 %vm4927_vm0, %v4926_v20  ;;  %v4651_v14 = vld [vmem:[#allocation2 + $0x2dc] ss:$24 sps:$4 sm:$0xff]  }
 0xfcf   : > { %4387 = vmatprep.subr.bf16.mxu1 %v4926_v20  ;;  %4432 = vmatpush3.bf16.msra.mxu0 %v4651_v14  ;;  %v4664_v14 = vld [vmem:[#allocation2 + $0x250] ss:$24 sps:$4 sm:$0xff]  }
 0xfd5   : > { %4378 = vmatmul.mubr.msk.bf16.vlgmr.msra.gmra.mrb[68].mxu1 %vm652_vm2, %v2784_v16 }
 0xfd6   : > { %4389 = vmatprep.mubr.msk.bf16.mxu1 %vm4927_vm0, %v4926_v20 }
 0xfe2   : > { %v3002_v19 = vpop.xlane.xlu0 %3001 }
 0xfe3   : > { %4768 = vrcp.f32 %v3002_v19 }
 0xfe6   : > { %v2896_v18 = vpop.permute.xlu0 %2895 }
 0xfe7   : > { %v2901_v27 = vsel %vm668_vm3, %v2896_v18, 0 }
 0xfe8   : > { %4388 = vmatpush3.bf16.msra.mxu1 %v2901_v27 }
 0xfe9   : > { %4399 = vmatprep.subr.bf16.mxu1 %v4926_v20 }
 0xfea   : > { %v3113_v32 = vpop.xlane.xlu1 %3112  ;;  %v3118_v23 = vpop.permute.xlu0 %3117 }
 0xfeb   : > { %4770 = vrcp.f32 %v3113_v32  ;;  %4390 = vmatmul.mubr.msk.bf16.vlgmr.msra.gmra.mrb[72].mxu1 %vm652_vm2, %v2894_v31  ;;  %v3123_v39 = vsel %vm668_vm3, %v3118_v23, 0 }
 0xfec   : > { %4401 = vmatprep.mubr.msk.bf16.mxu1 %vm4927_vm0, %v4926_v20 }
 0xfed   : > { %v4769_v33 = vpop.eup %4768 }
 0xfee   : > { %v3004_v35 = vmul.f32 %v4769_v33, %v5503_v47  ;;  %v3007_v29 = vpop.permute.xlu1 %3006 }
 0xfef   : > { %v3012_v36 = vsel %vm668_vm3, %v3007_v29, 0 }
 0xff0   : > { %4400 = vmatpush3.bf16.msra.mxu1 %v3012_v36  ;;  %v3005_v38 = vpack.c.bf16 %v3004_v35, %v3004_v35 }
 0xff1   : > { %4411 = vmatprep.subr.bf16.mxu1 %v4926_v20 }
 0xff3   : > { %4402 = vmatmul.mubr.msk.bf16.vlgmr.msra.gmra.mrb[76].mxu1 %vm652_vm2, %v3005_v38 }
 0xff4   : > { %4412 = vmatpush3.bf16.msra.mxu1 %v3123_v39  ;;  %4413 = vmatprep.mubr.msk.bf16.mxu1 %vm4927_vm0, %v4926_v20 }
 0xff5   : > { %v4771_v40 = vpop.eup %4770 }
 0xff6   : > { %v3115_v41 = vmul.f32 %v4771_v40, %v5507_v45 }
 0xff8   : > { %v3116_v42 = vpack.c.bf16 %v3115_v41, %v3115_v41 }
 0xffb   : > { %4414 = vmatmul.mubr.msk.bf16.vlgmr.msra.gmra.mrb[80].mxu1 %vm652_vm2, %v3116_v42  ;;  %v2372_v42 = vpack.c.bf16 %v5472_v26, %v5472_v26 }
 0xffc   : > { %3421 = vmatprep.mubr.bf16.mxu1 %v4925_v0 }
0x1090   : > { %v2480_v47 = vpop.f32.mrb[56].mxu1 }
0x1091   : > { %v2486_v48 = vpack.c.bf16 %v2480_v47, %v2480_v47  ;;  %v4343_v49 = vpop.f32.mrb[57].mxu1 }
0x1092   : > { %v2483_v45 = vpop.f32.mrb[58].mxu1 }
0x1093   : > { %2710 = vrot.lane.b32.xlu0 %v2486_v48, %s4930_s8  ;;  %v4344_v50 = vpop.f32.mrb[59].mxu1 }
0x1098   : > { %v2591_v0 = vpop.f32.mrb[60].mxu1 }
0x1099   : > { %v4355_v51 = vpop.f32.mrb[61].mxu1  ;;  %v2597_v6 = vpack.c.bf16 %v2591_v0, %v2591_v0  ;;  %v3190_v0 = vrot.slane %v5400_v7, %v1531_v30 }
0x109a   : > { %v2594_v52 = vpop.f32.mrb[62].mxu1 }
0x109b   : > { %v4356_v53 = vpop.f32.mrb[63].mxu1 }
0x10a0   : > { %v2702_v54 = vpop.f32.mrb[64].mxu1 }
0x10a1   : > { %v4367_v55 = vpop.f32.mrb[65].mxu1  ;;  %v2708_v35 = vpack.c.bf16 %v2702_v54, %v2702_v54 }
0x10a2   : > { %v2705_v57 = vpop.f32.mrb[66].mxu1 }
0x10a3   : > { %v4368_v59 = vpop.f32.mrb[67].mxu1 }
0x10a8   : > { %v2826_v34 = vpop.f32.mrb[68].mxu1 }
0x10a9   : > { %v4379_v60 = vpop.f32.mrb[69].mxu1  ;;  %v2832_v38 = vpack.c.bf16 %v2826_v34, %v2826_v34  ;;  %v4652_v34 = vld [vmem:[#allocation2 + $0x190] ss:$24 sps:$4 sm:$0xff]  }
0x10aa   : > { %v2829_v62 = vpop.f32.mrb[70].mxu1  ;;  %v4654_v60 = vld [vmem:[#allocation2 + $0x194] ss:$24 sps:$4 sm:$0xff]  }
0x10ab   : > { %v4380_v63 = vpop.f32.mrb[71].mxu1  ;;  %v4657_v62 = vld [vmem:[#allocation2 + $0x1c4] ss:$24 sps:$4 sm:$0xff]   ;;  %3389 = vmatprep.subr.bf16.mxu1 %v4654_v60 }
0x10ac   : > { %3390 = vmatpush1.bf16.msra.mxu1 %v4652_v34  ;;  %v4655_v63 = vld [vmem:[#allocation2 + $0x1c0] ss:$24 sps:$4 sm:$0xff]  }
0x10ad   : > { %3391 = vmatprep.subr.bf16.mxu1 %v4657_v62  ;;  %v4690_v34 = vld [vmem:[#allocation4 + $0xf8] sm:$0xff]   ;;  %v3308_v62 = vrot.slane %v5402_v44, %v5360_v24 }
0x10ae   : > { %v4691_v60 = vld [vmem:[#allocation4 + $0xb8] sm:$0xff]  }
0x10b0   : > { %3392 = vmatpush1.bf16.msra.mxu1 %v4655_v63 }
0x10be   : > { %v2937_v8 = vpop.f32.mrb[72].mxu1 }
0x10bf   : > { %v2943_v10 = vpack.c.bf16 %v2937_v8, %v2937_v8  ;;  %v4391_v11 = vpop.f32.mrb[73].mxu1 }
0x10c0   : > { %v2940_v12 = vpop.f32.mrb[74].mxu1  ;;  %v4658_v11 = vld [vmem:[#allocation2 + $0x1f0] ss:$24 sps:$4 sm:$0xff]  }
0x10c1   : > { %3167 = vrot.lane.b32.xlu0 %v2943_v10, %s4930_s8  ;;  %v4392_v13 = vpop.f32.mrb[75].mxu1  ;;  %v4660_v10 = vld [vmem:[#allocation2 + $0x1f4] ss:$24 sps:$4 sm:$0xff]   ;;  %v4663_v12 = vld [vmem:[#allocation2 + $0x224] ss:$24 sps:$4 sm:$0xff]  }
0x10c2   : > { %3393 = vmatprep.subr.bf16.mxu1 %v4660_v10  ;;  %v4661_v13 = vld [vmem:[#allocation2 + $0x220] ss:$24 sps:$4 sm:$0xff]  }
0x10c3   : > { %3394 = vmatpush1.bf16.msra.mxu1 %v4658_v11 }
0x10c4   : > { %3395 = vmatprep.subr.bf16.mxu1 %v4663_v12 }
0x10c5   : > { %2713 = vrot.lane.b32.xlu0 %v2597_v6, %s4928_s14  ;;  %v4666_v6 = vld [vmem:[#allocation2 + $0x254] ss:$24 sps:$4 sm:$0xff]  }
0x10c6   : > { %v3048_v15 = vpop.f32.mrb[76].mxu1 }
0x10c7   : > { %v3054_v16 = vpack.c.bf16 %v3048_v15, %v3048_v15  ;;  %v4403_v17 = vpop.f32.mrb[77].mxu1  ;;  %3396 = vmatpush1.bf16.msra.mxu1 %v4661_v13  ;;  %v4669_v15 = vld [vmem:[#allocation2 + $0x284] ss:$24 sps:$4 sm:$0xff]  }
0x10c8   : > { %v3051_v19 = vpop.f32.mrb[78].mxu1  ;;  %3397 = vmatprep.subr.bf16.mxu1 %v4666_v6  ;;  %v4670_v17 = vld [vmem:[#allocation2 + $0x2b0] ss:$24 sps:$4 sm:$0xff]  }
0x10c9   : > { %3170 = vrot.lane.b32.xlu1 %v3054_v16, %s4928_s14  ;;  %v4404_v21 = vpop.f32.mrb[79].mxu1  ;;  %v4667_v16 = vld [vmem:[#allocation2 + $0x280] ss:$24 sps:$4 sm:$0xff]   ;;  %v4672_v19 = vld [vmem:[#allocation2 + $0x2b4] ss:$24 sps:$4 sm:$0xff]  }
0x10ca   : > { %v4675_v21 = vld [vmem:[#allocation2 + $0x2e4] ss:$24 sps:$4 sm:$0xff]  }
0x10cb   : > { %3398 = vmatpush1.bf16.msra.mxu1 %v4664_v14 }
0x10cc   : > { %3399 = vmatprep.subr.bf16.mxu1 %v4669_v15 }
0x10ce   : > { %v3159_v18 = vpop.f32.mrb[80].mxu1 }
0x10cf   : > { %v3165_v27 = vpack.c.bf16 %v3159_v18, %v3159_v18  ;;  %v4415_v31 = vpop.f32.mrb[81].mxu1  ;;  %3400 = vmatpush1.bf16.msra.mxu1 %v4667_v16  ;;  %v4673_v18 = vld [vmem:[#allocation2 + $0x2e0] ss:$24 sps:$4 sm:$0xff]  }
0x10d0   : > { %v3162_v32 = vpop.f32.mrb[82].mxu1  ;;  %3401 = vmatprep.subr.bf16.mxu1 %v4672_v19  ;;  %v4677_v31 = vld [vmem:[#allocation4 + $0x80] sm:$0xff]  }
0x10d1   : > { %3173 = vrot.lane.b32.xlu1 %v3165_v27, %s4929_s7  ;;  %v4416_v33 = vpop.f32.mrb[83].mxu1  ;;  %v4676_v27 = vld [vmem:[#allocation4 + $0xc0] sm:$0xff]   ;;  %v4678_v32 = vld [vmem:[#allocation4 + $0xc8] sm:$0xff]  }
0x10d2   : > { %4134 = vmatprep.subr.bf16.mxu0 %v4676_v27  ;;  %v4679_v33 = vld [vmem:[#allocation4 + $0x88] sm:$0xff]  }
0x10d3   : > { %3402 = vmatpush1.bf16.msra.mxu1 %v4670_v17 }
0x10d4   : > { %3403 = vmatprep.subr.bf16.mxu1 %v4675_v21 }
0x10d5   : > { %2716 = vrot.lane.b32.xlu1 %v2708_v35, %s4929_s7  ;;  %v4680_v35 = vld [vmem:[#allocation4 + $0xd0] sm:$0xff]  }
0x10d7   : > { %3404 = vmatpush1.bf16.msra.mxu1 %v4673_v18 }
0x10d8   : > { %4437 = vmatprep.subr.bf16.mxu1 %v4926_v20 }
0x1105   : > { %v2711_v29 = vpop.permute.xlu0 %2710 }
0x1106   : > { %v2720_v46 = vsel %vm605_vm1, %v2372_v42, %v2711_v29  ;;  %v4681_v29 = vld [vmem:[#allocation4 + $0x90] sm:$0xff]  }
0x1133   : > { %v3168_v36 = vpop.permute.xlu0 %3167 }
0x1134   : > { %v3177_v39 = vsel %vm605_vm1, %v2832_v38, %v3168_v36  ;;  %v4682_v36 = vld [vmem:[#allocation4 + $0xd8] sm:$0xff]   ;;  %v4684_v38 = vld [vmem:[#allocation4 + $0xe0] sm:$0xff]  }
0x1137   : > { %v2714_v43 = vpop.permute.xlu0 %2713 }
0x1138   : > { %v2722_v47 = vsel %vm1061_vm5, %v2720_v46, %v2714_v43 }
0x113b   : > { %v3171_v23 = vpop.permute.xlu1 %3170 }
0x113c   : > { %v3179_v40 = vsel %vm1061_vm5, %v3177_v39, %v3171_v23  ;;  %v4683_v23 = vld [vmem:[#allocation4 + $0x98] sm:$0xff]   ;;  %v4685_v39 = vld [vmem:[#allocation4 + $0xa0] sm:$0xff]  }
0x1143   : > { %v3174_v41 = vpop.permute.xlu1 %3173 }
0x1144   : > { %v3181_v37 = vsel %vm1064_vm4, %v3179_v40, %v3174_v41  ;;  %v4686_v40 = vld [vmem:[#allocation4 + $0xe8] sm:$0xff]  }
0x1145   : > { %v3183_v48 = vrot.slane %v3181_v37, 4 }
0x1147   : > { %v2717_v49 = vpop.permute.xlu1 %2716 }
0x1148   : > { %v2724_v45 = vsel %vm1064_vm4, %v2722_v47, %v2717_v49 }
0x1149   : > { %v3185_v50 = vsel %vm668_vm3, %v2724_v45, %v3183_v48  ;;  %v3291_v45 = vrot.slane %v5400_v7, %v1633_v25  ;;  %v4689_v25 = vld [vmem:[#allocation4 + $0xb0] sm:$0xff]  }
0x114a   : > { %4434 = vmatmul.mubr.bf16.vlgmr.msra.gmra.mrb[72].mxu0 %v3185_v50 }
0x114b   : > { %4135 = vmatpush3.bf16.msra.mxu0 %v4677_v31 }
0x114c   : > { %4136 = vmatprep.subr.bf16.mxu0 %v4678_v32  ;;  %v4692_v32 = vld [vmem:[#allocation6] sm:$0xff]  }
0x114f   : > { %4137 = vmatpush3.bf16.msra.mxu0 %v4679_v33  ;;  %v4693_v33 = vld [vmem:[#allocation6 + $0x8] sm:$0xff]  }
0x1150   : > { %4138 = vmatprep.subr.bf16.mxu0 %v4680_v35 }
0x1153   : > { %4139 = vmatpush3.bf16.msra.mxu0 %v4681_v29 }
0x1154   : > { %4140 = vmatprep.subr.bf16.mxu0 %v4682_v36 }
0x1157   : > { %4141 = vmatpush3.bf16.msra.mxu0 %v4683_v23 }
0x1158   : > { %4142 = vmatprep.subr.bf16.mxu0 %v4684_v38 }
0x115b   : > { %4143 = vmatpush3.bf16.msra.mxu0 %v4685_v39 }
0x115c   : > { %4144 = vmatprep.subr.bf16.mxu0 %v4686_v40  ;;  %v4694_v40 = vld [vmem:[#allocation6 + $0x10] sm:$0xff]  }
0x121d   : > { %v3257_v51 = vpop.f32.mrb[72].mxu0 }
0x121e   : > { %v3258_v26 = vadd.f32 %v3257_v51, %v3190_v0  ;;  %v4435_v52 = vpop.f32.mrb[73].mxu0 }
0x121f   : > { %v3260_v53 = vpop.f32.mrb[74].mxu0 }
0x1220   : > { %v3261_v54 = vadd.f32 %v3260_v53, %v3190_v0  ;;  %v4436_v55 = vpop.f32.mrb[75].mxu0  ;;  %v3264_v57 = vadd.f32 %v3258_v26, %v5390_v4  ;;  %v3297_v26 = vrot.slane %v5400_v7, %v1639_v28  ;;  %v3304_v28 = vrot.slane %v5400_v7, %v5360_v24 }
0x1221   : > { %v3441_v24 = vrot.slane %v5400_v7, %v1783_v61 }
0x1222   : > { %3266 = vadd.xlane.f32.xlu0 %v3264_v57  ;;  %v3265_v59 = vadd.f32 %v3261_v54, %v5392_v5 }
0x1224   : > { %3268 = vadd.xlane.f32.xlu1 %v3265_v59 }
0x12af   : > { %v3267_v30 = vpop.xlane.xlu0 %3266 }
0x12b0   : > { %v3270_v1 = vmul.f32 0.0078125, %v3267_v30 }
0x12b1   : > { %v3269_v2 = vpop.xlane.xlu1 %3268 }
0x12b2   : > { %v5581_v3 = vsub.f32 %v3264_v57, %v3270_v1  ;;  %v3271_v8 = vmul.f32 0.0078125, %v3269_v2  ;;  %v4687_v57 = vld [vmem:[#allocation4 + $0xa8] sm:$0xff]  }
0x12b3   : > { %4145 = vmatpush3.bf16.msra.mxu0 %v4687_v57 }
0x12b4   : > { %v5583_v9 = vsub.f32 %v3265_v59, %v3271_v8  ;;  %v3274_v4 = vmul.f32 %v5581_v3, %v5581_v3  ;;  %v4688_v59 = vld [vmem:[#allocation4 + $0xf0] sm:$0xff]  }
0x12b5   : > { %4146 = vmatprep.subr.bf16.mxu0 %v4688_v59 }
0x12b6   : > { %3276 = vadd.xlane.f32.xlu0 %v3274_v4  ;;  %v3275_v5 = vmul.f32 %v5583_v9, %v5583_v9 }
0x12b7   : > { %4147 = vmatpush3.bf16.msra.mxu0 %v4689_v25 }
0x12b8   : > { %4148 = vmatprep.subr.bf16.mxu0 %v4690_v34 }
0x12ba   : > { %3278 = vadd.xlane.f32.xlu0 %v3275_v5 }
0x12bb   : > { %4149 = vmatpush3.bf16.msra.mxu0 %v4691_v60 }
0x1343   : > { %v3277_v41 = vpop.xlane.xlu0 %3276 }
0x1344   : > { %v3280_v42 = vmul.f32 0.0078125, %v3277_v41  ;;  %v4695_v41 = vld [vmem:[#allocation6 + $0x18] sm:$0xff]  }
0x1346   : > { %v3282_v43 = vadd.f32 1e-05, %v3280_v42  ;;  %v4696_v42 = vld [vmem:[#allocation6 + $0x20] sm:$0xff]  }
0x1347   : > { %v3279_v37 = vpop.xlane.xlu0 %3278 }
0x1348   : > { %4772 = vrsqrt.f32 %v3282_v43  ;;  %v3281_v46 = vmul.f32 0.0078125, %v3279_v37  ;;  %v4697_v43 = vld [vmem:[#allocation6 + $0x28] sm:$0xff]   ;;  %v4698_v37 = vld [vmem:[#allocation6 + $0x30] sm:$0xff]  }
0x134a   : > { %v3283_v47 = vadd.f32 1e-05, %v3281_v46  ;;  %v4699_v46 = vld [vmem:[#allocation6 + $0x38] sm:$0xff]  }
0x134c   : > { %4774 = vrsqrt.f32 %v3283_v47 }
0x1352   : > { %v4773_v48 = vpop.eup %4772 }
0x1353   : > { %v3286_v49 = vmul.f32 %v4773_v48, %v5581_v3 }
0x1355   : > { %v3292_v51 = vmul.f32 %v3291_v45, %v3286_v49 }
0x1356   : > { %v4775_v50 = vpop.eup %4774 }
0x1357   : > { %v3287_v0 = vmul.f32 %v4775_v50, %v5583_v9  ;;  %v3298_v53 = vadd.f32 %v3297_v26, %v3292_v51  ;;  %v4784_v51 = vld [vmem:[#allocation7 + $0x18] sm:$0xff] }
0x1359   : > { %v3293_v52 = vmul.f32 %v3291_v45, %v3287_v0 }
0x135b   : > { %v3299_v54 = vadd.f32 %v3297_v26, %v3293_v52  ;;  %v3606_v26 = vrot.slane %v4784_v51, %v1948_v56 }
0x135d   : > { %v3300_v55 = vpack.c.bf16 %v3299_v54, %v3298_v53 }
0x135f   : > { %3422 = vmatmul.mubr.bf16.vlgmr.msra.gmra.mrb[84].mxu1 %v3300_v55 }
0x1360   : > { %4453 = vmatprep.mubr.msk.bf16.mxu1 %vm4927_vm0, %v4926_v20  ;;  %4438 = vmatpush3.bf16.msra.mxu1 %v4692_v32 }
0x1361   : > { %4439 = vmatprep.subr.bf16.mxu1 %v4926_v20 }
0x1364   : > { %4440 = vmatpush3.bf16.msra.mxu1 %v4693_v33 }
0x1365   : > { %4441 = vmatprep.subr.bf16.mxu1 %v4926_v20 }
0x1368   : > { %4442 = vmatpush3.bf16.msra.mxu1 %v4694_v40 }
0x1369   : > { %4443 = vmatprep.subr.bf16.mxu1 %v4926_v20 }
0x136c   : > { %4444 = vmatpush3.bf16.msra.mxu1 %v4695_v41 }
0x136d   : > { %4445 = vmatprep.subr.bf16.mxu1 %v4926_v20 }
0x1370   : > { %4446 = vmatpush3.bf16.msra.mxu1 %v4696_v42 }
0x1371   : > { %4447 = vmatprep.subr.bf16.mxu1 %v4926_v20 }
0x1374   : > { %4448 = vmatpush3.bf16.msra.mxu1 %v4697_v43 }
0x1375   : > { %4449 = vmatprep.subr.bf16.mxu1 %v4926_v20 }
0x1378   : > { %4450 = vmatpush3.bf16.msra.mxu1 %v4698_v37 }
0x1379   : > { %4451 = vmatprep.subr.bf16.mxu1 %v4926_v20  ;;  %v3612_v20 = vrot.slane %v4784_v51, %v1954_v58 }
0x137c   : > { %4452 = vmatpush3.bf16.msra.mxu1 %v4699_v46 }
0x1432   : > { %v3423_v63 = vpop.f32.mrb[84].mxu1 }
0x1433   : > { %v3424_v30 = vadd.f32 %v3423_v63, %v3304_v28  ;;  %v3425_v1 = vpop.f32.mrb[85].mxu1 }
0x1434   : > { %v3426_v2 = vadd.f32 %v3425_v1, %v3308_v62  ;;  %v3427_v3 = vpop.f32.mrb[86].mxu1 }
0x1435   : > { %v3428_v8 = vadd.f32 %v3427_v3, %v3304_v28  ;;  %v3429_v9 = vpop.f32.mrb[87].mxu1  ;;  %v3432_v5 = vmax.f32 %v3424_v30, 0.0  ;;  %v4001_v28 = vld [vmem:[#allocation7 + $0x30] ss:$0 sm:$0xff] }
0x1436   : > { %v3430_v4 = vadd.f32 %v3429_v9, %v3308_v62  ;;  %v3433_v11 = vmax.f32 %v3426_v2, 0.0 }
0x1437   : > { %v3434_v10 = vmax.f32 %v3428_v8, 0.0 }
0x1438   : > { %v3435_v12 = vmax.f32 %v3430_v4, 0.0 }
0x1439   : > { %v3436_v13 = vpack.c.bf16 %v3434_v10, %v3432_v5 }
0x143a   : > { %v3437_v6 = vpack.c.bf16 %v3435_v12, %v3433_v11 }
0x143c   : > { %3570 = vmatprep.mubr.bf16.mxu0 %v3437_v6 }
0x143d   : > { %3571 = vmatmul.mubr.bf16.vlgmr.msra.gmra.mrb[76].mxu0 %v3436_v13 }
0x1510   : > { %v4150_v14 = vpop.f32.mrb[76].mxu0 }
0x1511   : > { %v4151_v44 = vpop.f32.mrb[77].mxu0 }
0x1512   : > { %v4152_v15 = vadd.f32 %v4151_v44, %v4150_v14  ;;  %v4153_v16 = vpop.f32.mrb[78].mxu0 }
0x1513   : > { %v4154_v17 = vpop.f32.mrb[79].mxu0 }
0x1514   : > { %v3573_v19 = vadd.f32 %v4152_v15, %v3441_v24  ;;  %v4155_v21 = vadd.f32 %v4154_v17, %v4153_v16 }
0x1516   : > { %v3576_v18 = vadd.f32 %v4155_v21, %v3441_v24  ;;  %v3579_v27 = vadd.f32 %v3573_v19, %v3298_v53 }
0x1518   : > { %3581 = vadd.xlane.f32.xlu1 %v3579_v27  ;;  %v3580_v31 = vadd.f32 %v3576_v18, %v3299_v54 }
0x151a   : > { %3583 = vadd.xlane.f32.xlu0 %v3580_v31 }
0x15a5   : > { %v3582_v61 = vpop.xlane.xlu1 %3581 }
0x15a6   : > { %v3585_v7 = vmul.f32 0.0078125, %v3582_v61 }
0x15a7   : > { %v3584_v35 = vpop.xlane.xlu0 %3583 }
0x15a8   : > { %v3587_v29 = vsub.f32 %v3579_v27, %v3585_v7  ;;  %v3586_v36 = vmul.f32 0.0078125, %v3584_v35 }
0x15aa   : > { %v3588_v23 = vsub.f32 %v3580_v31, %v3586_v36  ;;  %v3589_v38 = vmul.f32 %v3587_v29, %v3587_v29 }
0x15ac   : > { %3591 = vadd.xlane.f32.xlu1 %v3589_v38  ;;  %v3590_v39 = vmul.f32 %v3588_v23, %v3588_v23 }
0x15ae   : > { %3593 = vadd.xlane.f32.xlu0 %v3590_v39 }
0x1639   : > { %v3592_v47 = vpop.xlane.xlu1 %3591 }
0x163a   : > { %v3595_v48 = vmul.f32 0.0078125, %v3592_v47 }
0x163b   : > { %v3594_v49 = vpop.xlane.xlu0 %3593 }
0x163c   : > { %v3597_v45 = vadd.f32 1e-05, %v3595_v48  ;;  %v3596_v50 = vmul.f32 0.0078125, %v3594_v49 }
0x163e   : > { %4776 = vrsqrt.f32 %v3597_v45  ;;  %v3598_v0 = vadd.f32 1e-05, %v3596_v50 }
0x1640   : > { %4778 = vrsqrt.f32 %v3598_v0 }
0x1648   : > { %v4777_v52 = vpop.eup %4776 }
0x1649   : > { %v3601_v53 = vmul.f32 %v4777_v52, %v3587_v29 }
0x164a   : > { %v4779_v54 = vpop.eup %4778 }
0x164b   : > { %v3602_v55 = vmul.f32 %v4779_v54, %v3588_v23  ;;  %v3607_v57 = vmul.f32 %v3606_v26, %v3601_v53 }
0x164d   : > { %v3608_v59 = vmul.f32 %v3606_v26, %v3602_v55  ;;  %v3613_v25 = vadd.f32 %v3612_v20, %v3607_v57 }
0x164f   : > { %v3614_v34 = vadd.f32 %v3612_v20, %v3608_v59 }
0x1651   : > { %v3615_v60 = vpack.c.bf16 %v3614_v34, %v3613_v25 }
0x1653   : > { %4454 = vmatmul.mubr.bf16.vlgmr.msra.gmra.mrb[88].mxu1 %v3615_v60 }
0x1726   : > { %v3718_v56 = vpop.f32.mrb[88].mxu1 }
0x1727   : > { %v3719_v62 = vadd.f32 %v4001_v28, %v3718_v56  ;;  %v4455_v63 = vpop.f32.mrb[89].mxu1 }
0x1728   : > { %v3721_v30 = vpop.f32.mrb[90].mxu1 }
0x1729   : > { %3725 = vst [vmem:[%s285_s30] sm:$0xff] %v3719_v62  ;;  %v3722_v1 = vadd.f32 %v4001_v28, %v3721_v30  ;;  %v4456_v2 = vpop.f32.mrb[91].mxu1 }
0x172b   : > { %3726 = vst [vmem:[%s285_s30 + $0x8] sm:$0xff] %v3722_v1 }
0x172c PF: > { %s18_s18 = sadd.s32 1, %s4915_s18  }
0x172d   : > { %p15_p3 = scmp.ge.s32.totalorder %s18_s18, 4  }
0x172f   :  { %17 = sbr.rel (!%p15_p3) target bundleno = 3 (0x3), region = 89 }
0x1736   :  { %3749 = vsyncpa [#allocation3], 1 }
0x1737   :  { %3751 = vsyncpa [#allocation3 + $0x1], 1 }
0x1738   :  { %3752 = vsyncpa [#allocation5], 1 }
0x1739   :  { %3753 = vsyncpa [#allocation8], 1 }

</bundles_post_ra>
